<compile_context>
chip_gen: v7x
topology: tpu7x:2x2x1
jax: 0.10.0
libtpu: 0.0.40
codegen_flags: <defaults>
</compile_context>

<pallas_src>
import functools

import jax
import jax.numpy as jnp
import numpy as np
from jax.experimental import pallas as pl
from jax.experimental.pallas import tpu as pltpu

EPS = 1e-5                          # PyTorch BatchNorm1d default eps
N_VIEWS = 2                         # the module always processes two views
_VMEM_LIMIT = 32 * 1024 * 1024      # explicit scoped-VMEM limit (portable v5e..v7x)


# ----------------------------------------------------------------------------
# In-kernel building blocks
# ----------------------------------------------------------------------------
def _layer(x, w_bf16, bgb, *, b_per_view, use_bn, use_relu):
    """Linear (bf16 MXU, f32 acc) [+ per-view training-mode BN1d] [+ ReLU].

    Both views are merged along the matmul M dimension (rows [0,B) = view 1,
    rows [B,2B) = view 2); BN statistics are computed separately per view via
    masked reductions.  For BN layers the Linear bias is omitted because BN
    mean-subtraction cancels it exactly (forward output unchanged).
    """
    y = jnp.dot(x.astype(jnp.bfloat16), w_bf16, preferred_element_type=jnp.float32)
    if use_bn:
        rows = jax.lax.broadcasted_iota(jnp.int32, (y.shape[0], 1), 0)   # (2B, 1)
        in_v0 = rows < b_per_view                                        # view-1 mask
        inv_b = 1.0 / b_per_view
        m0 = jnp.sum(jnp.where(in_v0, y, 0.0), axis=0, keepdims=True) * inv_b
        m1 = jnp.sum(jnp.where(in_v0, 0.0, y), axis=0, keepdims=True) * inv_b
        mean = jnp.where(in_v0, m0, m1)                                  # (2B, D)
        c = y - mean
        c2 = c * c
        v0 = jnp.sum(jnp.where(in_v0, c2, 0.0), axis=0, keepdims=True) * inv_b
        v1 = jnp.sum(jnp.where(in_v0, 0.0, c2), axis=0, keepdims=True) * inv_b
        var = jnp.where(in_v0, v0, v1)                                   # biased var
        y = c * jax.lax.rsqrt(var + EPS)
        y = y * bgb[1:2, :] + bgb[2:3, :]                                # gamma, beta
    else:
        y = y + bgb[0:1, :]                                              # bias (last layer)
    if use_relu:
        y = jnp.maximum(y, 0.0)
    return y


def _fused_head_kernel(x_ref, w_ref, bgb_ref, cw_ref, cb_ref,
                       z_ref, p_ref, lg_ref, *, b_per_view):
    """One grid step = one modality branch (0=image, 1=text).

    x_ref   : (1, 2B, D)  raw CLS / EOT features for this branch (both views)
    w_ref   : (1, 5, D, D) bf16 weight stack (projector 3 + predictor 2)
    bgb_ref : (1, 5, 3, D) f32  packed [bias; gamma; beta] per layer
    cw_ref  : (D, 128)    bf16 classifier weight (zero-padded to 128 lanes)
    cb_ref  : (1, 128)    f32  classifier bias (padded)
    """
    x = x_ref[0]                                                         # (2B, D)

    # ---- classifier folded in: logits on the raw features in VMEM --------
    lg = jnp.dot(x.astype(jnp.bfloat16), cw_ref[...],
                 preferred_element_type=jnp.float32) + cb_ref[...]
    lg_ref[0] = lg.astype(lg_ref.dtype)

    # ---- projection_MLP (3 layers, BN on all, ReLU on first two) ---------
    h = x
    for l in range(3):
        h = _layer(h, w_ref[0, l], bgb_ref[0, l],
                   b_per_view=b_per_view, use_bn=True, use_relu=(l < 2))
    z = h
    # ---- prediction_MLP (Linear+BN+ReLU, then plain Linear with bias) ----
    h = _layer(z, w_ref[0, 3], bgb_ref[0, 3],
               b_per_view=b_per_view, use_bn=True, use_relu=True)
    p = _layer(h, w_ref[0, 4], bgb_ref[0, 4],
               b_per_view=b_per_view, use_bn=False, use_relu=False)

    z_ref[0] = z.astype(z_ref.dtype)
    p_ref[0] = p.astype(p_ref.dtype)


def fused_head(x_branches, w, bgb, cls_w, cls_b, *, b_per_view):
    """Single pallas_call covering both modality branches + classifier."""
    nbr, n2b, d = x_branches.shape          # (2, 2B, D)
    nl = w.shape[1]                         # 5
    c = cls_w.shape[1]                      # 128 (lane-padded classes)
    kernel = functools.partial(_fused_head_kernel, b_per_view=b_per_view)
    return pl.pallas_call(
        kernel,
        grid=(nbr,),
        in_specs=[
            pl.BlockSpec((1, n2b, d), lambda br: (br, 0, 0)),       # activations
            pl.BlockSpec((1, nl, d, d), lambda br: (br, 0, 0, 0)),  # per-branch weights
            pl.BlockSpec((1, nl, 3, d), lambda br: (br, 0, 0, 0)),  # bias/gamma/beta
            pl.BlockSpec((d, c), lambda br: (0, 0)),                # classifier W (shared)
            pl.BlockSpec((1, c), lambda br: (0, 0)),                # classifier b (shared)
        ],
        out_specs=[
            pl.BlockSpec((1, n2b, d), lambda br: (br, 0, 0)),       # z
            pl.BlockSpec((1, n2b, d), lambda br: (br, 0, 0)),       # p
            pl.BlockSpec((1, n2b, c), lambda br: (br, 0, 0)),       # logits (padded)
        ],
        out_shape=[
            jax.ShapeDtypeStruct((nbr, n2b, d), jnp.float32),
            jax.ShapeDtypeStruct((nbr, n2b, d), jnp.float32),
            jax.ShapeDtypeStruct((nbr, n2b, c), jnp.float32),
        ],
        compiler_params=pltpu.CompilerParams(
            dimension_semantics=("parallel",),   # branch axis -> 2 TCs on v7x
            vmem_limit_bytes=_VMEM_LIMIT),
    )(x_branches, w, bgb, cls_w, cls_b)


# ----------------------------------------------------------------------------
# MultiViewCLIP.forward on top of encoder dense outputs
# ----------------------------------------------------------------------------
def multi_view_clip_forward(params, image_feats_dense, text_feats_dense,
                            captions1, captions2, num_class):
    """image_feats_dense = encode_image(cat(images1, images2), return_dense=True)
       text_feats_dense  = encode_text(cat(captions1, captions2), return_dense=True)"""
    b, _ = captions1.shape
    d = image_feats_dense.shape[-1]

    # ---- token selection (tiny XLA gathers; avoids DMAing (B,L,D) into VMEM)
    img_cls = image_feats_dense[:, 0, :]                                 # (2B, D)
    captions = jnp.concatenate([captions1, captions2], axis=0).astype(jnp.int32)
    eot_idx = jnp.argmax(captions, axis=-1)                              # (2B,)
    txt_sel = jnp.take_along_axis(
        text_feats_dense, eot_idx[:, None, None], axis=1)[:, 0, :]       # (2B, D)

    image_feats_1, image_feats_2 = img_cls[:b], img_cls[b:]
    text_feats_1, text_feats_2 = txt_sel[:b], txt_sel[b:]

    # ---- one fused kernel: both branches, both views, + classifier --------
    x_branches = jnp.stack([img_cls, txt_sel], axis=0)                   # (2, 2B, D)
    z, p, logits_pad = fused_head(x_branches, params["W"], params["bgb"],
                                  params["cls_w"], params["cls_b"], b_per_view=b)
    logits = logits_pad[..., :num_class]                                 # (2, 2B, C)

    image_logits_1, image_logits_2 = logits[0, :b], logits[0, b:]
    text_logits_1, text_logits_2 = logits[1, :b], logits[1, b:]

    return {
        "image_feats": [image_feats_1, image_feats_2],
        "text_feats": [text_feats_1, text_feats_2],
        "simsiam_features_images": [z[0, :b], z[0, b:], p[0, :b], p[0, b:]],
        "simsiam_features_texts": [z[1, :b], z[1, b:], p[1, :b], p[1, b:]],
        "logit_scale": params["logit_scale"],
        "id_logits": [image_logits_1, text_logits_1, image_logits_2, text_logits_2],
    }


# ----------------------------------------------------------------------------
# Parameter init (packed: W stack bf16, [bias;gamma;beta] stack f32)
# ----------------------------------------------------------------------------
def _branch_params(key, dim):
    kw, kb, kg, ke = jax.random.split(key, 4)
    w = jax.random.normal(kw, (5, dim, dim), jnp.float32) * 0.02
    bias = jax.random.normal(kb, (5, dim), jnp.float32) * 0.01
    gamma = 1.0 + jax.random.normal(kg, (5, dim), jnp.float32) * 0.1
    beta = jax.random.normal(ke, (5, dim), jnp.float32) * 0.01
    bgb = jnp.stack([bias, gamma, beta], axis=1)          # (5, 3, D)
    # layer 4 (predictor output) has no BN; its gamma/beta rows are ignored.
    return w.astype(jnp.bfloat16), bgb


def init_params(key, dim=512, num_class=16):
    ki, kt, kc = jax.random.split(key, 3)
    img_w, img_bgb = _branch_params(ki, dim)
    txt_w, txt_bgb = _branch_params(kt, dim)
    cls_w_small = jax.random.normal(kc, (dim, num_class), jnp.float32) * 0.001
    cls_w = jnp.zeros((dim, 128), jnp.float32).at[:, :num_class].set(cls_w_small)
    return dict(
        W=jnp.stack([img_w, txt_w], axis=0),              # (2, 5, D, D) bf16
        bgb=jnp.stack([img_bgb, txt_bgb], axis=0),        # (2, 5, 3, D) f32
        cls_w=cls_w.astype(jnp.bfloat16),                 # padded to 128 lanes
        cls_b=jnp.zeros((1, 128), jnp.float32),           # PyTorch init: bias = 0
        logit_scale=jnp.asarray(np.log(1.0 / 0.07), jnp.float32),
    )


# ----------------------------------------------------------------------------
# Pure-JAX reference (PyTorch-faithful: bias kept on every Linear; BN cancels
# it on BN layers, which is exactly why the kernel can drop those adds).
# ----------------------------------------------------------------------------
def _ref_layer(x, w_bf16, bgb, use_bn, use_relu):
    y = jnp.dot(x.astype(jnp.bfloat16), w_bf16, preferred_element_type=jnp.float32)
    y = y + bgb[0]
    if use_bn:
        m = y.mean(0, keepdims=True)
        v = jnp.mean((y - m) ** 2, 0, keepdims=True)
        y = (y - m) * jax.lax.rsqrt(v + EPS)
        y = y * bgb[1] + bgb[2]
    if use_relu:
        y = jnp.maximum(y, 0.0)
    return y


def _ref_branch(x, w, bgb):
    h = x
    for layer_idx in range(3):
        h = _ref_layer(h, w[layer_idx], bgb[layer_idx], True, layer_idx < 2)
    z = h
    h = _ref_layer(z, w[3], bgb[3], True, True)
    p = _ref_layer(h, w[4], bgb[4], False, False)
    return z, p


# ----------------------------------------------------------------------------
if __name__ == "__main__":
    B, L_IMG, L_TXT, D, NUM_CLASS = 4, 5, 8, 512, 16

    key = jax.random.PRNGKey(0)
    kp, ki, kt, kc1, kc2 = jax.random.split(key, 5)
    params = init_params(kp, dim=D, num_class=NUM_CLASS)

    image_feats_dense = jax.random.normal(ki, (2 * B, L_IMG, D), jnp.float32)
    text_feats_dense = jax.random.normal(kt, (2 * B, L_TXT, D), jnp.float32)
    captions1 = jax.random.randint(kc1, (B, L_TXT), 1, 1000, dtype=jnp.int32)
    captions2 = jax.random.randint(kc2, (B, L_TXT), 1, 1000, dtype=jnp.int32)

    fwd = jax.jit(multi_view_clip_forward, static_argnums=(5,))
    out = fwd(params, image_feats_dense, text_feats_dense, captions1, captions2, NUM_CLASS)
    out = jax.block_until_ready(out)

    # --- reference check (pure JAX, per-view processing like PyTorch) ---
    img1 = image_feats_dense[:B, 0, :]
    img2 = image_feats_dense[B:, 0, :]
    txt1_ref = text_feats_dense[:B][jnp.arange(B), jnp.argmax(captions1, axis=-1)]
    txt2_ref = text_feats_dense[B:][jnp.arange(B), jnp.argmax(captions2, axis=-1)]

    z1i_ref, p1i_ref = _ref_branch(img1, params["W"][0], params["bgb"][0])
    z2i_ref, p2i_ref = _ref_branch(img2, params["W"][0], params["bgb"][0])
    z1t_ref, p1t_ref = _ref_branch(txt1_ref, params["W"][1], params["bgb"][1])
    logits_img1_ref = (jnp.dot(img1.astype(jnp.bfloat16), params["cls_w"],
                               preferred_element_type=jnp.float32)[:, :NUM_CLASS]
                       + params["cls_b"][0, :NUM_CLASS])
    logits_txt1_ref = (jnp.dot(txt1_ref.astype(jnp.bfloat16), params["cls_w"],
                               preferred_element_type=jnp.float32)[:, :NUM_CLASS]
                       + params["cls_b"][0, :NUM_CLASS])

    np.testing.assert_allclose(out["text_feats"][0], txt1_ref, rtol=1e-6, atol=1e-6)
    np.testing.assert_allclose(out["text_feats"][1], txt2_ref, rtol=1e-6, atol=1e-6)
    np.testing.assert_allclose(out["simsiam_features_images"][0], z1i_ref, rtol=2e-2, atol=2e-2)
    np.testing.assert_allclose(out["simsiam_features_images"][1], z2i_ref, rtol=2e-2, atol=2e-2)
    np.testing.assert_allclose(out["simsiam_features_images"][2], p1i_ref, rtol=2e-2, atol=2e-2)
    np.testing.assert_allclose(out["simsiam_features_images"][3], p2i_ref, rtol=2e-2, atol=2e-2)
    np.testing.assert_allclose(out["simsiam_features_texts"][0], z1t_ref, rtol=2e-2, atol=2e-2)
    np.testing.assert_allclose(out["simsiam_features_texts"][2], p1t_ref, rtol=2e-2, atol=2e-2)
    np.testing.assert_allclose(out["id_logits"][0], logits_img1_ref, rtol=2e-2, atol=1e-3)
    np.testing.assert_allclose(out["id_logits"][1], logits_txt1_ref, rtol=2e-2, atol=1e-3)
    assert all(bool(jnp.all(jnp.isfinite(x))) for x in out["simsiam_features_texts"])
    assert all(bool(jnp.all(jnp.isfinite(x))) for x in out["id_logits"])

    print("KERNEL_OK")
</pallas_src>

<mosaic_0001>
module attributes {stable_mosaic.version = 11 : i64} {
  func.func @_fused_head_kernel(%arg0: i32, %arg1: memref<1x8x512xf32, #tpu.memory_space<vmem>>, %arg2: memref<1x5x512x512xbf16, #tpu.memory_space<vmem>>, %arg3: memref<1x5x3x512xf32, #tpu.memory_space<vmem>>, %arg4: memref<512x128xbf16, #tpu.memory_space<vmem>>, %arg5: memref<1x128xf32, #tpu.memory_space<vmem>>, %arg6: memref<1x8x512xf32, #tpu.memory_space<vmem>>, %arg7: memref<1x8x512xf32, #tpu.memory_space<vmem>>, %arg8: memref<1x8x128xf32, #tpu.memory_space<vmem>>) attributes {dimension_semantics = [#tpu.dimension_semantics<parallel>], iteration_bounds = array<i64: 2>, scalar_prefetch = 0 : i64, scratch_operands = 0 : i64, tpu.core_type = #tpu.core_type<tc>, window_params = [{transform_indices = @transform_0, window_bounds = array<i64: 1, 8, 512>}, {transform_indices = @transform_1, window_bounds = array<i64: 1, 5, 512, 512>}, {transform_indices = @transform_2, window_bounds = array<i64: 1, 5, 3, 512>}, {pipeline_mode = #tpu.pipeline_mode<synchronous>, transform_indices = @transform_3, window_bounds = array<i64: 512, 128>}, {pipeline_mode = #tpu.pipeline_mode<synchronous>, transform_indices = @transform_4, window_bounds = array<i64: 1, 128>}, {transform_indices = @transform_5, window_bounds = array<i64: 1, 8, 512>}, {transform_indices = @transform_6, window_bounds = array<i64: 1, 8, 512>}, {transform_indices = @transform_7, window_bounds = array<i64: 1, 8, 128>}]} {
    %c0 = arith.constant 0 : index
    %c0_0 = arith.constant 0 : index
    %c0_1 = arith.constant 0 : index
    %0 = vector.load %arg1[%c0, %c0_0, %c0_1] : memref<1x8x512xf32, #tpu.memory_space<vmem>>, vector<1x8x512xf32>
    %1 = vector.shape_cast %0 : vector<1x8x512xf32> to vector<8x512xf32>
    %2 = arith.truncf %1 : vector<8x512xf32> to vector<8x512xbf16>
    %c0_2 = arith.constant 0 : index
    %c0_3 = arith.constant 0 : index
    %3 = vector.load %arg4[%c0_2, %c0_3] : memref<512x128xbf16, #tpu.memory_space<vmem>>, vector<512x128xbf16>
    %cst = arith.constant dense<0.000000e+00> : vector<8x128xf32>
    %4 = tpu.matmul %2, %3, %cst {dimension_numbers = #tpu.dot_dimension_numbers<[1], [0], [0], [1], [0, 0, 1, 1], [], []>} : vector<8x512xbf16>, vector<512x128xbf16>, vector<8x128xf32> -> vector<8x128xf32>
    %c0_4 = arith.constant 0 : index
    %c0_5 = arith.constant 0 : index
    %5 = vector.load %arg5[%c0_4, %c0_5] : memref<1x128xf32, #tpu.memory_space<vmem>>, vector<1x128xf32>
    %6 = vector.broadcast %5 : vector<1x128xf32> to vector<8x128xf32>
    %7 = arith.addf %4, %6 : vector<8x128xf32>
    %c0_6 = arith.constant 0 : index
    %c0_7 = arith.constant 0 : index
    %c0_8 = arith.constant 0 : index
    %8 = vector.load %arg8[%c0_6, %c0_7, %c0_8] : memref<1x8x128xf32, #tpu.memory_space<vmem>>, vector<1x8x128xf32>
    %9 = vector.shape_cast %8 : vector<1x8x128xf32> to vector<8x128xf32>
    %10 = vector.shape_cast %7 : vector<8x128xf32> to vector<1x8x128xf32>
    tpu.vector_store %arg8[%c0_6, %c0_7, %c0_8], %10 {strides = array<i32>} : memref<1x8x128xf32, #tpu.memory_space<vmem>>, vector<1x8x128xf32>,
    %c0_9 = arith.constant 0 : index
    %c0_10 = arith.constant 0 : index
    %c0_11 = arith.constant 0 : index
    %c0_12 = arith.constant 0 : index
    %11 = vector.load %arg2[%c0_9, %c0_10, %c0_11, %c0_12] : memref<1x5x512x512xbf16, #tpu.memory_space<vmem>>, vector<1x1x512x512xbf16>
    %12 = vector.shape_cast %11 : vector<1x1x512x512xbf16> to vector<512x512xbf16>
    %c0_13 = arith.constant 0 : index
    %c0_14 = arith.constant 0 : index
    %c0_15 = arith.constant 0 : index
    %c0_16 = arith.constant 0 : index
    %13 = vector.load %arg3[%c0_13, %c0_14, %c0_15, %c0_16] : memref<1x5x3x512xf32, #tpu.memory_space<vmem>>, vector<1x1x3x512xf32>
    %14 = vector.shape_cast %13 : vector<1x1x3x512xf32> to vector<3x512xf32>
    %15 = arith.truncf %1 : vector<8x512xf32> to vector<8x512xbf16>
    %cst_17 = arith.constant dense<0.000000e+00> : vector<8x512xf32>
    %16 = tpu.matmul %15, %12, %cst_17 {dimension_numbers = #tpu.dot_dimension_numbers<[1], [0], [0], [1], [0, 0, 1, 1], [], []>} : vector<8x512xbf16>, vector<512x512xbf16>, vector<8x512xf32> -> vector<8x512xf32>
    %17 = tpu.iota {dimensions = array<i32: 0>} : vector<8x1xi32>
    %c4_i32 = arith.constant 4 : i32
    %18 = vector.broadcast %c4_i32 : i32 to vector<8x1xi32>
    %19 = arith.cmpi slt, %17, %18 : vector<8x1xi32>
    %cst_18 = arith.constant 0.000000e+00 : f32
    %20 = vector.shape_cast %19 : vector<8x1xi1> to vector<8x1xi1>
    %21 = vector.broadcast %20 : vector<8x1xi1> to vector<8x512xi1>
    %22 = vector.broadcast %cst_18 : f32 to vector<8x512xf32>
    %23 = arith.select %21, %16, %22 : vector<8x512xi1>, vector<8x512xf32>
    %cst_19 = arith.constant dense<0.000000e+00> : vector<512xf32>
    %24 = vector.multi_reduction <add>, %23, %cst_19 [0] : vector<8x512xf32> to vector<512xf32>
    %25 = vector.shape_cast %24 : vector<512xf32> to vector<1x512xf32>
    %cst_20 = arith.constant 2.500000e-01 : f32
    %26 = vector.broadcast %cst_20 : f32 to vector<1x512xf32>
    %27 = arith.mulf %25, %26 : vector<1x512xf32>
    %cst_21 = arith.constant 0.000000e+00 : f32
    %28 = vector.shape_cast %19 : vector<8x1xi1> to vector<8x1xi1>
    %29 = vector.broadcast %28 : vector<8x1xi1> to vector<8x512xi1>
    %30 = vector.broadcast %cst_21 : f32 to vector<8x512xf32>
    %31 = arith.select %29, %30, %16 : vector<8x512xi1>, vector<8x512xf32>
    %cst_22 = arith.constant dense<0.000000e+00> : vector<512xf32>
    %32 = vector.multi_reduction <add>, %31, %cst_22 [0] : vector<8x512xf32> to vector<512xf32>
    %33 = vector.shape_cast %32 : vector<512xf32> to vector<1x512xf32>
    %cst_23 = arith.constant 2.500000e-01 : f32
    %34 = vector.broadcast %cst_23 : f32 to vector<1x512xf32>
    %35 = arith.mulf %33, %34 : vector<1x512xf32>
    %36 = vector.shape_cast %19 : vector<8x1xi1> to vector<8x1xi1>
    %37 = vector.broadcast %36 : vector<8x1xi1> to vector<8x512xi1>
    %38 = vector.shape_cast %27 : vector<1x512xf32> to vector<1x512xf32>
    %39 = vector.broadcast %38 : vector<1x512xf32> to vector<8x512xf32>
    %40 = vector.shape_cast %35 : vector<1x512xf32> to vector<1x512xf32>
    %41 = vector.broadcast %40 : vector<1x512xf32> to vector<8x512xf32>
    %42 = arith.select %37, %39, %41 : vector<8x512xi1>, vector<8x512xf32>
    %43 = arith.subf %16, %42 : vector<8x512xf32>
    %44 = arith.mulf %43, %43 : vector<8x512xf32>
    %cst_24 = arith.constant 0.000000e+00 : f32
    %45 = vector.shape_cast %19 : vector<8x1xi1> to vector<8x1xi1>
    %46 = vector.broadcast %45 : vector<8x1xi1> to vector<8x512xi1>
    %47 = vector.broadcast %cst_24 : f32 to vector<8x512xf32>
    %48 = arith.select %46, %44, %47 : vector<8x512xi1>, vector<8x512xf32>
    %cst_25 = arith.constant dense<0.000000e+00> : vector<512xf32>
    %49 = vector.multi_reduction <add>, %48, %cst_25 [0] : vector<8x512xf32> to vector<512xf32>
    %50 = vector.shape_cast %49 : vector<512xf32> to vector<1x512xf32>
    %cst_26 = arith.constant 2.500000e-01 : f32
    %51 = vector.broadcast %cst_26 : f32 to vector<1x512xf32>
    %52 = arith.mulf %50, %51 : vector<1x512xf32>
    %cst_27 = arith.constant 0.000000e+00 : f32
    %53 = vector.shape_cast %19 : vector<8x1xi1> to vector<8x1xi1>
    %54 = vector.broadcast %53 : vector<8x1xi1> to vector<8x512xi1>
    %55 = vector.broadcast %cst_27 : f32 to vector<8x512xf32>
    %56 = arith.select %54, %55, %44 : vector<8x512xi1>, vector<8x512xf32>
    %cst_28 = arith.constant dense<0.000000e+00> : vector<512xf32>
    %57 = vector.multi_reduction <add>, %56, %cst_28 [0] : vector<8x512xf32> to vector<512xf32>
    %58 = vector.shape_cast %57 : vector<512xf32> to vector<1x512xf32>
    %cst_29 = arith.constant 2.500000e-01 : f32
    %59 = vector.broadcast %cst_29 : f32 to vector<1x512xf32>
    %60 = arith.mulf %58, %59 : vector<1x512xf32>
    %61 = vector.shape_cast %19 : vector<8x1xi1> to vector<8x1xi1>
    %62 = vector.broadcast %61 : vector<8x1xi1> to vector<8x512xi1>
    %63 = vector.shape_cast %52 : vector<1x512xf32> to vector<1x512xf32>
    %64 = vector.broadcast %63 : vector<1x512xf32> to vector<8x512xf32>
    %65 = vector.shape_cast %60 : vector<1x512xf32> to vector<1x512xf32>
    %66 = vector.broadcast %65 : vector<1x512xf32> to vector<8x512xf32>
    %67 = arith.select %62, %64, %66 : vector<8x512xi1>, vector<8x512xf32>
    %cst_30 = arith.constant 9.99999974E-6 : f32
    %68 = vector.broadcast %cst_30 : f32 to vector<8x512xf32>
    %69 = arith.addf %67, %68 : vector<8x512xf32>
    %70 = math.rsqrt %69 : vector<8x512xf32>
    %71 = arith.mulf %43, %70 : vector<8x512xf32>
    %72 = vector.extract_strided_slice %14 {offsets = [1, 0], sizes = [1, 512], strides = [1, 1]} : vector<3x512xf32> to vector<1x512xf32>
    %73 = vector.broadcast %72 : vector<1x512xf32> to vector<8x512xf32>
    %74 = arith.mulf %71, %73 : vector<8x512xf32>
    %75 = vector.extract_strided_slice %14 {offsets = [2, 0], sizes = [1, 512], strides = [1, 1]} : vector<3x512xf32> to vector<1x512xf32>
    %76 = vector.broadcast %75 : vector<1x512xf32> to vector<8x512xf32>
    %77 = arith.addf %74, %76 : vector<8x512xf32>
    %cst_31 = arith.constant 0.000000e+00 : f32
    %78 = vector.broadcast %cst_31 : f32 to vector<8x512xf32>
    %79 = arith.maximumf %77, %78 : vector<8x512xf32>
    %c0_32 = arith.constant 0 : index
    %c1 = arith.constant 1 : index
    %c0_33 = arith.constant 0 : index
    %c0_34 = arith.constant 0 : index
    %80 = vector.load %arg2[%c0_32, %c1, %c0_33, %c0_34] : memref<1x5x512x512xbf16, #tpu.memory_space<vmem>>, vector<1x1x512x512xbf16>
    %81 = vector.shape_cast %80 : vector<1x1x512x512xbf16> to vector<512x512xbf16>
    %c0_35 = arith.constant 0 : index
    %c1_36 = arith.constant 1 : index
    %c0_37 = arith.constant 0 : index
    %c0_38 = arith.constant 0 : index
    %82 = vector.load %arg3[%c0_35, %c1_36, %c0_37, %c0_38] : memref<1x5x3x512xf32, #tpu.memory_space<vmem>>, vector<1x1x3x512xf32>
    %83 = vector.shape_cast %82 : vector<1x1x3x512xf32> to vector<3x512xf32>
    %84 = arith.truncf %79 : vector<8x512xf32> to vector<8x512xbf16>
    %cst_39 = arith.constant dense<0.000000e+00> : vector<8x512xf32>
    %85 = tpu.matmul %84, %81, %cst_39 {dimension_numbers = #tpu.dot_dimension_numbers<[1], [0], [0], [1], [0, 0, 1, 1], [], []>} : vector<8x512xbf16>, vector<512x512xbf16>, vector<8x512xf32> -> vector<8x512xf32>
    %86 = tpu.iota {dimensions = array<i32: 0>} : vector<8x1xi32>
    %c4_i32_40 = arith.constant 4 : i32
    %87 = vector.broadcast %c4_i32_40 : i32 to vector<8x1xi32>
    %88 = arith.cmpi slt, %86, %87 : vector<8x1xi32>
    %cst_41 = arith.constant 0.000000e+00 : f32
    %89 = vector.shape_cast %88 : vector<8x1xi1> to vector<8x1xi1>
    %90 = vector.broadcast %89 : vector<8x1xi1> to vector<8x512xi1>
    %91 = vector.broadcast %cst_41 : f32 to vector<8x512xf32>
    %92 = arith.select %90, %85, %91 : vector<8x512xi1>, vector<8x512xf32>
    %cst_42 = arith.constant dense<0.000000e+00> : vector<512xf32>
    %93 = vector.multi_reduction <add>, %92, %cst_42 [0] : vector<8x512xf32> to vector<512xf32>
    %94 = vector.shape_cast %93 : vector<512xf32> to vector<1x512xf32>
    %cst_43 = arith.constant 2.500000e-01 : f32
    %95 = vector.broadcast %cst_43 : f32 to vector<1x512xf32>
    %96 = arith.mulf %94, %95 : vector<1x512xf32>
    %cst_44 = arith.constant 0.000000e+00 : f32
    %97 = vector.shape_cast %88 : vector<8x1xi1> to vector<8x1xi1>
    %98 = vector.broadcast %97 : vector<8x1xi1> to vector<8x512xi1>
    %99 = vector.broadcast %cst_44 : f32 to vector<8x512xf32>
    %100 = arith.select %98, %99, %85 : vector<8x512xi1>, vector<8x512xf32>
    %cst_45 = arith.constant dense<0.000000e+00> : vector<512xf32>
    %101 = vector.multi_reduction <add>, %100, %cst_45 [0] : vector<8x512xf32> to vector<512xf32>
    %102 = vector.shape_cast %101 : vector<512xf32> to vector<1x512xf32>
    %cst_46 = arith.constant 2.500000e-01 : f32
    %103 = vector.broadcast %cst_46 : f32 to vector<1x512xf32>
    %104 = arith.mulf %102, %103 : vector<1x512xf32>
    %105 = vector.shape_cast %88 : vector<8x1xi1> to vector<8x1xi1>
    %106 = vector.broadcast %105 : vector<8x1xi1> to vector<8x512xi1>
    %107 = vector.shape_cast %96 : vector<1x512xf32> to vector<1x512xf32>
    %108 = vector.broadcast %107 : vector<1x512xf32> to vector<8x512xf32>
    %109 = vector.shape_cast %104 : vector<1x512xf32> to vector<1x512xf32>
    %110 = vector.broadcast %109 : vector<1x512xf32> to vector<8x512xf32>
    %111 = arith.select %106, %108, %110 : vector<8x512xi1>, vector<8x512xf32>
    %112 = arith.subf %85, %111 : vector<8x512xf32>
    %113 = arith.mulf %112, %112 : vector<8x512xf32>
    %cst_47 = arith.constant 0.000000e+00 : f32
    %114 = vector.shape_cast %88 : vector<8x1xi1> to vector<8x1xi1>
    %115 = vector.broadcast %114 : vector<8x1xi1> to vector<8x512xi1>
    %116 = vector.broadcast %cst_47 : f32 to vector<8x512xf32>
    %117 = arith.select %115, %113, %116 : vector<8x512xi1>, vector<8x512xf32>
    %cst_48 = arith.constant dense<0.000000e+00> : vector<512xf32>
    %118 = vector.multi_reduction <add>, %117, %cst_48 [0] : vector<8x512xf32> to vector<512xf32>
    %119 = vector.shape_cast %118 : vector<512xf32> to vector<1x512xf32>
    %cst_49 = arith.constant 2.500000e-01 : f32
    %120 = vector.broadcast %cst_49 : f32 to vector<1x512xf32>
    %121 = arith.mulf %119, %120 : vector<1x512xf32>
    %cst_50 = arith.constant 0.000000e+00 : f32
    %122 = vector.shape_cast %88 : vector<8x1xi1> to vector<8x1xi1>
    %123 = vector.broadcast %122 : vector<8x1xi1> to vector<8x512xi1>
    %124 = vector.broadcast %cst_50 : f32 to vector<8x512xf32>
    %125 = arith.select %123, %124, %113 : vector<8x512xi1>, vector<8x512xf32>
    %cst_51 = arith.constant dense<0.000000e+00> : vector<512xf32>
    %126 = vector.multi_reduction <add>, %125, %cst_51 [0] : vector<8x512xf32> to vector<512xf32>
    %127 = vector.shape_cast %126 : vector<512xf32> to vector<1x512xf32>
    %cst_52 = arith.constant 2.500000e-01 : f32
    %128 = vector.broadcast %cst_52 : f32 to vector<1x512xf32>
    %129 = arith.mulf %127, %128 : vector<1x512xf32>
    %130 = vector.shape_cast %88 : vector<8x1xi1> to vector<8x1xi1>
    %131 = vector.broadcast %130 : vector<8x1xi1> to vector<8x512xi1>
    %132 = vector.shape_cast %121 : vector<1x512xf32> to vector<1x512xf32>
    %133 = vector.broadcast %132 : vector<1x512xf32> to vector<8x512xf32>
    %134 = vector.shape_cast %129 : vector<1x512xf32> to vector<1x512xf32>
    %135 = vector.broadcast %134 : vector<1x512xf32> to vector<8x512xf32>
    %136 = arith.select %131, %133, %135 : vector<8x512xi1>, vector<8x512xf32>
    %cst_53 = arith.constant 9.99999974E-6 : f32
    %137 = vector.broadcast %cst_53 : f32 to vector<8x512xf32>
    %138 = arith.addf %136, %137 : vector<8x512xf32>
    %139 = math.rsqrt %138 : vector<8x512xf32>
    %140 = arith.mulf %112, %139 : vector<8x512xf32>
    %141 = vector.extract_strided_slice %83 {offsets = [1, 0], sizes = [1, 512], strides = [1, 1]} : vector<3x512xf32> to vector<1x512xf32>
    %142 = vector.broadcast %141 : vector<1x512xf32> to vector<8x512xf32>
    %143 = arith.mulf %140, %142 : vector<8x512xf32>
    %144 = vector.extract_strided_slice %83 {offsets = [2, 0], sizes = [1, 512], strides = [1, 1]} : vector<3x512xf32> to vector<1x512xf32>
    %145 = vector.broadcast %144 : vector<1x512xf32> to vector<8x512xf32>
    %146 = arith.addf %143, %145 : vector<8x512xf32>
    %cst_54 = arith.constant 0.000000e+00 : f32
    %147 = vector.broadcast %cst_54 : f32 to vector<8x512xf32>
    %148 = arith.maximumf %146, %147 : vector<8x512xf32>
    %c0_55 = arith.constant 0 : index
    %c2 = arith.constant 2 : index
    %c0_56 = arith.constant 0 : index
    %c0_57 = arith.constant 0 : index
    %149 = vector.load %arg2[%c0_55, %c2, %c0_56, %c0_57] : memref<1x5x512x512xbf16, #tpu.memory_space<vmem>>, vector<1x1x512x512xbf16>
    %150 = vector.shape_cast %149 : vector<1x1x512x512xbf16> to vector<512x512xbf16>
    %c0_58 = arith.constant 0 : index
    %c2_59 = arith.constant 2 : index
    %c0_60 = arith.constant 0 : index
    %c0_61 = arith.constant 0 : index
    %151 = vector.load %arg3[%c0_58, %c2_59, %c0_60, %c0_61] : memref<1x5x3x512xf32, #tpu.memory_space<vmem>>, vector<1x1x3x512xf32>
    %152 = vector.shape_cast %151 : vector<1x1x3x512xf32> to vector<3x512xf32>
    %153 = arith.truncf %148 : vector<8x512xf32> to vector<8x512xbf16>
    %cst_62 = arith.constant dense<0.000000e+00> : vector<8x512xf32>
    %154 = tpu.matmul %153, %150, %cst_62 {dimension_numbers = #tpu.dot_dimension_numbers<[1], [0], [0], [1], [0, 0, 1, 1], [], []>} : vector<8x512xbf16>, vector<512x512xbf16>, vector<8x512xf32> -> vector<8x512xf32>
    %155 = tpu.iota {dimensions = array<i32: 0>} : vector<8x1xi32>
    %c4_i32_63 = arith.constant 4 : i32
    %156 = vector.broadcast %c4_i32_63 : i32 to vector<8x1xi32>
    %157 = arith.cmpi slt, %155, %156 : vector<8x1xi32>
    %cst_64 = arith.constant 0.000000e+00 : f32
    %158 = vector.shape_cast %157 : vector<8x1xi1> to vector<8x1xi1>
    %159 = vector.broadcast %158 : vector<8x1xi1> to vector<8x512xi1>
    %160 = vector.broadcast %cst_64 : f32 to vector<8x512xf32>
    %161 = arith.select %159, %154, %160 : vector<8x512xi1>, vector<8x512xf32>
    %cst_65 = arith.constant dense<0.000000e+00> : vector<512xf32>
    %162 = vector.multi_reduction <add>, %161, %cst_65 [0] : vector<8x512xf32> to vector<512xf32>
    %163 = vector.shape_cast %162 : vector<512xf32> to vector<1x512xf32>
    %cst_66 = arith.constant 2.500000e-01 : f32
    %164 = vector.broadcast %cst_66 : f32 to vector<1x512xf32>
    %165 = arith.mulf %163, %164 : vector<1x512xf32>
    %cst_67 = arith.constant 0.000000e+00 : f32
    %166 = vector.shape_cast %157 : vector<8x1xi1> to vector<8x1xi1>
    %167 = vector.broadcast %166 : vector<8x1xi1> to vector<8x512xi1>
    %168 = vector.broadcast %cst_67 : f32 to vector<8x512xf32>
    %169 = arith.select %167, %168, %154 : vector<8x512xi1>, vector<8x512xf32>
    %cst_68 = arith.constant dense<0.000000e+00> : vector<512xf32>
    %170 = vector.multi_reduction <add>, %169, %cst_68 [0] : vector<8x512xf32> to vector<512xf32>
    %171 = vector.shape_cast %170 : vector<512xf32> to vector<1x512xf32>
    %cst_69 = arith.constant 2.500000e-01 : f32
    %172 = vector.broadcast %cst_69 : f32 to vector<1x512xf32>
    %173 = arith.mulf %171, %172 : vector<1x512xf32>
    %174 = vector.shape_cast %157 : vector<8x1xi1> to vector<8x1xi1>
    %175 = vector.broadcast %174 : vector<8x1xi1> to vector<8x512xi1>
    %176 = vector.shape_cast %165 : vector<1x512xf32> to vector<1x512xf32>
    %177 = vector.broadcast %176 : vector<1x512xf32> to vector<8x512xf32>
    %178 = vector.shape_cast %173 : vector<1x512xf32> to vector<1x512xf32>
    %179 = vector.broadcast %178 : vector<1x512xf32> to vector<8x512xf32>
    %180 = arith.select %175, %177, %179 : vector<8x512xi1>, vector<8x512xf32>
    %181 = arith.subf %154, %180 : vector<8x512xf32>
    %182 = arith.mulf %181, %181 : vector<8x512xf32>
    %cst_70 = arith.constant 0.000000e+00 : f32
    %183 = vector.shape_cast %157 : vector<8x1xi1> to vector<8x1xi1>
    %184 = vector.broadcast %183 : vector<8x1xi1> to vector<8x512xi1>
    %185 = vector.broadcast %cst_70 : f32 to vector<8x512xf32>
    %186 = arith.select %184, %182, %185 : vector<8x512xi1>, vector<8x512xf32>
    %cst_71 = arith.constant dense<0.000000e+00> : vector<512xf32>
    %187 = vector.multi_reduction <add>, %186, %cst_71 [0] : vector<8x512xf32> to vector<512xf32>
    %188 = vector.shape_cast %187 : vector<512xf32> to vector<1x512xf32>
    %cst_72 = arith.constant 2.500000e-01 : f32
    %189 = vector.broadcast %cst_72 : f32 to vector<1x512xf32>
    %190 = arith.mulf %188, %189 : vector<1x512xf32>
    %cst_73 = arith.constant 0.000000e+00 : f32
    %191 = vector.shape_cast %157 : vector<8x1xi1> to vector<8x1xi1>
    %192 = vector.broadcast %191 : vector<8x1xi1> to vector<8x512xi1>
    %193 = vector.broadcast %cst_73 : f32 to vector<8x512xf32>
    %194 = arith.select %192, %193, %182 : vector<8x512xi1>, vector<8x512xf32>
    %cst_74 = arith.constant dense<0.000000e+00> : vector<512xf32>
    %195 = vector.multi_reduction <add>, %194, %cst_74 [0] : vector<8x512xf32> to vector<512xf32>
    %196 = vector.shape_cast %195 : vector<512xf32> to vector<1x512xf32>
    %cst_75 = arith.constant 2.500000e-01 : f32
    %197 = vector.broadcast %cst_75 : f32 to vector<1x512xf32>
    %198 = arith.mulf %196, %197 : vector<1x512xf32>
    %199 = vector.shape_cast %157 : vector<8x1xi1> to vector<8x1xi1>
    %200 = vector.broadcast %199 : vector<8x1xi1> to vector<8x512xi1>
    %201 = vector.shape_cast %190 : vector<1x512xf32> to vector<1x512xf32>
    %202 = vector.broadcast %201 : vector<1x512xf32> to vector<8x512xf32>
    %203 = vector.shape_cast %198 : vector<1x512xf32> to vector<1x512xf32>
    %204 = vector.broadcast %203 : vector<1x512xf32> to vector<8x512xf32>
    %205 = arith.select %200, %202, %204 : vector<8x512xi1>, vector<8x512xf32>
    %cst_76 = arith.constant 9.99999974E-6 : f32
    %206 = vector.broadcast %cst_76 : f32 to vector<8x512xf32>
    %207 = arith.addf %205, %206 : vector<8x512xf32>
    %208 = math.rsqrt %207 : vector<8x512xf32>
    %209 = arith.mulf %181, %208 : vector<8x512xf32>
    %210 = vector.extract_strided_slice %152 {offsets = [1, 0], sizes = [1, 512], strides = [1, 1]} : vector<3x512xf32> to vector<1x512xf32>
    %211 = vector.broadcast %210 : vector<1x512xf32> to vector<8x512xf32>
    %212 = arith.mulf %209, %211 : vector<8x512xf32>
    %213 = vector.extract_strided_slice %152 {offsets = [2, 0], sizes = [1, 512], strides = [1, 1]} : vector<3x512xf32> to vector<1x512xf32>
    %214 = vector.broadcast %213 : vector<1x512xf32> to vector<8x512xf32>
    %215 = arith.addf %212, %214 : vector<8x512xf32>
    %c0_77 = arith.constant 0 : index
    %c3 = arith.constant 3 : index
    %c0_78 = arith.constant 0 : index
    %c0_79 = arith.constant 0 : index
    %216 = vector.load %arg2[%c0_77, %c3, %c0_78, %c0_79] : memref<1x5x512x512xbf16, #tpu.memory_space<vmem>>, vector<1x1x512x512xbf16>
    %217 = vector.shape_cast %216 : vector<1x1x512x512xbf16> to vector<512x512xbf16>
    %c0_80 = arith.constant 0 : index
    %c3_81 = arith.constant 3 : index
    %c0_82 = arith.constant 0 : index
    %c0_83 = arith.constant 0 : index
    %218 = vector.load %arg3[%c0_80, %c3_81, %c0_82, %c0_83] : memref<1x5x3x512xf32, #tpu.memory_space<vmem>>, vector<1x1x3x512xf32>
    %219 = vector.shape_cast %218 : vector<1x1x3x512xf32> to vector<3x512xf32>
    %220 = arith.truncf %215 : vector<8x512xf32> to vector<8x512xbf16>
    %cst_84 = arith.constant dense<0.000000e+00> : vector<8x512xf32>
    %221 = tpu.matmul %220, %217, %cst_84 {dimension_numbers = #tpu.dot_dimension_numbers<[1], [0], [0], [1], [0, 0, 1, 1], [], []>} : vector<8x512xbf16>, vector<512x512xbf16>, vector<8x512xf32> -> vector<8x512xf32>
    %222 = tpu.iota {dimensions = array<i32: 0>} : vector<8x1xi32>
    %c4_i32_85 = arith.constant 4 : i32
    %223 = vector.broadcast %c4_i32_85 : i32 to vector<8x1xi32>
    %224 = arith.cmpi slt, %222, %223 : vector<8x1xi32>
    %cst_86 = arith.constant 0.000000e+00 : f32
    %225 = vector.shape_cast %224 : vector<8x1xi1> to vector<8x1xi1>
    %226 = vector.broadcast %225 : vector<8x1xi1> to vector<8x512xi1>
    %227 = vector.broadcast %cst_86 : f32 to vector<8x512xf32>
    %228 = arith.select %226, %221, %227 : vector<8x512xi1>, vector<8x512xf32>
    %cst_87 = arith.constant dense<0.000000e+00> : vector<512xf32>
    %229 = vector.multi_reduction <add>, %228, %cst_87 [0] : vector<8x512xf32> to vector<512xf32>
    %230 = vector.shape_cast %229 : vector<512xf32> to vector<1x512xf32>
    %cst_88 = arith.constant 2.500000e-01 : f32
    %231 = vector.broadcast %cst_88 : f32 to vector<1x512xf32>
    %232 = arith.mulf %230, %231 : vector<1x512xf32>
    %cst_89 = arith.constant 0.000000e+00 : f32
    %233 = vector.shape_cast %224 : vector<8x1xi1> to vector<8x1xi1>
    %234 = vector.broadcast %233 : vector<8x1xi1> to vector<8x512xi1>
    %235 = vector.broadcast %cst_89 : f32 to vector<8x512xf32>
    %236 = arith.select %234, %235, %221 : vector<8x512xi1>, vector<8x512xf32>
    %cst_90 = arith.constant dense<0.000000e+00> : vector<512xf32>
    %237 = vector.multi_reduction <add>, %236, %cst_90 [0] : vector<8x512xf32> to vector<512xf32>
    %238 = vector.shape_cast %237 : vector<512xf32> to vector<1x512xf32>
    %cst_91 = arith.constant 2.500000e-01 : f32
    %239 = vector.broadcast %cst_91 : f32 to vector<1x512xf32>
    %240 = arith.mulf %238, %239 : vector<1x512xf32>
    %241 = vector.shape_cast %224 : vector<8x1xi1> to vector<8x1xi1>
    %242 = vector.broadcast %241 : vector<8x1xi1> to vector<8x512xi1>
    %243 = vector.shape_cast %232 : vector<1x512xf32> to vector<1x512xf32>
    %244 = vector.broadcast %243 : vector<1x512xf32> to vector<8x512xf32>
    %245 = vector.shape_cast %240 : vector<1x512xf32> to vector<1x512xf32>
    %246 = vector.broadcast %245 : vector<1x512xf32> to vector<8x512xf32>
    %247 = arith.select %242, %244, %246 : vector<8x512xi1>, vector<8x512xf32>
    %248 = arith.subf %221, %247 : vector<8x512xf32>
    %249 = arith.mulf %248, %248 : vector<8x512xf32>
    %cst_92 = arith.constant 0.000000e+00 : f32
    %250 = vector.shape_cast %224 : vector<8x1xi1> to vector<8x1xi1>
    %251 = vector.broadcast %250 : vector<8x1xi1> to vector<8x512xi1>
    %252 = vector.broadcast %cst_92 : f32 to vector<8x512xf32>
    %253 = arith.select %251, %249, %252 : vector<8x512xi1>, vector<8x512xf32>
    %cst_93 = arith.constant dense<0.000000e+00> : vector<512xf32>
    %254 = vector.multi_reduction <add>, %253, %cst_93 [0] : vector<8x512xf32> to vector<512xf32>
    %255 = vector.shape_cast %254 : vector<512xf32> to vector<1x512xf32>
    %cst_94 = arith.constant 2.500000e-01 : f32
    %256 = vector.broadcast %cst_94 : f32 to vector<1x512xf32>
    %257 = arith.mulf %255, %256 : vector<1x512xf32>
    %cst_95 = arith.constant 0.000000e+00 : f32
    %258 = vector.shape_cast %224 : vector<8x1xi1> to vector<8x1xi1>
    %259 = vector.broadcast %258 : vector<8x1xi1> to vector<8x512xi1>
    %260 = vector.broadcast %cst_95 : f32 to vector<8x512xf32>
    %261 = arith.select %259, %260, %249 : vector<8x512xi1>, vector<8x512xf32>
    %cst_96 = arith.constant dense<0.000000e+00> : vector<512xf32>
    %262 = vector.multi_reduction <add>, %261, %cst_96 [0] : vector<8x512xf32> to vector<512xf32>
    %263 = vector.shape_cast %262 : vector<512xf32> to vector<1x512xf32>
    %cst_97 = arith.constant 2.500000e-01 : f32
    %264 = vector.broadcast %cst_97 : f32 to vector<1x512xf32>
    %265 = arith.mulf %263, %264 : vector<1x512xf32>
    %266 = vector.shape_cast %224 : vector<8x1xi1> to vector<8x1xi1>
    %267 = vector.broadcast %266 : vector<8x1xi1> to vector<8x512xi1>
    %268 = vector.shape_cast %257 : vector<1x512xf32> to vector<1x512xf32>
    %269 = vector.broadcast %268 : vector<1x512xf32> to vector<8x512xf32>
    %270 = vector.shape_cast %265 : vector<1x512xf32> to vector<1x512xf32>
    %271 = vector.broadcast %270 : vector<1x512xf32> to vector<8x512xf32>
    %272 = arith.select %267, %269, %271 : vector<8x512xi1>, vector<8x512xf32>
    %cst_98 = arith.constant 9.99999974E-6 : f32
    %273 = vector.broadcast %cst_98 : f32 to vector<8x512xf32>
    %274 = arith.addf %272, %273 : vector<8x512xf32>
    %275 = math.rsqrt %274 : vector<8x512xf32>
    %276 = arith.mulf %248, %275 : vector<8x512xf32>
    %277 = vector.extract_strided_slice %219 {offsets = [1, 0], sizes = [1, 512], strides = [1, 1]} : vector<3x512xf32> to vector<1x512xf32>
    %278 = vector.broadcast %277 : vector<1x512xf32> to vector<8x512xf32>
    %279 = arith.mulf %276, %278 : vector<8x512xf32>
    %280 = vector.extract_strided_slice %219 {offsets = [2, 0], sizes = [1, 512], strides = [1, 1]} : vector<3x512xf32> to vector<1x512xf32>
    %281 = vector.broadcast %280 : vector<1x512xf32> to vector<8x512xf32>
    %282 = arith.addf %279, %281 : vector<8x512xf32>
    %cst_99 = arith.constant 0.000000e+00 : f32
    %283 = vector.broadcast %cst_99 : f32 to vector<8x512xf32>
    %284 = arith.maximumf %282, %283 : vector<8x512xf32>
    %c0_100 = arith.constant 0 : index
    %c4 = arith.constant 4 : index
    %c0_101 = arith.constant 0 : index
    %c0_102 = arith.constant 0 : index
    %285 = vector.load %arg2[%c0_100, %c4, %c0_101, %c0_102] : memref<1x5x512x512xbf16, #tpu.memory_space<vmem>>, vector<1x1x512x512xbf16>
    %286 = vector.shape_cast %285 : vector<1x1x512x512xbf16> to vector<512x512xbf16>
    %c0_103 = arith.constant 0 : index
    %c4_104 = arith.constant 4 : index
    %c0_105 = arith.constant 0 : index
    %c0_106 = arith.constant 0 : index
    %287 = vector.load %arg3[%c0_103, %c4_104, %c0_105, %c0_106] : memref<1x5x3x512xf32, #tpu.memory_space<vmem>>, vector<1x1x3x512xf32>
    %288 = vector.shape_cast %287 : vector<1x1x3x512xf32> to vector<3x512xf32>
    %289 = arith.truncf %284 : vector<8x512xf32> to vector<8x512xbf16>
    %cst_107 = arith.constant dense<0.000000e+00> : vector<8x512xf32>
    %290 = tpu.matmul %289, %286, %cst_107 {dimension_numbers = #tpu.dot_dimension_numbers<[1], [0], [0], [1], [0, 0, 1, 1], [], []>} : vector<8x512xbf16>, vector<512x512xbf16>, vector<8x512xf32> -> vector<8x512xf32>
    %291 = vector.extract_strided_slice %288 {offsets = [0, 0], sizes = [1, 512], strides = [1, 1]} : vector<3x512xf32> to vector<1x512xf32>
    %292 = vector.broadcast %291 : vector<1x512xf32> to vector<8x512xf32>
    %293 = arith.addf %290, %292 : vector<8x512xf32>
    %c0_108 = arith.constant 0 : index
    %c0_109 = arith.constant 0 : index
    %c0_110 = arith.constant 0 : index
    %294 = vector.load %arg6[%c0_108, %c0_109, %c0_110] : memref<1x8x512xf32, #tpu.memory_space<vmem>>, vector<1x8x512xf32>
    %295 = vector.shape_cast %294 : vector<1x8x512xf32> to vector<8x512xf32>
    %296 = vector.shape_cast %215 : vector<8x512xf32> to vector<1x8x512xf32>
    tpu.vector_store %arg6[%c0_108, %c0_109, %c0_110], %296 {strides = array<i32>} : memref<1x8x512xf32, #tpu.memory_space<vmem>>, vector<1x8x512xf32>,
    %c0_111 = arith.constant 0 : index
    %c0_112 = arith.constant 0 : index
    %c0_113 = arith.constant 0 : index
    %297 = vector.load %arg7[%c0_111, %c0_112, %c0_113] : memref<1x8x512xf32, #tpu.memory_space<vmem>>, vector<1x8x512xf32>
    %298 = vector.shape_cast %297 : vector<1x8x512xf32> to vector<8x512xf32>
    %299 = vector.shape_cast %293 : vector<8x512xf32> to vector<1x8x512xf32>
    tpu.vector_store %arg7[%c0_111, %c0_112, %c0_113], %299 {strides = array<i32>} : memref<1x8x512xf32, #tpu.memory_space<vmem>>, vector<1x8x512xf32>,
    return
  }
  func.func @transform_0(%arg0: i32) -> (i32, i32, i32) {
    %c0_i32 = arith.constant 0 : i32
    %c0_i32_0 = arith.constant 0 : i32
    %c0_i32_1 = arith.constant 0 : i32
    return %arg0, %c0_i32, %c0_i32_0 : i32, i32, i32
  }
  func.func @transform_1(%arg0: i32) -> (i32, i32, i32, i32) {
    %c0_i32 = arith.constant 0 : i32
    %c0_i32_0 = arith.constant 0 : i32
    %c0_i32_1 = arith.constant 0 : i32
    %c0_i32_2 = arith.constant 0 : i32
    return %arg0, %c0_i32, %c0_i32_0, %c0_i32_1 : i32, i32, i32, i32
  }
  func.func @transform_2(%arg0: i32) -> (i32, i32, i32, i32) {
    %c0_i32 = arith.constant 0 : i32
    %c0_i32_0 = arith.constant 0 : i32
    %c0_i32_1 = arith.constant 0 : i32
    %c0_i32_2 = arith.constant 0 : i32
    return %arg0, %c0_i32, %c0_i32_0, %c0_i32_1 : i32, i32, i32, i32
  }
  func.func @transform_3(%arg0: i32) -> (i32, i32) {
    %c0_i32 = arith.constant 0 : i32
    %c0_i32_0 = arith.constant 0 : i32
    %c0_i32_1 = arith.constant 0 : i32
    return %c0_i32, %c0_i32_0 : i32, i32
  }
  func.func @transform_4(%arg0: i32) -> (i32, i32) {
    %c0_i32 = arith.constant 0 : i32
    %c0_i32_0 = arith.constant 0 : i32
    %c0_i32_1 = arith.constant 0 : i32
    return %c0_i32, %c0_i32_0 : i32, i32
  }
  func.func @transform_5(%arg0: i32) -> (i32, i32, i32) {
    %c0_i32 = arith.constant 0 : i32
    %c0_i32_0 = arith.constant 0 : i32
    %c0_i32_1 = arith.constant 0 : i32
    return %arg0, %c0_i32, %c0_i32_0 : i32, i32, i32
  }
  func.func @transform_6(%arg0: i32) -> (i32, i32, i32) {
    %c0_i32 = arith.constant 0 : i32
    %c0_i32_0 = arith.constant 0 : i32
    %c0_i32_1 = arith.constant 0 : i32
    return %arg0, %c0_i32, %c0_i32_0 : i32, i32, i32
  }
  func.func @transform_7(%arg0: i32) -> (i32, i32, i32) {
    %c0_i32 = arith.constant 0 : i32
    %c0_i32_0 = arith.constant 0 : i32
    %c0_i32_1 = arith.constant 0 : i32
    return %arg0, %c0_i32, %c0_i32_0 : i32, i32, i32
  }
}

</mosaic_0001>

<bundles_post_ra>
// kernel: multi_view_clip_forward.1
= control target key start
LH: loop header
LB: loop body
LE: loop exit
PB: predicated region body
PF: predicated region fallthrough
CT: control target
= control target key end

     0   :  { %13 = vsyncpa [#allocation3], 0  ;;  %s10506_s0 = inlined_call_operand.vmem [shape: f32[2,8,512], index: 0, kind: input, shape index: {}]   ;;  %s10507_s1 = inlined_call_operand.hbm [shape: bf16[2,5,512,512], index: 1, kind: input, shape index: {}]   ;;  %s10508_s2 = inlined_call_operand.vmem [shape: f32[2,5,3,512], index: 2, kind: input, shape index: {}]   ;;  %s10509_s3 = inlined_call_operand.hbm [shape: bf16[512,128], index: 3, kind: input, shape index: {}]   ;;  %s10510_s4 = inlined_call_operand.hbm [shape: f32[1,128], index: 4, kind: input, shape index: {}]   ;;  %s10511_s5 = inlined_call_operand.vmem [shape: f32[2,8,512], index: 5, kind: output, shape index: {0}]   ;;  %s10512_s6 = inlined_call_operand.vmem [shape: f32[2,8,512], index: 6, kind: output, shape index: {1}]   ;;  %s10513_s7 = inlined_call_operand.vmem [shape: f32[2,8,128], index: 7, kind: output, shape index: {2}]  }
   0x1   :  { %15 = vsyncpa [#allocation3 + $0x1], 0 }
   0x2   :  { %16 = vsyncpa [#allocation5], 0  ;;  %s9193_s24 = smov 0   ;;  %s9195_s25 = smov 0  }
   0x3   :  { %s9197_s26 = smov 0   ;;  %s9199_s27 = smov 0  }
   0x4 LB: > { %s9212_s28 = sadd.s32 4294967295, %s9144_s27   ;;  %p68_p0 = scmp.ne.s32.totalorder %s9136_s25, %s9132_s24  ;;  %s9144_s27 = sphi %s9199_s27, %s10529_s27   ;;  %s9140_s26 = sphi %s9197_s26, %s10528_s26   ;;  %s9136_s25 = sphi %s9195_s25, %s10527_s25   ;;  %s9132_s24 = sphi %s9193_s24, %s10526_s24  }
   0x5   : > { %p10514_p1 = scmp.eq.s32.totalorder %s9212_s28, 0  ;;  %p6626_p2 = scmp.ge.s32.totalorder %s9144_s27, 1 }
   0x6   : > { %p225_p3 = scmp.lt.s32.totalorder %s9144_s27, 3  ;;  %s9146_s8 = smov [#allocation4]  }
   0x7   : > { %p9220_p4 = por %p10514_p1, %p68_p0  ;;  %s237_s9 = sshll.u32 %s9146_s8, 4  ;;  %s238_s9 = int_to_ptr.vmem [resolvable:$true] %s237_s9 }
   0x8   : > { %p9224_p5 = pnand %p6626_p2, %p225_p3  ;;  %s9147_s11 = smov [#allocation6]  }
   0x9   : > { %s10517_s29 = scalar_select %p9220_p4, 1, 0 }
   0xa   : > { %s10518_s30 = scalar_select %p9224_p5, 1, 0 }
   0xb   : > { %p7942_p6 = pneg %p9224_p5  ;;  %s251_s12 = sshll.u32 %s9147_s11, 4  ;;  %s9236_s12 = int_to_ptr.vmem [resolvable:$true] %s251_s12 }
   0xc   : > { %s9020_s15 = scalar_lea.hbm %s10509_s3, 4096 }
   0xd   : > { %p9232_p7 = pnand %p7942_p6, %p10514_p1  ;;  %p9021_p8 = scmp.ne.s32.totalorder %s10509_s3, %s9020_s15 }
   0xe   : > { %p9027_p12 = scmp.lt.u32.totalorder %s9020_s15, %s10509_s3 }
   0xf   : > { %p9022_p9 = pneg %p9232_p7 }
  0x11   : > { %p9023_p10 = pnand %p9022_p9, %p9021_p8 }
  0x13   : > { %p9024_p11 = pneg %p9023_p10 }
  0x15   : > { %p9029_p13 = pnand %p9027_p12, %p9024_p11 }
  0x17   : > { %9032 = shalt.err (!%p9029_p13)
}
  0x18   : > { %s9033_s20 = scalar_lea.vmem %s238_s9, 4096  ;;  %p9041_p6 = scmp.lt.s32.totalorder %s238_s9, %s238_s9 }
  0x19   : > { %p9034_p0 = scmp.ne.s32.totalorder %s238_s9, %s9033_s20  ;;  %p9042_p1 = scmp.lt.s32.totalorder %s9033_s20, %s9033_s20 }
  0x1b   : > { %p9036_p2 = pnand %p9034_p0, %p9022_p9  ;;  %p9043_p4 = por %p9042_p1, %p9041_p6 }
  0x1d   : > { %p9037_p3 = pneg %p9036_p2 }
  0x1f   : > { %p9044_p5 = pnand %p9043_p4, %p9037_p3 }
  0x21   : > { %9047 = shalt.err (!%p9044_p5)
}
  0x22   : > { %s9148_s21 = smov 64   ;;  %s9149_s22 = smov 4  }
  0x23   : > { %7945 = dma.hbm_to_vmem [thread:$0]  (!%p9232_p7), %s10509_s3, 4096, %s238_s9, [#allocation5], %s9148_s21, %s9148_s21, %s9149_s22  }
  0x24   : > { %s9048_s13 = scalar_lea.hbm %s10510_s4, 16 }
  0x25   : > { %p9049_p8 = scmp.ne.s32.totalorder %s10510_s4, %s9048_s13  ;;  %p9055_p5 = scmp.lt.u32.totalorder %s9048_s13, %s10510_s4 }
  0x27   : > { %p9051_p1 = pnand %p9049_p8, %p9022_p9 }
  0x29   : > { %p9052_p4 = pneg %p9051_p1 }
  0x2b   : > { %p9057_p10 = pnand %p9055_p5, %p9052_p4 }
  0x2d   : > { %9060 = shalt.err (!%p9057_p10)
}
  0x2e   : > { %s9061_s9 = scalar_lea.vmem %s9236_s12, 16  ;;  %s9068_s18 = scalar_lea.vmem %s9236_s12, 32 }
  0x2f   : > { %p9062_p11 = scmp.ne.s32.totalorder %s9236_s12, %s9061_s9  ;;  %p9069_p0 = scmp.lt.s32.totalorder %s9236_s12, %s9236_s12 }
  0x30   : > { %p9070_p2 = scmp.lt.s32.totalorder %s9068_s18, %s9061_s9 }
  0x31   : > { %p9064_p12 = pnand %p9062_p11, %p9022_p9 }
  0x32   : > { %p9071_p3 = por %p9070_p2, %p9069_p0 }
  0x33   : > { %p9065_p13 = pneg %p9064_p12 }
  0x35   : > { %p9072_p6 = pnand %p9071_p3, %p9065_p13 }
  0x37   : > { %9075 = shalt.err (!%p9072_p6)
}
  0x38   : > { %7948 = dma.hbm_to_vmem [thread:$0]  (!%p9232_p7), %s10510_s4, 16, %s9236_s12, [#allocation5]  }
  0x39   : > { %s9287_s21 = sadd.s32 1, %s9144_s27   ;;  %s55_s22 = sadd.s32 1, %s9140_s26 }
  0x3a   : > { %s52_s10 = ssub.s32 %s9144_s27, %s9287_s21  ;;  %p62_p9 = scmp.ne.s32.totalorder %s9140_s26, %s9136_s25 }
  0x3b   : > { %p53_p8 = scmp.eq.s32.totalorder %s52_s10, 0  ;;  %p63_p1 = scmp.eq.s32.totalorder %s9144_s27, 0 }
  0x3c   : > { %p7955_p4 = scmp.lt.s32.totalorder %s9144_s27, 2  ;;  %s270_s23 = sand.u32 1, %s9140_s26  }
  0x3d   : > { %s9298_s24 = scalar_select %p53_p8, %s9140_s26, %s55_s22  }
  0x3e   : > { %p64_p5 = por %p63_p1, %p62_p9  ;;  %s7928_s8 = smul.u32 5120, %s270_s23 }
  0x3f   : > { %s7929_s11 = smul.u32 81920, %s9144_s27  ;;  %s9312_s27 = scalar_lea.sflag [#allocation3], %s270_s23 }
  0x40   : > { %p9301_p10 = pnand %p7955_p4, %p64_p5  ;;  %s274_s16 = scalar_lea.vmem [#allocation2], %s7928_s8 }
  0x41   : > { %s9308_s15 = scalar_lea.hbm %s10507_s1, %s7929_s11  ;;  %s281_s17 = sshll.u32 %s274_s16, 4  ;;  %s9310_s17 = int_to_ptr.vmem [resolvable:$true] %s281_s17 }
  0x42   : > { %s9076_s9 = scalar_lea.hbm %s9308_s15, 81920  ;;  %p9078_p11 = pneg %p9301_p10 }
  0x43   : > { %p9077_p7 = scmp.ne.s32.totalorder %s9308_s15, %s9076_s9  ;;  %s9081_s20 = scalar_lea.hbm %s10507_s1, 163840 }
  0x44   : > { %p9082_p0 = scmp.lt.u32.totalorder %s9308_s15, %s10507_s1  ;;  %p9083_p2 = scmp.lt.u32.totalorder %s9081_s20, %s9076_s9 }
  0x45   : > { %p9079_p12 = pnand %p9078_p11, %p9077_p7  ;;  %p9085_p6 = scmp.lt.u32.totalorder %s9076_s9, %s9308_s15 }
  0x46   : > { %p9084_p3 = por %p9083_p2, %p9082_p0 }
  0x47   : > { %p9080_p13 = pneg %p9079_p12 }
  0x48   : > { %p9086_p9 = por %p9085_p6, %p9084_p3 }
  0x4a   : > { %p9087_p8 = pnand %p9086_p9, %p9080_p13 }
  0x4c   : > { %9090 = shalt.err (!%p9087_p8)
}
  0x4d   : > { %s9091_s23 = scalar_lea.vmem %s9310_s17, 81920  ;;  %s9150_s8 = smov [#allocation2]  }
  0x4e   : > { %p9092_p1 = scmp.ne.s32.totalorder %s9310_s17, %s9091_s23  ;;  %s9096_s11 = sshll.u32 %s9150_s8, 4  ;;  %s9097_s11 = int_to_ptr.vmem [resolvable:$false] %s9096_s11 }
  0x4f   : > { %s9098_s12 = scalar_lea.vmem %s9097_s11, 163840  ;;  %p9099_p7 = scmp.lt.s32.totalorder %s9310_s17, %s9097_s11 }
  0x50   : > { %p9094_p4 = pnand %p9092_p1, %p9078_p11  ;;  %p9100_p12 = scmp.lt.s32.totalorder %s9098_s12, %s9091_s23 }
  0x52   : > { %p9095_p5 = pneg %p9094_p4  ;;  %p9101_p0 = por %p9100_p12, %p9099_p7 }
  0x54   : > { %p9102_p2 = pnand %p9101_p0, %p9095_p5 }
  0x56   : > { %9105 = shalt.err (!%p9102_p2)
}
  0x57   : > { %s9151_s14 = smov 256   ;;  %s9152_s16 = smov 16  }
  0x58   : > { %7952 = dma.hbm_to_vmem [thread:$0]  (!%p9301_p10), %s9308_s15, 81920, %s9310_s17, %s9312_s27, %s9151_s14, %s9151_s14, %s9152_s16  }
  0x59   : > { %p10521_p11 = scmp.ne.s32.totalorder %s10518_s30, 0 }
  0x5a   : > { %s303_s9 = sand.u32 (!%p10521_p11), 1, %s9136_s25   ;;  %p10522_p13 = scmp.ne.s32.totalorder (!%p10521_p11), %s10517_s29, 0 }
  0x5b   : > { %301 = sbr.rel (%p10521_p11) target bundleno = 1838 (0x72e), region = 40  ;;  %s304_s19 = scalar_lea.sflag (!%p10521_p11), [#allocation3], %s303_s9 }
  0x5c   : > { %s7930_s18 = smul.u32 (!%p10521_p11), 5120, %s303_s9 }
  0x5e   : > { %s9343_s20 = scalar_lea.vmem (!%p10521_p11), [#allocation2], %s7930_s18 }
  0x62   : > { %9123 = dma.done.wait (%p10522_p13), %s304_s19, 81920  }
  0x63   : > { %9125 = vsyncadd (%p10522_p13), %s304_s19, 4294885376  ;;  %p10523_p3 = scmp.eq.s32.totalorder %s9212_s28, 0 }
  0x65   : > { %9127 = dma.done.wait (%p10523_p3), [#allocation5], 4112   ;;  %p10524_p10 = pmov %p10523_p3 }
  0x66   : > { %v7996_v0 = vld [vmem:[#allocation4 + $0x40] sm:$0xff]   ;;  %v8000_v4 = vld [vmem:[#allocation4 + $0x48] sm:$0xff]   ;;  %v8004_v8 = vld [vmem:[#allocation4 + $0x50] sm:$0xff]   ;;  %p365_p6 = scmp.lt.s32.totalorder %s9212_s28, 1 }
  0x67   : > { %9129 = vsyncadd (%p10524_p10), [#allocation5], 4294963184  ;;  %v7997_v1 = vld [vmem:[#allocation4 + $0xc0] sm:$0xff]   ;;  %7840 = vmatprep.subr.bf16.mxu0 %v7996_v0  ;;  %v8001_v5 = vld [vmem:[#allocation4 + $0xc8] sm:$0xff]  }
  0x68   : > { %v7998_v2 = vld [vmem:[#allocation4] sm:$0xff]   ;;  %7862 = vmatprep.subr.bf16.mxu1 %v7997_v1  ;;  %v8002_v6 = vld [vmem:[#allocation4 + $0x8] sm:$0xff]   ;;  %v8005_v9 = vld [vmem:[#allocation4 + $0xd0] sm:$0xff]   ;;  %s10531_s28 = smov (!%p365_p6, %s9212_s28), 1 }
  0x69   : > { %v7999_v3 = vld [vmem:[#allocation4 + $0x80] sm:$0xff]   ;;  %7841 = vmatpush3.bf16.msra.mxu0 %v7998_v2  ;;  %v8003_v7 = vld [vmem:[#allocation4 + $0x88] sm:$0xff]   ;;  %v8006_v10 = vld [vmem:[#allocation4 + $0x10] sm:$0xff]   ;;  %s9358_s29 = sshll.u32 %s10531_s28, 5  ;;  %s6641_s17 = sshll.u32 %s10531_s28, 3 }
  0x6a   : > { %7863 = vmatpush3.bf16.msra.mxu1 %v7999_v3  ;;  %7842 = vmatprep.subr.bf16.mxu0 %v8000_v4  ;;  %v8007_v11 = vld [vmem:[#allocation4 + $0x90] sm:$0xff]   ;;  %v8008_v12 = vld [vmem:[#allocation4 + $0x58] sm:$0xff]   ;;  %v8012_v16 = vld [vmem:[#allocation4 + $0x60] sm:$0xff]   ;;  %s369_s15 = scalar_lea.vmem %s10506_s0, %s9358_s29  ;;  %s388_s10 = scalar_lea.vmem %s10513_s7, %s6641_s17 }
  0x6b   : > { %7864 = vmatprep.subr.bf16.mxu1 %v8001_v5  ;;  %v8009_v13 = vld [vmem:[#allocation4 + $0xd8] sm:$0xff]   ;;  %v8013_v17 = vld [vmem:[#allocation4 + $0xe0] sm:$0xff]   ;;  %v8016_v20 = vld [vmem:[#allocation4 + $0x68] sm:$0xff]   ;;  %s7931_s23 = smul.u32 80, %s10531_s28  ;;  %s10168_s16 = scalar_lea.vmem %s10511_s5, %s9358_s29 }
  0x6c   : > { %v8010_v14 = vld [vmem:[#allocation4 + $0x18] sm:$0xff]   ;;  %v8014_v18 = vld [vmem:[#allocation4 + $0x20] sm:$0xff]   ;;  %v8017_v21 = vld [vmem:[#allocation4 + $0xe8] sm:$0xff]   ;;  %s384_s19 = scalar_lea.vmem %s10512_s6, %s9358_s29 }
  0x6d   : > { %7843 = vmatpush3.bf16.msra.mxu0 %v8002_v6  ;;  %v8011_v15 = vld [vmem:[#allocation4 + $0x98] sm:$0xff]   ;;  %v8015_v19 = vld [vmem:[#allocation4 + $0xa0] sm:$0xff]   ;;  %v8018_v22 = vld [vmem:[#allocation4 + $0x28] sm:$0xff]   ;;  %s9643_s28 = scalar_lea.vmem %s10508_s2, %s7931_s23 }
  0x6e   : > { %7865 = vmatpush3.bf16.msra.mxu1 %v8003_v7  ;;  %7844 = vmatprep.subr.bf16.mxu0 %v8004_v8  ;;  %v8019_v23 = vld [vmem:[#allocation4 + $0xa8] sm:$0xff]   ;;  %v8020_v24 = vld [vmem:[#allocation4 + $0x70] sm:$0xff]   ;;  %v8024_v28 = vld [vmem:[#allocation4 + $0x78] sm:$0xff]  }
  0x6f   : > { %7866 = vmatprep.subr.bf16.mxu1 %v8005_v9  ;;  %v8021_v25 = vld [vmem:[#allocation4 + $0xf0] sm:$0xff]   ;;  %v8025_v29 = vld [vmem:[#allocation4 + $0xf8] sm:$0xff]   ;;  %v391_v32 = vld [vmem:[%s369_s15 + $0x8] sm:$0xff] }
  0x70   : > { %v8022_v26 = vld [vmem:[#allocation4 + $0x30] sm:$0xff]   ;;  %v8026_v30 = vld [vmem:[#allocation4 + $0x38] sm:$0xff]   ;;  %v390_v33 = vld [vmem:[%s369_s15] sm:$0xff]  ;;  %v395_v35 = vpack.c.bf16 %v391_v32, %v391_v32 }
  0x71   : > { %7845 = vmatpush3.bf16.msra.mxu0 %v8006_v10  ;;  %v8023_v27 = vld [vmem:[#allocation4 + $0xb0] sm:$0xff]   ;;  %v8027_v31 = vld [vmem:[#allocation4 + $0xb8] sm:$0xff]   ;;  %v9364_v36 = vpack.c.bf16 %v390_v33, %v390_v33 }
  0x72   : > { %7867 = vmatpush3.bf16.msra.mxu1 %v8007_v11  ;;  %7846 = vmatprep.subr.bf16.mxu0 %v8008_v12  ;;  %v393_v34 = vld [vmem:[%s369_s15 + $0x18] sm:$0xff]  ;;  %v8028_v38 = vld [vmem:[%s9343_s20] ss:$16 sps:$4 sm:$0xff]   ;;  %v8030_v39 = vld [vmem:[%s9343_s20 + $0x4] ss:$16 sps:$4 sm:$0xff]  }
  0x73   : > { %7868 = vmatprep.subr.bf16.mxu1 %v8009_v13  ;;  %v9366_v37 = vpack.c.bf16 %v393_v34, %v393_v34  ;;  %693 = vmatprep.mubr.bf16.mxu0 %v395_v35  ;;  %v8031_v40 = vld [vmem:[%s9343_s20 + $0x8] ss:$16 sps:$4 sm:$0xff]   ;;  %v8033_v41 = vld [vmem:[%s9343_s20 + $0xc] ss:$16 sps:$4 sm:$0xff]   ;;  %v392_v42 = vld [vmem:[%s369_s15 + $0x10] sm:$0xff] }
  0x74   : > { %v9374_v43 = vpack.c.bf16 %v392_v42, %v392_v42  ;;  %v8034_v44 = vld [vmem:[%s9343_s20 + $0x20] ss:$16 sps:$4 sm:$0xff]   ;;  %v8036_v45 = vld [vmem:[%s9343_s20 + $0x24] ss:$16 sps:$4 sm:$0xff]   ;;  %v8039_v46 = vld [vmem:[%s9343_s20 + $0x2c] ss:$16 sps:$4 sm:$0xff]  }
  0x75   : > { %7847 = vmatpush3.bf16.msra.mxu0 %v8010_v14  ;;  %733 = vmatprep.mubr.bf16.mxu1 %v9366_v37  ;;  %v8037_v47 = vld [vmem:[%s9343_s20 + $0x28] ss:$16 sps:$4 sm:$0xff]   ;;  %v8042_v48 = vld [vmem:[%s9343_s20 + $0x44] ss:$16 sps:$4 sm:$0xff]   ;;  %v8040_v49 = vld [vmem:[%s9343_s20 + $0x40] ss:$16 sps:$4 sm:$0xff]  }
  0x76   : > { %7869 = vmatpush3.bf16.msra.mxu1 %v8011_v15  ;;  %7848 = vmatprep.subr.bf16.mxu0 %v8012_v16  ;;  %v8045_v50 = vld [vmem:[%s9343_s20 + $0x4c] ss:$16 sps:$4 sm:$0xff]   ;;  %v8048_v51 = vld [vmem:[%s9343_s20 + $0x64] ss:$16 sps:$4 sm:$0xff]   ;;  %v8043_v52 = vld [vmem:[%s9343_s20 + $0x48] ss:$16 sps:$4 sm:$0xff]  }
  0x77   : > { %7870 = vmatprep.subr.bf16.mxu1 %v8013_v17  ;;  %v8051_v53 = vld [vmem:[%s9343_s20 + $0x6c] ss:$16 sps:$4 sm:$0xff]   ;;  %v8046_v54 = vld [vmem:[%s9343_s20 + $0x60] ss:$16 sps:$4 sm:$0xff]   ;;  %v8054_v55 = vld [vmem:[%s9343_s20 + $0x84] ss:$16 sps:$4 sm:$0xff]  }
  0x78   : > { %v8049_v56 = vld [vmem:[%s9343_s20 + $0x68] ss:$16 sps:$4 sm:$0xff]   ;;  %v8057_v57 = vld [vmem:[%s9343_s20 + $0x8c] ss:$16 sps:$4 sm:$0xff]   ;;  %v8052_v58 = vld [vmem:[%s9343_s20 + $0x80] ss:$16 sps:$4 sm:$0xff]  }
  0x79   : > { %7849 = vmatpush3.bf16.msra.mxu0 %v8014_v18  ;;  %v8060_v59 = vld [vmem:[%s9343_s20 + $0xa4] ss:$16 sps:$4 sm:$0xff]   ;;  %v8055_v60 = vld [vmem:[%s9343_s20 + $0x88] ss:$16 sps:$4 sm:$0xff]   ;;  %v8063_v61 = vld [vmem:[%s9343_s20 + $0xac] ss:$16 sps:$4 sm:$0xff]  }
  0x7a   : > { %7871 = vmatpush3.bf16.msra.mxu1 %v8015_v19  ;;  %7850 = vmatprep.subr.bf16.mxu0 %v8016_v20  ;;  %v8058_v62 = vld [vmem:[%s9343_s20 + $0xa0] ss:$16 sps:$4 sm:$0xff]   ;;  %v8066_v63 = vld [vmem:[%s9343_s20 + $0xc4] ss:$16 sps:$4 sm:$0xff]   ;;  %v8061_v0 = vld [vmem:[%s9343_s20 + $0xa8] ss:$16 sps:$4 sm:$0xff]  }
  0x7b   : > { %7872 = vmatprep.subr.bf16.mxu1 %v8017_v21  ;;  %v8069_v1 = vld [vmem:[%s9343_s20 + $0xcc] ss:$16 sps:$4 sm:$0xff]   ;;  %v8064_v2 = vld [vmem:[%s9343_s20 + $0xc0] ss:$16 sps:$4 sm:$0xff]   ;;  %v8072_v3 = vld [vmem:[%s9343_s20 + $0xe4] ss:$16 sps:$4 sm:$0xff]  }
  0x7c   : > { %v8067_v4 = vld [vmem:[%s9343_s20 + $0xc8] ss:$16 sps:$4 sm:$0xff]   ;;  %v8075_v5 = vld [vmem:[%s9343_s20 + $0xec] ss:$16 sps:$4 sm:$0xff]   ;;  %v8070_v6 = vld [vmem:[%s9343_s20 + $0xe0] ss:$16 sps:$4 sm:$0xff]  }
  0x7d   : > { %7851 = vmatpush3.bf16.msra.mxu0 %v8018_v22  ;;  %v8078_v7 = vld [vmem:[%s9343_s20 + $0x104] ss:$16 sps:$4 sm:$0xff]   ;;  %v8073_v8 = vld [vmem:[%s9343_s20 + $0xe8] ss:$16 sps:$4 sm:$0xff]   ;;  %v8081_v9 = vld [vmem:[%s9343_s20 + $0x10c] ss:$16 sps:$4 sm:$0xff]  }
  0x7e   : > { %7873 = vmatpush3.bf16.msra.mxu1 %v8019_v23  ;;  %7852 = vmatprep.subr.bf16.mxu0 %v8020_v24  ;;  %v8076_v10 = vld [vmem:[%s9343_s20 + $0x100] ss:$16 sps:$4 sm:$0xff]   ;;  %v8084_v11 = vld [vmem:[%s9343_s20 + $0x124] ss:$16 sps:$4 sm:$0xff]   ;;  %v8079_v12 = vld [vmem:[%s9343_s20 + $0x108] ss:$16 sps:$4 sm:$0xff]  }
  0x7f   : > { %7874 = vmatprep.subr.bf16.mxu1 %v8021_v25  ;;  %v8087_v13 = vld [vmem:[%s9343_s20 + $0x12c] ss:$16 sps:$4 sm:$0xff]   ;;  %v8082_v14 = vld [vmem:[%s9343_s20 + $0x120] ss:$16 sps:$4 sm:$0xff]   ;;  %v8090_v15 = vld [vmem:[%s9343_s20 + $0x144] ss:$16 sps:$4 sm:$0xff]  }
  0x80   : > { %v8085_v16 = vld [vmem:[%s9343_s20 + $0x128] ss:$16 sps:$4 sm:$0xff]   ;;  %v8093_v17 = vld [vmem:[%s9343_s20 + $0x14c] ss:$16 sps:$4 sm:$0xff]   ;;  %v8088_v18 = vld [vmem:[%s9343_s20 + $0x140] ss:$16 sps:$4 sm:$0xff]  }
  0x81   : > { %7853 = vmatpush3.bf16.msra.mxu0 %v8022_v26  ;;  %v8096_v19 = vld [vmem:[%s9343_s20 + $0x164] ss:$16 sps:$4 sm:$0xff]   ;;  %v8091_v20 = vld [vmem:[%s9343_s20 + $0x148] ss:$16 sps:$4 sm:$0xff]   ;;  %v8099_v21 = vld [vmem:[%s9343_s20 + $0x16c] ss:$16 sps:$4 sm:$0xff]  }
  0x82   : > { %7875 = vmatpush3.bf16.msra.mxu1 %v8023_v27  ;;  %7854 = vmatprep.subr.bf16.mxu0 %v8024_v28  ;;  %v8094_v22 = vld [vmem:[%s9343_s20 + $0x160] ss:$16 sps:$4 sm:$0xff]   ;;  %v8102_v23 = vld [vmem:[%s9343_s20 + $0x184] ss:$16 sps:$4 sm:$0xff]   ;;  %v8097_v24 = vld [vmem:[%s9343_s20 + $0x168] ss:$16 sps:$4 sm:$0xff]  }
  0x83   : > { %7876 = vmatprep.subr.bf16.mxu1 %v8025_v29  ;;  %v8105_v25 = vld [vmem:[%s9343_s20 + $0x18c] ss:$16 sps:$4 sm:$0xff]   ;;  %v8100_v26 = vld [vmem:[%s9343_s20 + $0x180] ss:$16 sps:$4 sm:$0xff]   ;;  %v8108_v27 = vld [vmem:[%s9343_s20 + $0x1a4] ss:$16 sps:$4 sm:$0xff]  }
  0x84   : > { %v8103_v28 = vld [vmem:[%s9343_s20 + $0x188] ss:$16 sps:$4 sm:$0xff]   ;;  %v8111_v29 = vld [vmem:[%s9343_s20 + $0x1ac] ss:$16 sps:$4 sm:$0xff]   ;;  %v8112_v34 = vld [vmem:[%s9343_s20 + $0x1c0] ss:$16 sps:$4 sm:$0xff]  }
  0x85   : > { %7855 = vmatpush3.bf16.msra.mxu0 %v8026_v30  ;;  %v8106_v30 = vld [vmem:[%s9343_s20 + $0x1a0] ss:$16 sps:$4 sm:$0xff]   ;;  %v8109_v32 = vld [vmem:[%s9343_s20 + $0x1a8] ss:$16 sps:$4 sm:$0xff]   ;;  %v8117_v33 = vld [vmem:[%s9343_s20 + $0x1cc] ss:$16 sps:$4 sm:$0xff]  }
  0x86   : > { %7877 = vmatpush3.bf16.msra.mxu1 %v8027_v31  ;;  %1512 = vmatprep.subr.bf16.mxu0 %v8030_v39  ;;  %v8114_v31 = vld [vmem:[%s9343_s20 + $0x1c4] ss:$16 sps:$4 sm:$0xff]   ;;  %v8123_v39 = vld [vmem:[%s9343_s20 + $0x1ec] ss:$16 sps:$4 sm:$0xff]   ;;  %v8121_v42 = vld [vmem:[%s9343_s20 + $0x1e8] ss:$16 sps:$4 sm:$0xff]  }
  0x87   : > { %1594 = vmatprep.subr.bf16.mxu1 %v8033_v41  ;;  %v8126_v41 = vld [vmem:[%s9343_s20 + $0x204] ss:$16 sps:$4 sm:$0xff]  }
  0x88   : > { %694 = vmatmul.mubr.bf16.vlgmr.msra.gmra.mrb[0].mxu0 %v9364_v36 }
  0x89   : > { %1513 = vmatpush1.bf16.msra.mxu0 %v8028_v38  ;;  %734 = vmatmul.mubr.bf16.vlgmr.msra.gmra.mrb[0].mxu1 %v9374_v43  ;;  %v8115_v38 = vld [vmem:[%s9343_s20 + $0x1c8] ss:$16 sps:$4 sm:$0xff]  }
  0x8a   : > { %1544 = vmatprep.mubr.bf16.mxu0 %v395_v35  ;;  %1595 = vmatpush1.bf16.msra.mxu1 %v8031_v40  ;;  %v8118_v40 = vld [vmem:[%s9343_s20 + $0x1e0] ss:$16 sps:$4 sm:$0xff]  }
  0x8b   : > { %1514 = vmatprep.subr.bf16.mxu0 %v8036_v45  ;;  %1596 = vmatprep.subr.bf16.mxu1 %v8039_v46  ;;  %v8124_v45 = vld [vmem:[%s9343_s20 + $0x200] ss:$16 sps:$4 sm:$0xff]   ;;  %v8132_v46 = vld [vmem:[%s9343_s20 + $0x224] ss:$16 sps:$4 sm:$0xff]  }
  0x8c   : > { %1626 = vmatprep.mubr.bf16.mxu1 %v395_v35  ;;  %v8120_v35 = vld [vmem:[%s9343_s20 + $0x1e4] ss:$16 sps:$4 sm:$0xff]  }
  0x8d   : > { %1515 = vmatpush1.bf16.msra.mxu0 %v8034_v44  ;;  %v8129_v44 = vld [vmem:[%s9343_s20 + $0x20c] ss:$16 sps:$4 sm:$0xff]  }
  0x8e   : > { %1516 = vmatprep.subr.bf16.mxu0 %v8042_v48  ;;  %1597 = vmatpush1.bf16.msra.mxu1 %v8037_v47  ;;  %v8127_v47 = vld [vmem:[%s9343_s20 + $0x208] ss:$16 sps:$4 sm:$0xff]   ;;  %v8135_v48 = vld [vmem:[%s9343_s20 + $0x22c] ss:$16 sps:$4 sm:$0xff]  }
  0x8f   : > { %1598 = vmatprep.subr.bf16.mxu1 %v8045_v50  ;;  %v8138_v50 = vld [vmem:[%s9343_s20 + $0x244] ss:$16 sps:$4 sm:$0xff]  }
  0x91   : > { %1517 = vmatpush1.bf16.msra.mxu0 %v8040_v49  ;;  %v8130_v49 = vld [vmem:[%s9343_s20 + $0x220] ss:$16 sps:$4 sm:$0xff]  }
  0x92   : > { %1518 = vmatprep.subr.bf16.mxu0 %v8048_v51  ;;  %1599 = vmatpush1.bf16.msra.mxu1 %v8043_v52  ;;  %v8133_v51 = vld [vmem:[%s9343_s20 + $0x228] ss:$16 sps:$4 sm:$0xff]   ;;  %v8141_v52 = vld [vmem:[%s9343_s20 + $0x24c] ss:$16 sps:$4 sm:$0xff]  }
  0x93   : > { %1600 = vmatprep.subr.bf16.mxu1 %v8051_v53  ;;  %v8136_v53 = vld [vmem:[%s9343_s20 + $0x240] ss:$16 sps:$4 sm:$0xff]  }
  0x95   : > { %1519 = vmatpush1.bf16.msra.mxu0 %v8046_v54  ;;  %v8144_v54 = vld [vmem:[%s9343_s20 + $0x264] ss:$16 sps:$4 sm:$0xff]  }
  0x96   : > { %1520 = vmatprep.subr.bf16.mxu0 %v8054_v55  ;;  %1601 = vmatpush1.bf16.msra.mxu1 %v8049_v56  ;;  %v8147_v55 = vld [vmem:[%s9343_s20 + $0x26c] ss:$16 sps:$4 sm:$0xff]   ;;  %v8142_v56 = vld [vmem:[%s9343_s20 + $0x260] ss:$16 sps:$4 sm:$0xff]  }
  0x97   : > { %1602 = vmatprep.subr.bf16.mxu1 %v8057_v57  ;;  %v8145_v57 = vld [vmem:[%s9343_s20 + $0x268] ss:$16 sps:$4 sm:$0xff]  }
  0x99   : > { %1521 = vmatpush1.bf16.msra.mxu0 %v8052_v58  ;;  %v8153_v58 = vld [vmem:[%s9343_s20 + $0x28c] ss:$16 sps:$4 sm:$0xff]  }
  0x9a   : > { %1522 = vmatprep.subr.bf16.mxu0 %v8060_v59  ;;  %1603 = vmatpush1.bf16.msra.mxu1 %v8055_v60  ;;  %v8148_v59 = vld [vmem:[%s9343_s20 + $0x280] ss:$16 sps:$4 sm:$0xff]   ;;  %v8156_v60 = vld [vmem:[%s9343_s20 + $0x2a4] ss:$16 sps:$4 sm:$0xff]  }
  0x9b   : > { %1604 = vmatprep.subr.bf16.mxu1 %v8063_v61  ;;  %v8151_v61 = vld [vmem:[%s9343_s20 + $0x288] ss:$16 sps:$4 sm:$0xff]  }
  0x9d   : > { %1523 = vmatpush1.bf16.msra.mxu0 %v8058_v62  ;;  %v8159_v62 = vld [vmem:[%s9343_s20 + $0x2ac] ss:$16 sps:$4 sm:$0xff]  }
  0x9e   : > { %1524 = vmatprep.subr.bf16.mxu0 %v8066_v63  ;;  %1605 = vmatpush1.bf16.msra.mxu1 %v8061_v0  ;;  %v8154_v63 = vld [vmem:[%s9343_s20 + $0x2a0] ss:$16 sps:$4 sm:$0xff]   ;;  %v8157_v0 = vld [vmem:[%s9343_s20 + $0x2a8] ss:$16 sps:$4 sm:$0xff]  }
  0x9f   : > { %1606 = vmatprep.subr.bf16.mxu1 %v8069_v1  ;;  %v8162_v1 = vld [vmem:[%s9343_s20 + $0x2c4] ss:$16 sps:$4 sm:$0xff]  }
  0xa1   : > { %1525 = vmatpush1.bf16.msra.mxu0 %v8064_v2  ;;  %v8160_v2 = vld [vmem:[%s9343_s20 + $0x2c0] ss:$16 sps:$4 sm:$0xff]  }
  0xa2   : > { %1526 = vmatprep.subr.bf16.mxu0 %v8072_v3  ;;  %1607 = vmatpush1.bf16.msra.mxu1 %v8067_v4  ;;  %v8165_v3 = vld [vmem:[%s9343_s20 + $0x2cc] ss:$16 sps:$4 sm:$0xff]   ;;  %v8168_v4 = vld [vmem:[%s9343_s20 + $0x2e4] ss:$16 sps:$4 sm:$0xff]  }
  0xa3   : > { %1608 = vmatprep.subr.bf16.mxu1 %v8075_v5  ;;  %v8163_v5 = vld [vmem:[%s9343_s20 + $0x2c8] ss:$16 sps:$4 sm:$0xff]  }
  0xa5   : > { %1527 = vmatpush1.bf16.msra.mxu0 %v8070_v6  ;;  %v8171_v6 = vld [vmem:[%s9343_s20 + $0x2ec] ss:$16 sps:$4 sm:$0xff]  }
  0xa6   : > { %1528 = vmatprep.subr.bf16.mxu0 %v8078_v7  ;;  %1609 = vmatpush1.bf16.msra.mxu1 %v8073_v8  ;;  %v8166_v7 = vld [vmem:[%s9343_s20 + $0x2e0] ss:$16 sps:$4 sm:$0xff]   ;;  %v8174_v8 = vld [vmem:[%s9343_s20 + $0x304] ss:$16 sps:$4 sm:$0xff]  }
  0xa7   : > { %1610 = vmatprep.subr.bf16.mxu1 %v8081_v9  ;;  %v8169_v9 = vld [vmem:[%s9343_s20 + $0x2e8] ss:$16 sps:$4 sm:$0xff]  }
  0xa9   : > { %1529 = vmatpush1.bf16.msra.mxu0 %v8076_v10  ;;  %v8172_v10 = vld [vmem:[%s9343_s20 + $0x300] ss:$16 sps:$4 sm:$0xff]  }
  0xaa   : > { %1530 = vmatprep.subr.bf16.mxu0 %v8084_v11  ;;  %1611 = vmatpush1.bf16.msra.mxu1 %v8079_v12  ;;  %v8177_v11 = vld [vmem:[%s9343_s20 + $0x30c] ss:$16 sps:$4 sm:$0xff]   ;;  %v8180_v12 = vld [vmem:[%s9343_s20 + $0x324] ss:$16 sps:$4 sm:$0xff]  }
  0xab   : > { %1612 = vmatprep.subr.bf16.mxu1 %v8087_v13  ;;  %v8175_v13 = vld [vmem:[%s9343_s20 + $0x308] ss:$16 sps:$4 sm:$0xff]  }
  0xad   : > { %1531 = vmatpush1.bf16.msra.mxu0 %v8082_v14  ;;  %v8183_v14 = vld [vmem:[%s9343_s20 + $0x32c] ss:$16 sps:$4 sm:$0xff]  }
  0xae   : > { %1532 = vmatprep.subr.bf16.mxu0 %v8090_v15  ;;  %1613 = vmatpush1.bf16.msra.mxu1 %v8085_v16  ;;  %v8178_v15 = vld [vmem:[%s9343_s20 + $0x320] ss:$16 sps:$4 sm:$0xff]   ;;  %v8186_v16 = vld [vmem:[%s9343_s20 + $0x344] ss:$16 sps:$4 sm:$0xff]  }
  0xaf   : > { %1614 = vmatprep.subr.bf16.mxu1 %v8093_v17  ;;  %v8181_v17 = vld [vmem:[%s9343_s20 + $0x328] ss:$16 sps:$4 sm:$0xff]  }
  0xb1   : > { %1533 = vmatpush1.bf16.msra.mxu0 %v8088_v18  ;;  %v8189_v18 = vld [vmem:[%s9343_s20 + $0x34c] ss:$16 sps:$4 sm:$0xff]  }
  0xb2   : > { %1534 = vmatprep.subr.bf16.mxu0 %v8096_v19  ;;  %1615 = vmatpush1.bf16.msra.mxu1 %v8091_v20  ;;  %v8184_v19 = vld [vmem:[%s9343_s20 + $0x340] ss:$16 sps:$4 sm:$0xff]   ;;  %v8192_v20 = vld [vmem:[%s9343_s20 + $0x364] ss:$16 sps:$4 sm:$0xff]  }
  0xb3   : > { %1616 = vmatprep.subr.bf16.mxu1 %v8099_v21  ;;  %v8187_v21 = vld [vmem:[%s9343_s20 + $0x348] ss:$16 sps:$4 sm:$0xff]  }
  0xb5   : > { %1535 = vmatpush1.bf16.msra.mxu0 %v8094_v22  ;;  %v8195_v22 = vld [vmem:[%s9343_s20 + $0x36c] ss:$16 sps:$4 sm:$0xff]  }
  0xb6   : > { %1536 = vmatprep.subr.bf16.mxu0 %v8102_v23  ;;  %1617 = vmatpush1.bf16.msra.mxu1 %v8097_v24  ;;  %v8190_v23 = vld [vmem:[%s9343_s20 + $0x360] ss:$16 sps:$4 sm:$0xff]   ;;  %v8198_v24 = vld [vmem:[%s9343_s20 + $0x384] ss:$16 sps:$4 sm:$0xff]  }
  0xb7   : > { %1618 = vmatprep.subr.bf16.mxu1 %v8105_v25  ;;  %v8193_v25 = vld [vmem:[%s9343_s20 + $0x368] ss:$16 sps:$4 sm:$0xff]  }
  0xb9   : > { %1537 = vmatpush1.bf16.msra.mxu0 %v8100_v26  ;;  %v8201_v26 = vld [vmem:[%s9343_s20 + $0x38c] ss:$16 sps:$4 sm:$0xff]  }
  0xba   : > { %1538 = vmatprep.subr.bf16.mxu0 %v8108_v27  ;;  %1619 = vmatpush1.bf16.msra.mxu1 %v8103_v28  ;;  %v8196_v27 = vld [vmem:[%s9343_s20 + $0x380] ss:$16 sps:$4 sm:$0xff]   ;;  %v8204_v28 = vld [vmem:[%s9343_s20 + $0x3a4] ss:$16 sps:$4 sm:$0xff]  }
  0xbb   : > { %1620 = vmatprep.subr.bf16.mxu1 %v8111_v29  ;;  %v8199_v29 = vld [vmem:[%s9343_s20 + $0x388] ss:$16 sps:$4 sm:$0xff]  }
  0xbd   : > { %1539 = vmatpush1.bf16.msra.mxu0 %v8106_v30  ;;  %v8207_v30 = vld [vmem:[%s9343_s20 + $0x3ac] ss:$16 sps:$4 sm:$0xff]  }
  0xbe   : > { %1540 = vmatprep.subr.bf16.mxu0 %v8114_v31  ;;  %1621 = vmatpush1.bf16.msra.mxu1 %v8109_v32  ;;  %v8202_v31 = vld [vmem:[%s9343_s20 + $0x3a0] ss:$16 sps:$4 sm:$0xff]   ;;  %v8210_v32 = vld [vmem:[%s9343_s20 + $0x3c4] ss:$16 sps:$4 sm:$0xff]  }
  0xbf   : > { %1622 = vmatprep.subr.bf16.mxu1 %v8117_v33  ;;  %v8205_v33 = vld [vmem:[%s9343_s20 + $0x3a8] ss:$16 sps:$4 sm:$0xff]  }
  0xc1   : > { %1541 = vmatpush1.bf16.msra.mxu0 %v8112_v34  ;;  %v8213_v34 = vld [vmem:[%s9343_s20 + $0x3cc] ss:$16 sps:$4 sm:$0xff]  }
  0xc2   : > { %1542 = vmatprep.subr.bf16.mxu0 %v8120_v35  ;;  %1623 = vmatpush1.bf16.msra.mxu1 %v8115_v38  ;;  %v8208_v35 = vld [vmem:[%s9343_s20 + $0x3c0] ss:$16 sps:$4 sm:$0xff]   ;;  %v8216_v38 = vld [vmem:[%s9343_s20 + $0x3e4] ss:$16 sps:$4 sm:$0xff]  }
  0xc3   : > { %1624 = vmatprep.subr.bf16.mxu1 %v8123_v39  ;;  %v8211_v39 = vld [vmem:[%s9343_s20 + $0x3c8] ss:$16 sps:$4 sm:$0xff]  }
  0xc5   : > { %1543 = vmatpush1.bf16.msra.mxu0 %v8118_v40  ;;  %v8219_v40 = vld [vmem:[%s9343_s20 + $0x3ec] ss:$16 sps:$4 sm:$0xff]  }
  0xc6   : > { %1553 = vmatprep.subr.bf16.mxu0 %v8126_v41  ;;  %1625 = vmatpush1.bf16.msra.mxu1 %v8121_v42  ;;  %v8214_v41 = vld [vmem:[%s9343_s20 + $0x3e0] ss:$16 sps:$4 sm:$0xff]   ;;  %v8222_v42 = vld [vmem:[%s9343_s20 + $0x404] ss:$16 sps:$4 sm:$0xff]  }
  0xc7   : > { %1635 = vmatprep.subr.bf16.mxu1 %v8129_v44  ;;  %v8217_v44 = vld [vmem:[%s9343_s20 + $0x3e8] ss:$16 sps:$4 sm:$0xff]  }
  0xc8   : > { %1545 = vmatmul.mubr.bf16.vlgmr.msra.gmra.mrb[4].mxu0 %v9364_v36 }
  0xc9   : > { %1554 = vmatpush1.bf16.msra.mxu0 %v8124_v45  ;;  %1585 = vmatprep.mubr.bf16.mxu0 %v9366_v37  ;;  %v8225_v45 = vld [vmem:[%s9343_s20 + $0x40c] ss:$16 sps:$4 sm:$0xff]  }
  0xca   : > { %1627 = vmatmul.mubr.bf16.vlgmr.msra.gmra.mrb[4].mxu1 %v9364_v36  ;;  %1555 = vmatprep.subr.bf16.mxu0 %v8132_v46  ;;  %v8139_v36 = vld [vmem:[%s9343_s20 + $0x248] ss:$16 sps:$4 sm:$0xff]   ;;  %v8220_v46 = vld [vmem:[%s9343_s20 + $0x400] ss:$16 sps:$4 sm:$0xff]  }
  0xcb   : > { %1636 = vmatpush1.bf16.msra.mxu1 %v8127_v47  ;;  %1667 = vmatprep.mubr.bf16.mxu1 %v9366_v37  ;;  %v8150_v37 = vld [vmem:[%s9343_s20 + $0x284] ss:$16 sps:$4 sm:$0xff]   ;;  %v8223_v47 = vld [vmem:[%s9343_s20 + $0x408] ss:$16 sps:$4 sm:$0xff]  }
  0xcc   : > { %1637 = vmatprep.subr.bf16.mxu1 %v8135_v48  ;;  %v6642_v48 = vld [vmem:[#allocation6] ss:$0 sm:$0xff] }
  0xcd   : > { %1556 = vmatpush1.bf16.msra.mxu0 %v8130_v49 }
  0xce   : > { %1557 = vmatprep.subr.bf16.mxu0 %v8138_v50 }
  0xcf   : > { %1638 = vmatpush1.bf16.msra.mxu1 %v8133_v51 }
  0xd0   : > { %1639 = vmatprep.subr.bf16.mxu1 %v8141_v52 }
  0xd1   : > { %1558 = vmatpush1.bf16.msra.mxu0 %v8136_v53 }
  0xd2   : > { %1559 = vmatprep.subr.bf16.mxu0 %v8144_v54 }
  0xd3   : > { %1640 = vmatpush1.bf16.msra.mxu1 %v8139_v36 }
  0xd4   : > { %1641 = vmatprep.subr.bf16.mxu1 %v8147_v55 }
  0xd5   : > { %1560 = vmatpush1.bf16.msra.mxu0 %v8142_v56 }
  0xd6   : > { %1561 = vmatprep.subr.bf16.mxu0 %v8150_v37 }
  0xd7   : > { %1642 = vmatpush1.bf16.msra.mxu1 %v8145_v57 }
  0xd8   : > { %1643 = vmatprep.subr.bf16.mxu1 %v8153_v58  ;;  %v8228_v58 = vld [vmem:[%s9343_s20 + $0x424] ss:$16 sps:$4 sm:$0xff]  }
  0xd9   : > { %1562 = vmatpush1.bf16.msra.mxu0 %v8148_v59  ;;  %v8231_v59 = vld [vmem:[%s9343_s20 + $0x42c] ss:$16 sps:$4 sm:$0xff]  }
  0xda   : > { %1563 = vmatprep.subr.bf16.mxu0 %v8156_v60  ;;  %v8226_v60 = vld [vmem:[%s9343_s20 + $0x420] ss:$16 sps:$4 sm:$0xff]  }
  0xdb   : > { %1644 = vmatpush1.bf16.msra.mxu1 %v8151_v61  ;;  %v8229_v61 = vld [vmem:[%s9343_s20 + $0x428] ss:$16 sps:$4 sm:$0xff]  }
  0xdc   : > { %1645 = vmatprep.subr.bf16.mxu1 %v8159_v62  ;;  %v8234_v62 = vld [vmem:[%s9343_s20 + $0x444] ss:$16 sps:$4 sm:$0xff]  }
  0xdd   : > { %1564 = vmatpush1.bf16.msra.mxu0 %v8154_v63  ;;  %v8237_v63 = vld [vmem:[%s9343_s20 + $0x44c] ss:$16 sps:$4 sm:$0xff]  }
  0xde   : > { %1565 = vmatprep.subr.bf16.mxu0 %v8162_v1  ;;  %v8235_v1 = vld [vmem:[%s9343_s20 + $0x448] ss:$16 sps:$4 sm:$0xff]  }
  0xdf   : > { %1646 = vmatpush1.bf16.msra.mxu1 %v8157_v0  ;;  %v8232_v0 = vld [vmem:[%s9343_s20 + $0x440] ss:$16 sps:$4 sm:$0xff]  }
  0xe0   : > { %1647 = vmatprep.subr.bf16.mxu1 %v8165_v3  ;;  %v8243_v3 = vld [vmem:[%s9343_s20 + $0x46c] ss:$16 sps:$4 sm:$0xff]  }
  0xe1   : > { %1566 = vmatpush1.bf16.msra.mxu0 %v8160_v2  ;;  %v8240_v2 = vld [vmem:[%s9343_s20 + $0x464] ss:$16 sps:$4 sm:$0xff]  }
  0xe2   : > { %1567 = vmatprep.subr.bf16.mxu0 %v8168_v4  ;;  %v8238_v4 = vld [vmem:[%s9343_s20 + $0x460] ss:$16 sps:$4 sm:$0xff]  }
  0xe3   : > { %1648 = vmatpush1.bf16.msra.mxu1 %v8163_v5  ;;  %v8241_v5 = vld [vmem:[%s9343_s20 + $0x468] ss:$16 sps:$4 sm:$0xff]  }
  0xe4   : > { %1649 = vmatprep.subr.bf16.mxu1 %v8171_v6  ;;  %v8246_v6 = vld [vmem:[%s9343_s20 + $0x484] ss:$16 sps:$4 sm:$0xff]  }
  0xe5   : > { %1568 = vmatpush1.bf16.msra.mxu0 %v8166_v7  ;;  %v8249_v7 = vld [vmem:[%s9343_s20 + $0x48c] ss:$16 sps:$4 sm:$0xff]  }
  0xe6   : > { %1569 = vmatprep.subr.bf16.mxu0 %v8174_v8  ;;  %v8244_v8 = vld [vmem:[%s9343_s20 + $0x480] ss:$16 sps:$4 sm:$0xff]  }
  0xe7   : > { %1650 = vmatpush1.bf16.msra.mxu1 %v8169_v9  ;;  %v8247_v9 = vld [vmem:[%s9343_s20 + $0x488] ss:$16 sps:$4 sm:$0xff]  }
  0xe8   : > { %1651 = vmatprep.subr.bf16.mxu1 %v8177_v11  ;;  %v8255_v11 = vld [vmem:[%s9343_s20 + $0x4ac] ss:$16 sps:$4 sm:$0xff]  }
  0xe9   : > { %1570 = vmatpush1.bf16.msra.mxu0 %v8172_v10  ;;  %v8252_v10 = vld [vmem:[%s9343_s20 + $0x4a4] ss:$16 sps:$4 sm:$0xff]  }
  0xea   : > { %1571 = vmatprep.subr.bf16.mxu0 %v8180_v12  ;;  %v8250_v12 = vld [vmem:[%s9343_s20 + $0x4a0] ss:$16 sps:$4 sm:$0xff]  }
  0xeb   : > { %1652 = vmatpush1.bf16.msra.mxu1 %v8175_v13  ;;  %v8253_v13 = vld [vmem:[%s9343_s20 + $0x4a8] ss:$16 sps:$4 sm:$0xff]  }
  0xec   : > { %1653 = vmatprep.subr.bf16.mxu1 %v8183_v14  ;;  %v8258_v14 = vld [vmem:[%s9343_s20 + $0x4c4] ss:$16 sps:$4 sm:$0xff]  }
  0xed   : > { %1572 = vmatpush1.bf16.msra.mxu0 %v8178_v15  ;;  %v8261_v15 = vld [vmem:[%s9343_s20 + $0x4cc] ss:$16 sps:$4 sm:$0xff]  }
  0xee   : > { %1573 = vmatprep.subr.bf16.mxu0 %v8186_v16  ;;  %v8256_v16 = vld [vmem:[%s9343_s20 + $0x4c0] ss:$16 sps:$4 sm:$0xff]  }
  0xef   : > { %1654 = vmatpush1.bf16.msra.mxu1 %v8181_v17  ;;  %v8259_v17 = vld [vmem:[%s9343_s20 + $0x4c8] ss:$16 sps:$4 sm:$0xff]  }
  0xf0   : > { %1655 = vmatprep.subr.bf16.mxu1 %v8189_v18  ;;  %v8264_v18 = vld [vmem:[%s9343_s20 + $0x4e4] ss:$16 sps:$4 sm:$0xff]  }
  0xf1   : > { %1574 = vmatpush1.bf16.msra.mxu0 %v8184_v19  ;;  %v8267_v19 = vld [vmem:[%s9343_s20 + $0x4ec] ss:$16 sps:$4 sm:$0xff]  }
  0xf2   : > { %1575 = vmatprep.subr.bf16.mxu0 %v8192_v20  ;;  %v8262_v20 = vld [vmem:[%s9343_s20 + $0x4e0] ss:$16 sps:$4 sm:$0xff]  }
  0xf3   : > { %1656 = vmatpush1.bf16.msra.mxu1 %v8187_v21  ;;  %v8265_v21 = vld [vmem:[%s9343_s20 + $0x4e8] ss:$16 sps:$4 sm:$0xff]  }
  0xf4   : > { %1657 = vmatprep.subr.bf16.mxu1 %v8195_v22  ;;  %v8270_v22 = vld [vmem:[%s9343_s20 + $0x504] ss:$16 sps:$4 sm:$0xff]  }
  0xf5   : > { %1576 = vmatpush1.bf16.msra.mxu0 %v8190_v23  ;;  %v8273_v23 = vld [vmem:[%s9343_s20 + $0x50c] ss:$16 sps:$4 sm:$0xff]  }
  0xf6   : > { %1577 = vmatprep.subr.bf16.mxu0 %v8198_v24  ;;  %v8268_v24 = vld [vmem:[%s9343_s20 + $0x500] ss:$16 sps:$4 sm:$0xff]  }
  0xf7   : > { %1658 = vmatpush1.bf16.msra.mxu1 %v8193_v25  ;;  %v8271_v25 = vld [vmem:[%s9343_s20 + $0x508] ss:$16 sps:$4 sm:$0xff]  }
  0xf8   : > { %1659 = vmatprep.subr.bf16.mxu1 %v8201_v26  ;;  %v8276_v26 = vld [vmem:[%s9343_s20 + $0x524] ss:$16 sps:$4 sm:$0xff]  }
  0xf9   : > { %1578 = vmatpush1.bf16.msra.mxu0 %v8196_v27  ;;  %v8279_v27 = vld [vmem:[%s9343_s20 + $0x52c] ss:$16 sps:$4 sm:$0xff]  }
  0xfa   : > { %1579 = vmatprep.subr.bf16.mxu0 %v8204_v28  ;;  %v8274_v28 = vld [vmem:[%s9343_s20 + $0x520] ss:$16 sps:$4 sm:$0xff]  }
  0xfb   : > { %1660 = vmatpush1.bf16.msra.mxu1 %v8199_v29  ;;  %v8277_v29 = vld [vmem:[%s9343_s20 + $0x528] ss:$16 sps:$4 sm:$0xff]  }
  0xfc   : > { %1661 = vmatprep.subr.bf16.mxu1 %v8207_v30  ;;  %v8282_v30 = vld [vmem:[%s9343_s20 + $0x544] ss:$16 sps:$4 sm:$0xff]  }
  0xfd   : > { %1580 = vmatpush1.bf16.msra.mxu0 %v8202_v31  ;;  %v8285_v31 = vld [vmem:[%s9343_s20 + $0x54c] ss:$16 sps:$4 sm:$0xff]  }
  0xfe   : > { %1581 = vmatprep.subr.bf16.mxu0 %v8210_v32  ;;  %v8280_v32 = vld [vmem:[%s9343_s20 + $0x540] ss:$16 sps:$4 sm:$0xff]  }
  0xff   : > { %1662 = vmatpush1.bf16.msra.mxu1 %v8205_v33  ;;  %v8283_v33 = vld [vmem:[%s9343_s20 + $0x548] ss:$16 sps:$4 sm:$0xff]  }
 0x100   : > { %1663 = vmatprep.subr.bf16.mxu1 %v8213_v34  ;;  %v8288_v34 = vld [vmem:[%s9343_s20 + $0x564] ss:$16 sps:$4 sm:$0xff]  }
 0x101   : > { %1582 = vmatpush1.bf16.msra.mxu0 %v8208_v35  ;;  %v8291_v35 = vld [vmem:[%s9343_s20 + $0x56c] ss:$16 sps:$4 sm:$0xff]  }
 0x102   : > { %1583 = vmatprep.subr.bf16.mxu0 %v8216_v38  ;;  %v8286_v38 = vld [vmem:[%s9343_s20 + $0x560] ss:$16 sps:$4 sm:$0xff]  }
 0x103   : > { %1664 = vmatpush1.bf16.msra.mxu1 %v8211_v39  ;;  %v8289_v39 = vld [vmem:[%s9343_s20 + $0x568] ss:$16 sps:$4 sm:$0xff]  }
 0x104   : > { %1665 = vmatprep.subr.bf16.mxu1 %v8219_v40  ;;  %v8294_v40 = vld [vmem:[%s9343_s20 + $0x584] ss:$16 sps:$4 sm:$0xff]  }
 0x105   : > { %1584 = vmatpush1.bf16.msra.mxu0 %v8214_v41  ;;  %v8297_v41 = vld [vmem:[%s9343_s20 + $0x58c] ss:$16 sps:$4 sm:$0xff]  }
 0x106   : > { %2699 = vmatprep.subr.bf16.mxu0 %v8222_v42  ;;  %v8292_v42 = vld [vmem:[%s9343_s20 + $0x580] ss:$16 sps:$4 sm:$0xff]  }
 0x107   : > { %1666 = vmatpush1.bf16.msra.mxu1 %v8217_v44  ;;  %v8295_v44 = vld [vmem:[%s9343_s20 + $0x588] ss:$16 sps:$4 sm:$0xff]  }
 0x108   : > { %1586 = vmatmul.mubr.bf16.vlgmr.msra.gmra.mrb[4].mxu0 %v9374_v43  ;;  %2781 = vmatprep.subr.bf16.mxu1 %v8225_v45  ;;  %v8300_v45 = vld [vmem:[%s9343_s20 + $0x5a4] ss:$16 sps:$4 sm:$0xff]  }
 0x109   : > { %2700 = vmatpush1.bf16.msra.mxu0 %v8220_v46  ;;  %v8303_v46 = vld [vmem:[%s9343_s20 + $0x5ac] ss:$16 sps:$4 sm:$0xff]  }
 0x10a   : > { %1668 = vmatmul.mubr.bf16.vlgmr.msra.gmra.mrb[4].mxu1 %v9374_v43  ;;  %2701 = vmatprep.subr.bf16.mxu0 %v8228_v58 }
 0x10b   : > { %2782 = vmatpush1.bf16.msra.mxu1 %v8223_v47  ;;  %v8298_v47 = vld [vmem:[%s9343_s20 + $0x5a0] ss:$16 sps:$4 sm:$0xff]  }
 0x10c   : > { %2783 = vmatprep.subr.bf16.mxu1 %v8231_v59 }
 0x10d   : > { %2702 = vmatpush1.bf16.msra.mxu0 %v8226_v60 }
 0x10e   : > { %2703 = vmatprep.subr.bf16.mxu0 %v8234_v62 }
 0x10f   : > { %2784 = vmatpush1.bf16.msra.mxu1 %v8229_v61 }
 0x110   : > { %2785 = vmatprep.subr.bf16.mxu1 %v8237_v63 }
 0x111   : > { %2704 = vmatpush1.bf16.msra.mxu0 %v8232_v0 }
 0x112   : > { %2705 = vmatprep.subr.bf16.mxu0 %v8240_v2 }
 0x113   : > { %2786 = vmatpush1.bf16.msra.mxu1 %v8235_v1 }
 0x114   : > { %2787 = vmatprep.subr.bf16.mxu1 %v8243_v3 }
 0x115   : > { %2706 = vmatpush1.bf16.msra.mxu0 %v8238_v4 }
 0x116   : > { %2707 = vmatprep.subr.bf16.mxu0 %v8246_v6 }
 0x117   : > { %2788 = vmatpush1.bf16.msra.mxu1 %v8241_v5 }
 0x118   : > { %2789 = vmatprep.subr.bf16.mxu1 %v8249_v7 }
 0x119   : > { %2708 = vmatpush1.bf16.msra.mxu0 %v8244_v8 }
 0x11a   : > { %2709 = vmatprep.subr.bf16.mxu0 %v8252_v10 }
 0x11b   : > { %2790 = vmatpush1.bf16.msra.mxu1 %v8247_v9 }
 0x11c   : > { %2791 = vmatprep.subr.bf16.mxu1 %v8255_v11 }
 0x11d   : > { %2710 = vmatpush1.bf16.msra.mxu0 %v8250_v12 }
 0x11e   : > { %2711 = vmatprep.subr.bf16.mxu0 %v8258_v14 }
 0x11f   : > { %2792 = vmatpush1.bf16.msra.mxu1 %v8253_v13 }
 0x120   : > { %2793 = vmatprep.subr.bf16.mxu1 %v8261_v15 }
 0x121   : > { %2712 = vmatpush1.bf16.msra.mxu0 %v8256_v16 }
 0x122   : > { %2713 = vmatprep.subr.bf16.mxu0 %v8264_v18 }
 0x123   : > { %2794 = vmatpush1.bf16.msra.mxu1 %v8259_v17 }
 0x124   : > { %2795 = vmatprep.subr.bf16.mxu1 %v8267_v19 }
 0x125   : > { %2714 = vmatpush1.bf16.msra.mxu0 %v8262_v20 }
 0x126   : > { %2715 = vmatprep.subr.bf16.mxu0 %v8270_v22 }
 0x127   : > { %2796 = vmatpush1.bf16.msra.mxu1 %v8265_v21 }
 0x128   : > { %2797 = vmatprep.subr.bf16.mxu1 %v8273_v23 }
 0x129   : > { %2716 = vmatpush1.bf16.msra.mxu0 %v8268_v24 }
 0x12a   : > { %2717 = vmatprep.subr.bf16.mxu0 %v8276_v26 }
 0x12b   : > { %2798 = vmatpush1.bf16.msra.mxu1 %v8271_v25 }
 0x12c   : > { %2799 = vmatprep.subr.bf16.mxu1 %v8279_v27 }
 0x12d   : > { %2718 = vmatpush1.bf16.msra.mxu0 %v8274_v28 }
 0x12e   : > { %2719 = vmatprep.subr.bf16.mxu0 %v8282_v30 }
 0x12f   : > { %2800 = vmatpush1.bf16.msra.mxu1 %v8277_v29 }
 0x130   : > { %2801 = vmatprep.subr.bf16.mxu1 %v8285_v31 }
 0x131   : > { %2720 = vmatpush1.bf16.msra.mxu0 %v8280_v32 }
 0x132   : > { %2721 = vmatprep.subr.bf16.mxu0 %v8288_v34 }
 0x133   : > { %2802 = vmatpush1.bf16.msra.mxu1 %v8283_v33 }
 0x134   : > { %2803 = vmatprep.subr.bf16.mxu1 %v8291_v35 }
 0x135   : > { %2722 = vmatpush1.bf16.msra.mxu0 %v8286_v38 }
 0x136   : > { %2723 = vmatprep.subr.bf16.mxu0 %v8294_v40 }
 0x137   : > { %2804 = vmatpush1.bf16.msra.mxu1 %v8289_v39 }
 0x138   : > { %2805 = vmatprep.subr.bf16.mxu1 %v8297_v41 }
 0x139   : > { %2724 = vmatpush1.bf16.msra.mxu0 %v8292_v42 }
 0x13a   : > { %2725 = vmatprep.subr.bf16.mxu0 %v8300_v45 }
 0x13b   : > { %2806 = vmatpush1.bf16.msra.mxu1 %v8295_v44 }
 0x13c   : > { %2807 = vmatprep.subr.bf16.mxu1 %v8303_v46 }
 0x13d   : > { %2726 = vmatpush1.bf16.msra.mxu0 %v8298_v47 }
 0x15b   : > { %v7856_v49 = vpop.f32.mrb[0].mxu0 }
 0x15c   : > { %v7857_v50 = vpop.f32.mrb[1].mxu0  ;;  %v7878_v53 = vpop.f32.mrb[0].mxu1 }
 0x15d   : > { %v7858_v51 = vadd.f32 %v7857_v50, %v7856_v49  ;;  %v7859_v52 = vpop.f32.mrb[2].mxu0  ;;  %v7879_v36 = vpop.f32.mrb[1].mxu1  ;;  %v8304_v49 = vld [vmem:[%s9343_s20 + $0x5c0] ss:$16 sps:$4 sm:$0xff]   ;;  %v8306_v50 = vld [vmem:[%s9343_s20 + $0x5c4] ss:$16 sps:$4 sm:$0xff]  }
 0x15e   : > { %v7860_v54 = vpop.f32.mrb[3].mxu0  ;;  %v7880_v56 = vadd.f32 %v7879_v36, %v7878_v53  ;;  %v7881_v43 = vpop.f32.mrb[2].mxu1  ;;  %v8309_v52 = vld [vmem:[%s9343_s20 + $0x5cc] ss:$16 sps:$4 sm:$0xff]   ;;  %v8312_v53 = vld [vmem:[%s9343_s20 + $0x5e4] ss:$16 sps:$4 sm:$0xff]   ;;  %2727 = vmatprep.subr.bf16.mxu0 %v8306_v50 }
 0x15f   : > { %v696_v55 = vadd.f32 %v7858_v51, %v6642_v48  ;;  %v7882_v37 = vpop.f32.mrb[3].mxu1  ;;  %v8301_v48 = vld [vmem:[%s9343_s20 + $0x5a8] ss:$16 sps:$4 sm:$0xff]   ;;  %v8310_v54 = vld [vmem:[%s9343_s20 + $0x5e0] ss:$16 sps:$4 sm:$0xff]   ;;  %2728 = vmatpush1.bf16.msra.mxu0 %v8304_v49 }
 0x160   : > { %2808 = vmatpush1.bf16.msra.mxu1 %v8301_v48  ;;  %v8307_v51 = vld [vmem:[%s9343_s20 + $0x5c8] ss:$16 sps:$4 sm:$0xff]   ;;  %v8315_v36 = vld [vmem:[%s9343_s20 + $0x5ec] ss:$16 sps:$4 sm:$0xff]   ;;  %2729 = vmatprep.subr.bf16.mxu0 %v8312_v53  ;;  %v1676_v37 = vlaneseq }
 0x161   : > { %v736_v57 = vadd.f32 %v7880_v56, %v696_v55  ;;  %2809 = vmatprep.subr.bf16.mxu1 %v8309_v52  ;;  %v8313_v55 = vld [vmem:[%s9343_s20 + $0x5e8] ss:$16 sps:$4 sm:$0xff]   ;;  %v8318_v56 = vld [vmem:[%s9343_s20 + $0x604] ss:$16 sps:$4 sm:$0xff]   ;;  %v8321_v43 = vld [vmem:[%s9343_s20 + $0x60c] ss:$16 sps:$4 sm:$0xff]  }
 0x163   : > { %741 = vst [vmem:[%s388_s10] sm:$0xff] %v736_v57  ;;  %2730 = vmatpush1.bf16.msra.mxu0 %v8310_v54  ;;  %v9577_v57 = vshrl.u32 %v1676_v37, 7 }
 0x164   : > { %2810 = vmatpush1.bf16.msra.mxu1 %v8307_v51  ;;  %2740 = vmatprep.subr.bf16.mxu0 %v8318_v56 }
 0x165   : > { %2811 = vmatprep.subr.bf16.mxu1 %v8315_v36  ;;  %vm1678_vm0 = vcmp.lt.s32.totalorder %v9577_v57, 4 }
 0x168   : > { %2812 = vmatpush1.bf16.msra.mxu1 %v8313_v55 }
 0x169   : > { %2822 = vmatprep.subr.bf16.mxu1 %v8321_v43 }
 0x1db   : > { %v1587_v58 = vpop.f32.mrb[4].mxu0 }
 0x1dc   : > { %v1681_v59 = vsel %vm1678_vm0, %v1587_v58, 0.0  ;;  %v1713_v60 = vsel %vm1678_vm0, 0.0, %v1587_v58  ;;  %v1589_v61 = vpop.f32.mrb[5].mxu0 }
 0x1dd   : > { %v1685_v62 = vrot.slane %v1681_v59, 4  ;;  %v1717_v63 = vrot.slane %v1713_v60, 4  ;;  %v9584_v0 = vpop.f32.mrb[4].mxu1  ;;  %v1682_v1 = vsel %vm1678_vm0, %v1589_v61, 0.0  ;;  %v1714_v2 = vsel %vm1678_vm0, 0.0, %v1589_v61  ;;  %v1591_v3 = vpop.f32.mrb[6].mxu0 }
 0x1de   : > { %v1691_v4 = vrot.slane %v1682_v1, 4  ;;  %v1723_v5 = vrot.slane %v1714_v2, 4  ;;  %v9590_v6 = vpop.f32.mrb[5].mxu1  ;;  %v1592_v7 = vpop.f32.mrb[7].mxu0  ;;  %v1683_v38 = vsel %vm1678_vm0, %v9584_v0, 0.0  ;;  %v1715_v39 = vsel %vm1678_vm0, 0.0, %v9584_v0 }
 0x1df   : > { %v1686_v8 = vadd.f32 %v1685_v62, %v1681_v59  ;;  %v1718_v9 = vadd.f32 %v1717_v63, %v1713_v60  ;;  %v1673_v10 = vpop.f32.mrb[6].mxu1  ;;  %v1684_v13 = vsel %vm1678_vm0, %v9590_v6, 0.0  ;;  %v1716_v14 = vsel %vm1678_vm0, 0.0, %v9590_v6 }
 0x1e0   : > { %v1692_v11 = vadd.f32 %v1691_v4, %v1682_v1  ;;  %v1724_v12 = vadd.f32 %v1723_v5, %v1714_v2  ;;  %v1674_v15 = vpop.f32.mrb[7].mxu1  ;;  %v1703_v20 = vrot.slane %v1684_v13, 4  ;;  %v1735_v21 = vrot.slane %v1716_v14, 4 }
 0x1e1   : > { %v1687_v16 = vrot.slane %v1686_v8, 2  ;;  %v1719_v17 = vrot.slane %v1718_v9, 2  ;;  %v1697_v52 = vrot.slane %v1683_v38, 4  ;;  %v1729_v53 = vrot.slane %v1715_v39, 4 }
 0x1e2   : > { %v1693_v18 = vrot.slane %v1692_v11, 2  ;;  %v1725_v19 = vrot.slane %v1724_v12, 2  ;;  %v1704_v26 = vadd.f32 %v1703_v20, %v1684_v13  ;;  %v1736_v27 = vadd.f32 %v1735_v21, %v1716_v14 }
 0x1e3   : > { %v1688_v22 = vadd.f32 %v1687_v16, %v1686_v8  ;;  %v1720_v23 = vadd.f32 %v1719_v17, %v1718_v9  ;;  %v1698_v62 = vadd.f32 %v1697_v52, %v1683_v38  ;;  %v1730_v2 = vadd.f32 %v1729_v53, %v1715_v39 }
 0x1e4   : > { %v1694_v24 = vadd.f32 %v1693_v18, %v1692_v11  ;;  %v1726_v25 = vadd.f32 %v1725_v19, %v1724_v12  ;;  %v1705_v32 = vrot.slane %v1704_v26, 2  ;;  %v1737_v33 = vrot.slane %v1736_v27, 2 }
 0x1e5   : > { %v1689_v28 = vrot.slane %v1688_v22, 1  ;;  %v1721_v29 = vrot.slane %v1720_v23, 1  ;;  %v1699_v17 = vrot.slane %v1698_v62, 2  ;;  %v1731_v18 = vrot.slane %v1730_v2, 2 }
 0x1e6   : > { %v1695_v30 = vrot.slane %v1694_v24, 1  ;;  %v1727_v31 = vrot.slane %v1726_v25, 1  ;;  %v1706_v42 = vadd.f32 %v1705_v32, %v1704_v26  ;;  %v1738_v44 = vadd.f32 %v1737_v33, %v1736_v27 }
 0x1e7   : > { %v1690_v34 = vadd.f32 %v1689_v28, %v1688_v22  ;;  %v1722_v35 = vadd.f32 %v1721_v29, %v1720_v23  ;;  %v1700_v29 = vadd.f32 %v1699_v17, %v1698_v62 }
 0x1e8   : > { %v1696_v40 = vadd.f32 %v1695_v30, %v1694_v24  ;;  %v1728_v41 = vadd.f32 %v1727_v31, %v1726_v25  ;;  %v1707_v49 = vrot.slane %v1706_v42, 1  ;;  %v1739_v50 = vrot.slane %v1738_v44, 1 }
 0x1e9   : > { %v1709_v45 = vmul.f32 0.25, %v1690_v34  ;;  %v1741_v46 = vmul.f32 0.25, %v1722_v35  ;;  %v1732_v30 = vadd.f32 %v1731_v18, %v1730_v2 }
 0x1ea   : > { %v1710_v47 = vmul.f32 0.25, %v1696_v40  ;;  %v1742_v48 = vmul.f32 0.25, %v1728_v41  ;;  %v1708_v55 = vadd.f32 %v1707_v49, %v1706_v42  ;;  %v1740_v56 = vadd.f32 %v1739_v50, %v1738_v44 }
 0x1eb   : > { %v1745_v51 = vsel %vm1678_vm0, %v1709_v45, %v1741_v46  ;;  %v1701_v46 = vrot.slane %v1700_v29, 1 }
 0x1ec   : > { %v9606_v54 = vsub.f32 %v1587_v58, %v1745_v51  ;;  %v1746_v36 = vsel %vm1678_vm0, %v1710_v47, %v1742_v48  ;;  %v1712_v59 = vmul.f32 0.25, %v1708_v55  ;;  %v1744_v60 = vmul.f32 0.25, %v1740_v56 }
 0x1ed   : > { %v9610_v43 = vsub.f32 %v1589_v61, %v1746_v36  ;;  %v1733_v47 = vrot.slane %v1732_v30, 1 }
 0x1ee   : > { %v1753_v37 = vmul.f32 %v9606_v54, %v9606_v54  ;;  %v1748_v61 = vsel %vm1678_vm0, %v1712_v59, %v1744_v60 }
 0x1ef   : > { %v1754_v63 = vmul.f32 %v9610_v43, %v9610_v43  ;;  %v9627_v14 = vsub.f32 %v9590_v6, %v1748_v61  ;;  %v1734_v59 = vadd.f32 %v1733_v47, %v1732_v30 }
 0x1f0   : > { %v1757_v58 = vsel %vm1678_vm0, %v1753_v37, 0.0  ;;  %v1789_v1 = vsel %vm1678_vm0, 0.0, %v1753_v37  ;;  %v1702_v37 = vadd.f32 %v1701_v46, %v1700_v29 }
 0x1f1   : > { %v1761_v3 = vrot.slane %v1757_v58, 4  ;;  %v1793_v4 = vrot.slane %v1789_v1, 4  ;;  %v1758_v5 = vsel %vm1678_vm0, %v1754_v63, 0.0  ;;  %v1790_v7 = vsel %vm1678_vm0, 0.0, %v1754_v63 }
 0x1f2   : > { %v1767_v8 = vrot.slane %v1758_v5, 4  ;;  %v1799_v9 = vrot.slane %v1790_v7, 4  ;;  %v1756_v21 = vmul.f32 %v9627_v14, %v9627_v14 }
 0x1f3   : > { %v1762_v10 = vadd.f32 %v1761_v3, %v1757_v58  ;;  %v1794_v11 = vadd.f32 %v1793_v4, %v1789_v1  ;;  %v9646_v58 = vsub.s32 1, %v9577_v57  ;;  %v870_v1 = vld [vmem:[%s9643_s28] sm:$0x77]  ;;  %v9650_v3 = vsub.s32 5, %v9577_v57 }
 0x1f4   : > { %v1768_v12 = vadd.f32 %v1767_v8, %v1758_v5  ;;  %v1800_v13 = vadd.f32 %v1799_v9, %v1790_v7  ;;  %v1760_v26 = vsel %vm1678_vm0, %v1756_v21, 0.0  ;;  %v1792_v6 = vsel %vm1678_vm0, 0.0, %v1756_v21 }
 0x1f5   : > { %v1763_v15 = vrot.slane %v1762_v10, 2  ;;  %v1795_v16 = vrot.slane %v1794_v11, 2  ;;  %v1779_v33 = vrot.slane %v1760_v26, 4  ;;  %v1811_v34 = vrot.slane %v1792_v6, 4 }
 0x1f6   : > { %v1769_v19 = vrot.slane %v1768_v12, 2  ;;  %v1801_v20 = vrot.slane %v1800_v13, 2  ;;  %v1711_v4 = vmul.f32 0.25, %v1702_v37  ;;  %v1743_v5 = vmul.f32 0.25, %v1734_v59  ;;  %v8333_v37 = vld [vmem:[%s9343_s20 + $0x64c] ss:$16 sps:$4 sm:$0xff]  }
 0x1f7   : > { %v1764_v22 = vadd.f32 %v1763_v15, %v1762_v10  ;;  %v1796_v23 = vadd.f32 %v1795_v16, %v1794_v11  ;;  %v1780_v41 = vadd.f32 %v1779_v33, %v1760_v26  ;;  %v1812_v42 = vadd.f32 %v1811_v34, %v1792_v6 }
 0x1f8   : > { %v1770_v24 = vadd.f32 %v1769_v19, %v1768_v12  ;;  %v1802_v25 = vadd.f32 %v1801_v20, %v1800_v13  ;;  %v9653_v7 = vsub.s32 2, %v9577_v57  ;;  %v9656_v10 = vsub.s32 6, %v9577_v57 }
 0x1f9   : > { %v1765_v27 = vrot.slane %v1764_v22, 1  ;;  %v1797_v28 = vrot.slane %v1796_v23, 1  ;;  %v1781_v50 = vrot.slane %v1780_v41, 2  ;;  %v1813_v51 = vrot.slane %v1812_v42, 2 }
 0x1fa   : > { %v1771_v31 = vrot.slane %v1770_v24, 1  ;;  %v1803_v32 = vrot.slane %v1802_v25, 1  ;;  %v1842_v11 = vrot.slane %v870_v1, %v9646_v58  ;;  %v1846_v13 = vrot.slane %v870_v1, %v9650_v3 }
 0x1fb   : > { %v1766_v35 = vadd.f32 %v1765_v27, %v1764_v22  ;;  %v1798_v38 = vadd.f32 %v1797_v28, %v1796_v23  ;;  %v1782_v55 = vadd.f32 %v1781_v50, %v1780_v41  ;;  %v1814_v56 = vadd.f32 %v1813_v51, %v1812_v42  ;;  %v8316_v42 = vld [vmem:[%s9343_s20 + $0x600] ss:$16 sps:$4 sm:$0xff]   ;;  %v8327_v50 = vld [vmem:[%s9343_s20 + $0x62c] ss:$16 sps:$4 sm:$0xff]  }
 0x1fc   : > { %v1772_v39 = vadd.f32 %v1771_v31, %v1770_v24  ;;  %v1804_v40 = vadd.f32 %v1803_v32, %v1802_v25  ;;  %v1747_v15 = vsel %vm1678_vm0, %v1711_v4, %v1743_v5  ;;  %v1882_v17 = vrot.slane %v870_v1, %v9653_v7  ;;  %v9673_v25 = vld [vmem:[%s9643_s28 + $0x8] sm:$0x77]  ;;  %v8334_v5 = vld [vmem:[%s9343_s20 + $0x660] ss:$16 sps:$4 sm:$0xff]  }
 0x1fd   : > { %v1785_v44 = vmul.f32 0.25, %v1766_v35  ;;  %v1817_v45 = vmul.f32 0.25, %v1798_v38  ;;  %v1783_v62 = vrot.slane %v1782_v55, 1  ;;  %v1815_v63 = vrot.slane %v1814_v56, 1  ;;  %v8339_v4 = vld [vmem:[%s9343_s20 + $0x66c] ss:$16 sps:$4 sm:$0xff]  }
 0x1fe   : > { %v1786_v48 = vmul.f32 0.25, %v1772_v39  ;;  %v1818_v49 = vmul.f32 0.25, %v1804_v40  ;;  %v1886_v18 = vrot.slane %v870_v1, %v9656_v10  ;;  %v1862_v19 = vrot.slane %v1842_v11, %v9646_v58 }
 0x1ff   : > { %v1821_v52 = vsel %vm1678_vm0, %v1785_v44, %v1817_v45  ;;  %v1784_v2 = vadd.f32 %v1783_v62, %v1782_v55  ;;  %v1816_v61 = vadd.f32 %v1815_v63, %v1814_v56  ;;  %v9668_v21 = vsub.f32 %v9584_v0, %v1747_v15  ;;  %v8319_v44 = vld [vmem:[%s9343_s20 + $0x608] ss:$16 sps:$4 sm:$0xff]   ;;  %v8330_v56 = vld [vmem:[%s9343_s20 + $0x644] ss:$16 sps:$4 sm:$0xff]   ;;  %v8328_v62 = vld [vmem:[%s9343_s20 + $0x640] ss:$16 sps:$4 sm:$0xff]  }
 0x200   : > { %v1825_v53 = vadd.f32 1e-05, %v1821_v52  ;;  %v1822_v36 = vsel %vm1678_vm0, %v1786_v48, %v1818_v49  ;;  %v1866_v22 = vrot.slane %v1846_v13, %v9646_v58  ;;  %v1902_v26 = vrot.slane %v1882_v17, %v9653_v7  ;;  %v8324_v49 = vld [vmem:[%s9343_s20 + $0x624] ss:$16 sps:$4 sm:$0xff]   ;;  %v8322_v52 = vld [vmem:[%s9343_s20 + $0x620] ss:$16 sps:$4 sm:$0xff]  }
 0x201   : > { %v1826_v60 = vadd.f32 1e-05, %v1822_v36  ;;  %v1788_v8 = vmul.f32 0.25, %v1784_v2  ;;  %v1820_v9 = vmul.f32 0.25, %v1816_v61  ;;  %v1906_v27 = vrot.slane %v1886_v18, %v9653_v7  ;;  %v8331_v63 = vld [vmem:[%s9343_s20 + $0x648] ss:$16 sps:$4 sm:$0xff]  }
 0x202   : > { %8988 = vrsqrt.f32 %v1825_v53  ;;  %v1755_v0 = vmul.f32 %v9668_v21, %v9668_v21  ;;  %v1854_v30 = vrot.slane %v9673_v25, %v9650_v3  ;;  %v1894_v32 = vrot.slane %v9673_v25, %v9656_v10  ;;  %v8325_v53 = vld [vmem:[%s9343_s20 + $0x628] ss:$16 sps:$4 sm:$0xff]   ;;  %v8336_v61 = vld [vmem:[%s9343_s20 + $0x664] ss:$16 sps:$4 sm:$0xff]   ;;  %v8345_v13 = vld [vmem:[%s9343_s20 + $0x68c] ss:$16 sps:$4 sm:$0xff]  }
 0x203   : > { %8990 = vrsqrt.f32 %v1826_v60  ;;  %v1824_v12 = vsel %vm1678_vm0, %v1788_v8, %v1820_v9  ;;  %v8337_v8 = vld [vmem:[%s9343_s20 + $0x668] ss:$16 sps:$4 sm:$0xff]   ;;  %v8340_v15 = vld [vmem:[%s9343_s20 + $0x680] ss:$16 sps:$4 sm:$0xff]  }
 0x204   : > { %v1828_v16 = vadd.f32 1e-05, %v1824_v12  ;;  %v1759_v33 = vsel %vm1678_vm0, %v1755_v0, 0.0  ;;  %v1791_v34 = vsel %vm1678_vm0, 0.0, %v1755_v0  ;;  %v1874_v38 = vrot.slane %v1854_v30, %v9646_v58  ;;  %v8342_v12 = vld [vmem:[%s9343_s20 + $0x684] ss:$16 sps:$4 sm:$0xff]  }
 0x205   : > { %v1914_v45 = vrot.slane %v1894_v32, %v9653_v7  ;;  %v1773_v46 = vrot.slane %v1759_v33, 4  ;;  %v1805_v47 = vrot.slane %v1791_v34, 4  ;;  %v8355_v0 = vld [vmem:[%s9343_s20 + $0x6c8] ss:$16 sps:$4 sm:$0xff]   ;;  %v8358_v32 = vld [vmem:[%s9343_s20 + $0x6e0] ss:$16 sps:$4 sm:$0xff]  }
 0x206   : > { %8992 = vrsqrt.f32 %v1828_v16  ;;  %v8343_v16 = vld [vmem:[%s9343_s20 + $0x688] ss:$16 sps:$4 sm:$0xff]  }
 0x207   : > { %v1774_v36 = vadd.f32 %v1773_v46, %v1759_v33  ;;  %v1806_v55 = vadd.f32 %v1805_v47, %v1791_v34  ;;  %v8366_v34 = vld [vmem:[%s9343_s20 + $0x704] ss:$16 sps:$4 sm:$0xff]   ;;  %v8381_v47 = vld [vmem:[%s9343_s20 + $0x74c] ss:$16 sps:$4 sm:$0xff]  }
 0x208   : > { %v8378_v46 = vld [vmem:[%s9343_s20 + $0x744] ss:$16 sps:$4 sm:$0xff]  }
 0x209   : > { %v1775_v1 = vrot.slane %v1774_v36, 2  ;;  %v1807_v2 = vrot.slane %v1806_v55, 2 }
 0x20b   : > { %v1776_v9 = vadd.f32 %v1775_v1, %v1774_v36  ;;  %v1808_v11 = vadd.f32 %v1807_v2, %v1806_v55  ;;  %v8390_v36 = vld [vmem:[%s9343_s20 + $0x784] ss:$16 sps:$4 sm:$0xff]   ;;  %v8393_v55 = vld [vmem:[%s9343_s20 + $0x78c] ss:$16 sps:$4 sm:$0xff]   ;;  %v1890_v2 = vrot.slane %v9673_v25, %v9653_v7 }
 0x20c   : > { %v8989_v20 = vpop.eup %8988  ;;  %v8399_v1 = vld [vmem:[%s9343_s20 + $0x7ac] ss:$16 sps:$4 sm:$0xff]  }
 0x20d   : > { %v8991_v23 = vpop.eup %8990  ;;  %v1833_v24 = vmul.f32 %v8989_v20, %v9606_v54  ;;  %v1777_v17 = vrot.slane %v1776_v9, 1  ;;  %v1809_v18 = vrot.slane %v1808_v11, 1  ;;  %v8351_v20 = vld [vmem:[%s9343_s20 + $0x6ac] ss:$16 sps:$4 sm:$0xff]  }
 0x20e   : > { %v1834_v6 = vmul.f32 %v8991_v23, %v9610_v43  ;;  %v8349_v23 = vld [vmem:[%s9343_s20 + $0x6a8] ss:$16 sps:$4 sm:$0xff]  }
 0x20f   : > { %v1875_v28 = vmul.f32 %v1862_v19, %v1833_v24  ;;  %v8348_v19 = vld [vmem:[%s9343_s20 + $0x6a4] ss:$16 sps:$4 sm:$0xff]   ;;  %v1778_v24 = vadd.f32 %v1777_v17, %v1776_v9  ;;  %v1910_v9 = vrot.slane %v1890_v2, %v9653_v7  ;;  %v8409_v17 = vld [vmem:[%s9343_s20 + $0x7e8] ss:$16 sps:$4 sm:$0xff]  }
 0x210   : > { %v1876_v29 = vmul.f32 %v1866_v22, %v1834_v6  ;;  %v8993_v39 = vpop.eup %8992  ;;  %v8346_v22 = vld [vmem:[%s9343_s20 + $0x6a0] ss:$16 sps:$4 sm:$0xff]   ;;  %v8354_v6 = vld [vmem:[%s9343_s20 + $0x6c4] ss:$16 sps:$4 sm:$0xff]   ;;  %v8475_v2 = vld [vmem:[%s9343_s20 + $0x948] ss:$16 sps:$4 sm:$0xff]  }
 0x211   : > { %v1915_v31 = vadd.f32 %v1902_v26, %v1875_v28  ;;  %v1836_v40 = vmul.f32 %v8993_v39, %v9627_v14  ;;  %v1810_v26 = vadd.f32 %v1809_v18, %v1808_v11  ;;  %v8352_v28 = vld [vmem:[%s9343_s20 + $0x6c0] ss:$16 sps:$4 sm:$0xff]   ;;  %v8403_v11 = vld [vmem:[%s9343_s20 + $0x7c8] ss:$16 sps:$4 sm:$0xff]  }
 0x212   : > { %v1916_v54 = vadd.f32 %v1906_v27, %v1876_v29  ;;  %v8357_v27 = vld [vmem:[%s9343_s20 + $0x6cc] ss:$16 sps:$4 sm:$0xff]   ;;  %v1787_v29 = vmul.f32 0.25, %v1778_v24  ;;  %v8364_v39 = vld [vmem:[%s9343_s20 + $0x700] ss:$16 sps:$4 sm:$0xff]  }
 0x213   : > { %v1919_v43 = vmax.f32 %v1915_v31, 0.0  ;;  %v1878_v51 = vmul.f32 %v1874_v38, %v1836_v40  ;;  %v1819_v30 = vmul.f32 0.25, %v1810_v26  ;;  %v8360_v31 = vld [vmem:[%s9343_s20 + $0x6e4] ss:$16 sps:$4 sm:$0xff]   ;;  %v8367_v40 = vld [vmem:[%s9343_s20 + $0x708] ss:$16 sps:$4 sm:$0xff]  }
 0x214   : > { %v1920_v35 = vmax.f32 %v1916_v54, 0.0  ;;  %v8363_v54 = vld [vmem:[%s9343_s20 + $0x6ec] ss:$16 sps:$4 sm:$0xff]   ;;  %v8420_v26 = vld [vmem:[%s9343_s20 + $0x824] ss:$16 sps:$4 sm:$0xff]  }
 0x215   : > { %v2055_v48 = vpack.c.bf16 %v1919_v43, %v1919_v43  ;;  %v1918_v14 = vadd.f32 %v1914_v45, %v1878_v51  ;;  %v8361_v43 = vld [vmem:[%s9343_s20 + $0x6e8] ss:$16 sps:$4 sm:$0xff]   ;;  %v1823_v33 = vsel %vm1678_vm0, %v1787_v29, %v1819_v30  ;;  %v8387_v51 = vld [vmem:[%s9343_s20 + $0x76c] ss:$16 sps:$4 sm:$0xff]   ;;  %v8424_v30 = vld [vmem:[%s9343_s20 + $0x840] ss:$16 sps:$4 sm:$0xff]  }
 0x216   : > { %v2056_v41 = vpack.c.bf16 %v1920_v35, %v1920_v35  ;;  %v8369_v35 = vld [vmem:[%s9343_s20 + $0x70c] ss:$16 sps:$4 sm:$0xff]   ;;  %v1827_v38 = vadd.f32 1e-05, %v1823_v33  ;;  %v8373_v45 = vld [vmem:[%s9343_s20 + $0x728] ss:$16 sps:$4 sm:$0xff]  }
 0x217   : > { %v1922_v59 = vmax.f32 %v1918_v14, 0.0  ;;  %v8382_v14 = vld [vmem:[%s9343_s20 + $0x760] ss:$16 sps:$4 sm:$0xff]   ;;  %v8429_v29 = vld [vmem:[%s9343_s20 + $0x84c] ss:$16 sps:$4 sm:$0xff]  }
 0x218   : > { %2731 = vmatprep.mubr.bf16.mxu0 %v2056_v41  ;;  %2813 = vmatprep.mubr.bf16.mxu1 %v2056_v41  ;;  %v8372_v41 = vld [vmem:[%s9343_s20 + $0x724] ss:$16 sps:$4 sm:$0xff]   ;;  %8994 = vrsqrt.f32 %v1827_v38  ;;  %v8433_v33 = vld [vmem:[%s9343_s20 + $0x868] ss:$16 sps:$4 sm:$0xff]   ;;  %v8436_v38 = vld [vmem:[%s9343_s20 + $0x880] ss:$16 sps:$4 sm:$0xff]  }
 0x219   : > { %2732 = vmatmul.mubr.bf16.vlgmr.msra.gmra.mrb[8].mxu0 %v2055_v48  ;;  %2814 = vmatmul.mubr.bf16.vlgmr.msra.gmra.mrb[8].mxu1 %v2055_v48  ;;  %v2058_v60 = vpack.c.bf16 %v1922_v59, %v1922_v59  ;;  %v8376_v48 = vld [vmem:[%s9343_s20 + $0x740] ss:$16 sps:$4 sm:$0xff]   ;;  %v8391_v59 = vld [vmem:[%s9343_s20 + $0x788] ss:$16 sps:$4 sm:$0xff]  }
 0x21a   : > { %2741 = vmatpush1.bf16.msra.mxu0 %v8316_v42  ;;  %2823 = vmatpush1.bf16.msra.mxu1 %v8319_v44  ;;  %v8375_v42 = vld [vmem:[%s9343_s20 + $0x72c] ss:$16 sps:$4 sm:$0xff]   ;;  %v8370_v44 = vld [vmem:[%s9343_s20 + $0x720] ss:$16 sps:$4 sm:$0xff]  }
 0x21b   : > { %2742 = vmatprep.subr.bf16.mxu0 %v8324_v49  ;;  %2824 = vmatprep.subr.bf16.mxu1 %v8327_v50  ;;  %v8379_v49 = vld [vmem:[%s9343_s20 + $0x748] ss:$16 sps:$4 sm:$0xff]   ;;  %v8384_v50 = vld [vmem:[%s9343_s20 + $0x764] ss:$16 sps:$4 sm:$0xff]  }
 0x21c   : > { %2772 = vmatprep.mubr.bf16.mxu0 %v2058_v60  ;;  %2854 = vmatprep.mubr.bf16.mxu1 %v2058_v60 }
 0x21e   : > { %2743 = vmatpush1.bf16.msra.mxu0 %v8322_v52  ;;  %2825 = vmatpush1.bf16.msra.mxu1 %v8325_v53  ;;  %v8385_v52 = vld [vmem:[%s9343_s20 + $0x768] ss:$16 sps:$4 sm:$0xff]   ;;  %v1850_v53 = vrot.slane %v9673_v25, %v9646_v58  ;;  %v8400_v25 = vld [vmem:[%s9343_s20 + $0x7c0] ss:$16 sps:$4 sm:$0xff]  }
 0x21f   : > { %2744 = vmatprep.subr.bf16.mxu0 %v8330_v56  ;;  %2826 = vmatprep.subr.bf16.mxu1 %v8333_v37  ;;  %v8388_v37 = vld [vmem:[%s9343_s20 + $0x780] ss:$16 sps:$4 sm:$0xff]  }
 0x222   : > { %2745 = vmatpush1.bf16.msra.mxu0 %v8328_v62  ;;  %2827 = vmatpush1.bf16.msra.mxu1 %v8331_v63  ;;  %v8995_v56 = vpop.eup %8994  ;;  %v1870_v62 = vrot.slane %v1850_v53, %v9646_v58  ;;  %v8396_v63 = vld [vmem:[%s9343_s20 + $0x7a4] ss:$16 sps:$4 sm:$0xff]   ;;  %v8465_v53 = vld [vmem:[%s9343_s20 + $0x90c] ss:$16 sps:$4 sm:$0xff]  }
 0x223   : > { %2746 = vmatprep.subr.bf16.mxu0 %v8336_v61  ;;  %2828 = vmatprep.subr.bf16.mxu1 %v8339_v4  ;;  %v1835_v60 = vmul.f32 %v8995_v56, %v9668_v21  ;;  %v8394_v61 = vld [vmem:[%s9343_s20 + $0x7a0] ss:$16 sps:$4 sm:$0xff]   ;;  %v8397_v4 = vld [vmem:[%s9343_s20 + $0x7a8] ss:$16 sps:$4 sm:$0xff]   ;;  %v8402_v21 = vld [vmem:[%s9343_s20 + $0x7c4] ss:$16 sps:$4 sm:$0xff]  }
 0x224   : > { %v8468_v56 = vld [vmem:[%s9343_s20 + $0x924] ss:$16 sps:$4 sm:$0xff]  }
 0x226   : > { %2747 = vmatpush1.bf16.msra.mxu0 %v8334_v5  ;;  %2829 = vmatpush1.bf16.msra.mxu1 %v8337_v8  ;;  %v1877_v5 = vmul.f32 %v1870_v62, %v1835_v60  ;;  %v8405_v8 = vld [vmem:[%s9343_s20 + $0x7cc] ss:$16 sps:$4 sm:$0xff]   ;;  %v8469_v60 = vld [vmem:[%s9343_s20 + $0x928] ss:$16 sps:$4 sm:$0xff]   ;;  %v8474_v62 = vld [vmem:[%s9343_s20 + $0x944] ss:$16 sps:$4 sm:$0xff]  }
 0x227   : > { %2748 = vmatprep.subr.bf16.mxu0 %v8342_v12  ;;  %2830 = vmatprep.subr.bf16.mxu1 %v8345_v13  ;;  %v8408_v12 = vld [vmem:[%s9343_s20 + $0x7e4] ss:$16 sps:$4 sm:$0xff]   ;;  %v8411_v13 = vld [vmem:[%s9343_s20 + $0x7ec] ss:$16 sps:$4 sm:$0xff]  }
 0x22a   : > { %2749 = vmatpush1.bf16.msra.mxu0 %v8340_v15  ;;  %2831 = vmatpush1.bf16.msra.mxu1 %v8343_v16  ;;  %v1917_v15 = vadd.f32 %v1910_v9, %v1877_v5  ;;  %v8406_v16 = vld [vmem:[%s9343_s20 + $0x7e0] ss:$16 sps:$4 sm:$0xff]   ;;  %v8489_v9 = vld [vmem:[%s9343_s20 + $0x98c] ss:$16 sps:$4 sm:$0xff]  }
 0x22b   : > { %2750 = vmatprep.subr.bf16.mxu0 %v8348_v19  ;;  %2832 = vmatprep.subr.bf16.mxu1 %v8351_v20  ;;  %v8414_v19 = vld [vmem:[%s9343_s20 + $0x804] ss:$16 sps:$4 sm:$0xff]   ;;  %v8417_v20 = vld [vmem:[%s9343_s20 + $0x80c] ss:$16 sps:$4 sm:$0xff]   ;;  %v8478_v5 = vld [vmem:[%s9343_s20 + $0x960] ss:$16 sps:$4 sm:$0xff]  }
 0x22c   : > { %v1921_v18 = vmax.f32 %v1917_v15, 0.0  ;;  %v8490_v15 = vld [vmem:[%s9343_s20 + $0x9a0] ss:$16 sps:$4 sm:$0xff]  }
 0x22e   : > { %2751 = vmatpush1.bf16.msra.mxu0 %v8346_v22  ;;  %2833 = vmatpush1.bf16.msra.mxu1 %v8349_v23  ;;  %v8412_v22 = vld [vmem:[%s9343_s20 + $0x800] ss:$16 sps:$4 sm:$0xff]   ;;  %v8415_v23 = vld [vmem:[%s9343_s20 + $0x808] ss:$16 sps:$4 sm:$0xff]   ;;  %v2057_v24 = vpack.c.bf16 %v1921_v18, %v1921_v18  ;;  %v8498_v18 = vld [vmem:[%s9343_s20 + $0x9c4] ss:$16 sps:$4 sm:$0xff]  }
 0x22f   : > { %2752 = vmatprep.subr.bf16.mxu0 %v8354_v6  ;;  %2834 = vmatprep.subr.bf16.mxu1 %v8357_v27  ;;  %v8423_v6 = vld [vmem:[%s9343_s20 + $0x82c] ss:$16 sps:$4 sm:$0xff]   ;;  %v8418_v27 = vld [vmem:[%s9343_s20 + $0x820] ss:$16 sps:$4 sm:$0xff]  }
 0x232   : > { %2753 = vmatpush1.bf16.msra.mxu0 %v8352_v28  ;;  %2835 = vmatpush1.bf16.msra.mxu1 %v8355_v0  ;;  %v8421_v28 = vld [vmem:[%s9343_s20 + $0x828] ss:$16 sps:$4 sm:$0xff]   ;;  %v8426_v0 = vld [vmem:[%s9343_s20 + $0x844] ss:$16 sps:$4 sm:$0xff]  }
 0x233   : > { %2754 = vmatprep.subr.bf16.mxu0 %v8360_v31  ;;  %2836 = vmatprep.subr.bf16.mxu1 %v8363_v54  ;;  %v8427_v31 = vld [vmem:[%s9343_s20 + $0x848] ss:$16 sps:$4 sm:$0xff]   ;;  %v8432_v54 = vld [vmem:[%s9343_s20 + $0x864] ss:$16 sps:$4 sm:$0xff]  }
 0x236   : > { %2755 = vmatpush1.bf16.msra.mxu0 %v8358_v32  ;;  %2837 = vmatpush1.bf16.msra.mxu1 %v8361_v43  ;;  %v8435_v32 = vld [vmem:[%s9343_s20 + $0x86c] ss:$16 sps:$4 sm:$0xff]   ;;  %v8430_v43 = vld [vmem:[%s9343_s20 + $0x860] ss:$16 sps:$4 sm:$0xff]  }
 0x237   : > { %2756 = vmatprep.subr.bf16.mxu0 %v8366_v34  ;;  %2838 = vmatprep.subr.bf16.mxu1 %v8369_v35  ;;  %v8438_v34 = vld [vmem:[%s9343_s20 + $0x884] ss:$16 sps:$4 sm:$0xff]   ;;  %v8441_v35 = vld [vmem:[%s9343_s20 + $0x88c] ss:$16 sps:$4 sm:$0xff]  }
 0x23a   : > { %2757 = vmatpush1.bf16.msra.mxu0 %v8364_v39  ;;  %2839 = vmatpush1.bf16.msra.mxu1 %v8367_v40  ;;  %v8439_v39 = vld [vmem:[%s9343_s20 + $0x888] ss:$16 sps:$4 sm:$0xff]   ;;  %v8444_v40 = vld [vmem:[%s9343_s20 + $0x8a4] ss:$16 sps:$4 sm:$0xff]  }
 0x23b   : > { %2758 = vmatprep.subr.bf16.mxu0 %v8372_v41  ;;  %2840 = vmatprep.subr.bf16.mxu1 %v8375_v42  ;;  %v8447_v41 = vld [vmem:[%s9343_s20 + $0x8ac] ss:$16 sps:$4 sm:$0xff]   ;;  %v8442_v42 = vld [vmem:[%s9343_s20 + $0x8a0] ss:$16 sps:$4 sm:$0xff]  }
 0x23e   : > { %2759 = vmatpush1.bf16.msra.mxu0 %v8370_v44  ;;  %2841 = vmatpush1.bf16.msra.mxu1 %v8373_v45  ;;  %v8445_v44 = vld [vmem:[%s9343_s20 + $0x8a8] ss:$16 sps:$4 sm:$0xff]   ;;  %v8450_v45 = vld [vmem:[%s9343_s20 + $0x8c4] ss:$16 sps:$4 sm:$0xff]  }
 0x23f   : > { %2760 = vmatprep.subr.bf16.mxu0 %v8378_v46  ;;  %2842 = vmatprep.subr.bf16.mxu1 %v8381_v47  ;;  %v8453_v46 = vld [vmem:[%s9343_s20 + $0x8cc] ss:$16 sps:$4 sm:$0xff]   ;;  %v8448_v47 = vld [vmem:[%s9343_s20 + $0x8c0] ss:$16 sps:$4 sm:$0xff]  }
 0x242   : > { %2761 = vmatpush1.bf16.msra.mxu0 %v8376_v48  ;;  %2843 = vmatpush1.bf16.msra.mxu1 %v8379_v49  ;;  %v8451_v48 = vld [vmem:[%s9343_s20 + $0x8c8] ss:$16 sps:$4 sm:$0xff]   ;;  %v8456_v49 = vld [vmem:[%s9343_s20 + $0x8e4] ss:$16 sps:$4 sm:$0xff]  }
 0x243   : > { %2762 = vmatprep.subr.bf16.mxu0 %v8384_v50  ;;  %2844 = vmatprep.subr.bf16.mxu1 %v8387_v51  ;;  %v8459_v50 = vld [vmem:[%s9343_s20 + $0x8ec] ss:$16 sps:$4 sm:$0xff]   ;;  %v8454_v51 = vld [vmem:[%s9343_s20 + $0x8e0] ss:$16 sps:$4 sm:$0xff]  }
 0x246   : > { %2763 = vmatpush1.bf16.msra.mxu0 %v8382_v14  ;;  %2845 = vmatpush1.bf16.msra.mxu1 %v8385_v52  ;;  %v8457_v14 = vld [vmem:[%s9343_s20 + $0x8e8] ss:$16 sps:$4 sm:$0xff]   ;;  %v8462_v52 = vld [vmem:[%s9343_s20 + $0x904] ss:$16 sps:$4 sm:$0xff]  }
 0x247   : > { %2764 = vmatprep.subr.bf16.mxu0 %v8390_v36  ;;  %2846 = vmatprep.subr.bf16.mxu1 %v8393_v55  ;;  %v8460_v36 = vld [vmem:[%s9343_s20 + $0x900] ss:$16 sps:$4 sm:$0xff]   ;;  %v8463_v55 = vld [vmem:[%s9343_s20 + $0x908] ss:$16 sps:$4 sm:$0xff]  }
 0x24a   : > { %2765 = vmatpush1.bf16.msra.mxu0 %v8388_v37  ;;  %2847 = vmatpush1.bf16.msra.mxu1 %v8391_v59  ;;  %v8471_v37 = vld [vmem:[%s9343_s20 + $0x92c] ss:$16 sps:$4 sm:$0xff]   ;;  %v8466_v59 = vld [vmem:[%s9343_s20 + $0x920] ss:$16 sps:$4 sm:$0xff]  }
 0x24b   : > { %2766 = vmatprep.subr.bf16.mxu0 %v8396_v63  ;;  %2848 = vmatprep.subr.bf16.mxu1 %v8399_v1  ;;  %v8477_v63 = vld [vmem:[%s9343_s20 + $0x94c] ss:$16 sps:$4 sm:$0xff]   ;;  %v8472_v1 = vld [vmem:[%s9343_s20 + $0x940] ss:$16 sps:$4 sm:$0xff]  }
 0x24e   : > { %2767 = vmatpush1.bf16.msra.mxu0 %v8394_v61  ;;  %2849 = vmatpush1.bf16.msra.mxu1 %v8397_v4  ;;  %v8480_v61 = vld [vmem:[%s9343_s20 + $0x964] ss:$16 sps:$4 sm:$0xff]   ;;  %v8483_v4 = vld [vmem:[%s9343_s20 + $0x96c] ss:$16 sps:$4 sm:$0xff]  }
 0x24f   : > { %2768 = vmatprep.subr.bf16.mxu0 %v8402_v21  ;;  %2850 = vmatprep.subr.bf16.mxu1 %v8405_v8  ;;  %v8481_v21 = vld [vmem:[%s9343_s20 + $0x968] ss:$16 sps:$4 sm:$0xff]   ;;  %v8486_v8 = vld [vmem:[%s9343_s20 + $0x984] ss:$16 sps:$4 sm:$0xff]  }
 0x252   : > { %2769 = vmatpush1.bf16.msra.mxu0 %v8400_v25  ;;  %2851 = vmatpush1.bf16.msra.mxu1 %v8403_v11  ;;  %v8484_v25 = vld [vmem:[%s9343_s20 + $0x980] ss:$16 sps:$4 sm:$0xff]   ;;  %v8487_v11 = vld [vmem:[%s9343_s20 + $0x988] ss:$16 sps:$4 sm:$0xff]  }
 0x253   : > { %2770 = vmatprep.subr.bf16.mxu0 %v8408_v12  ;;  %2852 = vmatprep.subr.bf16.mxu1 %v8411_v13  ;;  %v8492_v12 = vld [vmem:[%s9343_s20 + $0x9a4] ss:$16 sps:$4 sm:$0xff]   ;;  %v8495_v13 = vld [vmem:[%s9343_s20 + $0x9ac] ss:$16 sps:$4 sm:$0xff]  }
 0x256   : > { %2771 = vmatpush1.bf16.msra.mxu0 %v8406_v16  ;;  %2853 = vmatpush1.bf16.msra.mxu1 %v8409_v17  ;;  %v8493_v16 = vld [vmem:[%s9343_s20 + $0x9a8] ss:$16 sps:$4 sm:$0xff]   ;;  %v8496_v17 = vld [vmem:[%s9343_s20 + $0x9c0] ss:$16 sps:$4 sm:$0xff]  }
 0x257   : > { %3881 = vmatprep.subr.bf16.mxu0 %v8414_v19  ;;  %3963 = vmatprep.subr.bf16.mxu1 %v8417_v20  ;;  %v8499_v19 = vld [vmem:[%s9343_s20 + $0x9c8] ss:$16 sps:$4 sm:$0xff]   ;;  %v8501_v20 = vld [vmem:[%s9343_s20 + $0x9cc] ss:$16 sps:$4 sm:$0xff]  }
 0x259   : > { %2773 = vmatmul.mubr.bf16.vlgmr.msra.gmra.mrb[8].mxu0 %v2057_v24  ;;  %2855 = vmatmul.mubr.bf16.vlgmr.msra.gmra.mrb[8].mxu1 %v2057_v24  ;;  %v8502_v24 = vld [vmem:[%s9343_s20 + $0x9e0] ss:$16 sps:$4 sm:$0xff]  }
 0x25a   : > { %3882 = vmatpush1.bf16.msra.mxu0 %v8412_v22  ;;  %3964 = vmatpush1.bf16.msra.mxu1 %v8415_v23  ;;  %v8504_v22 = vld [vmem:[%s9343_s20 + $0x9e4] ss:$16 sps:$4 sm:$0xff]   ;;  %v8507_v23 = vld [vmem:[%s9343_s20 + $0x9ec] ss:$16 sps:$4 sm:$0xff]  }
 0x25b   : > { %3883 = vmatprep.subr.bf16.mxu0 %v8420_v26  ;;  %3965 = vmatprep.subr.bf16.mxu1 %v8423_v6  ;;  %v8505_v26 = vld [vmem:[%s9343_s20 + $0x9e8] ss:$16 sps:$4 sm:$0xff]   ;;  %v8510_v6 = vld [vmem:[%s9343_s20 + $0xa04] ss:$16 sps:$4 sm:$0xff]  }
 0x25e   : > { %3884 = vmatpush1.bf16.msra.mxu0 %v8418_v27  ;;  %3966 = vmatpush1.bf16.msra.mxu1 %v8421_v28  ;;  %v8513_v27 = vld [vmem:[%s9343_s20 + $0xa0c] ss:$16 sps:$4 sm:$0xff]  }
 0x25f   : > { %3885 = vmatprep.subr.bf16.mxu0 %v8426_v0  ;;  %3967 = vmatprep.subr.bf16.mxu1 %v8429_v29 }
 0x262   : > { %3886 = vmatpush1.bf16.msra.mxu0 %v8424_v30  ;;  %3968 = vmatpush1.bf16.msra.mxu1 %v8427_v31 }
 0x263   : > { %3887 = vmatprep.subr.bf16.mxu0 %v8432_v54  ;;  %3969 = vmatprep.subr.bf16.mxu1 %v8435_v32 }
 0x266   : > { %3888 = vmatpush1.bf16.msra.mxu0 %v8430_v43  ;;  %3970 = vmatpush1.bf16.msra.mxu1 %v8433_v33 }
 0x267   : > { %3889 = vmatprep.subr.bf16.mxu0 %v8438_v34  ;;  %3971 = vmatprep.subr.bf16.mxu1 %v8441_v35 }
 0x26a   : > { %3890 = vmatpush1.bf16.msra.mxu0 %v8436_v38  ;;  %3972 = vmatpush1.bf16.msra.mxu1 %v8439_v39 }
 0x26b   : > { %3891 = vmatprep.subr.bf16.mxu0 %v8444_v40  ;;  %3973 = vmatprep.subr.bf16.mxu1 %v8447_v41 }
 0x26e   : > { %3892 = vmatpush1.bf16.msra.mxu0 %v8442_v42  ;;  %3974 = vmatpush1.bf16.msra.mxu1 %v8445_v44 }
 0x26f   : > { %3893 = vmatprep.subr.bf16.mxu0 %v8450_v45  ;;  %3975 = vmatprep.subr.bf16.mxu1 %v8453_v46 }
 0x272   : > { %3894 = vmatpush1.bf16.msra.mxu0 %v8448_v47  ;;  %3976 = vmatpush1.bf16.msra.mxu1 %v8451_v48 }
 0x273   : > { %3895 = vmatprep.subr.bf16.mxu0 %v8456_v49  ;;  %3977 = vmatprep.subr.bf16.mxu1 %v8459_v50 }
 0x276   : > { %3896 = vmatpush1.bf16.msra.mxu0 %v8454_v51  ;;  %3978 = vmatpush1.bf16.msra.mxu1 %v8457_v14 }
 0x277   : > { %3897 = vmatprep.subr.bf16.mxu0 %v8462_v52  ;;  %3979 = vmatprep.subr.bf16.mxu1 %v8465_v53 }
 0x27a   : > { %3898 = vmatpush1.bf16.msra.mxu0 %v8460_v36  ;;  %3980 = vmatpush1.bf16.msra.mxu1 %v8463_v55 }
 0x27b   : > { %3899 = vmatprep.subr.bf16.mxu0 %v8468_v56  ;;  %3981 = vmatprep.subr.bf16.mxu1 %v8471_v37 }
 0x27e   : > { %3900 = vmatpush1.bf16.msra.mxu0 %v8466_v59  ;;  %3982 = vmatpush1.bf16.msra.mxu1 %v8469_v60 }
 0x27f   : > { %3901 = vmatprep.subr.bf16.mxu0 %v8474_v62  ;;  %3983 = vmatprep.subr.bf16.mxu1 %v8477_v63 }
 0x282   : > { %3902 = vmatpush1.bf16.msra.mxu0 %v8472_v1  ;;  %3984 = vmatpush1.bf16.msra.mxu1 %v8475_v2 }
 0x283   : > { %3903 = vmatprep.subr.bf16.mxu0 %v8480_v61  ;;  %3985 = vmatprep.subr.bf16.mxu1 %v8483_v4 }
 0x286   : > { %3904 = vmatpush1.bf16.msra.mxu0 %v8478_v5  ;;  %3986 = vmatpush1.bf16.msra.mxu1 %v8481_v21 }
 0x287   : > { %3905 = vmatprep.subr.bf16.mxu0 %v8486_v8  ;;  %3987 = vmatprep.subr.bf16.mxu1 %v8489_v9 }
 0x28a   : > { %3906 = vmatpush1.bf16.msra.mxu0 %v8484_v25  ;;  %3988 = vmatpush1.bf16.msra.mxu1 %v8487_v11 }
 0x28b   : > { %3907 = vmatprep.subr.bf16.mxu0 %v8492_v12  ;;  %3989 = vmatprep.subr.bf16.mxu1 %v8495_v13 }
 0x28e   : > { %3908 = vmatpush1.bf16.msra.mxu0 %v8490_v15  ;;  %3990 = vmatpush1.bf16.msra.mxu1 %v8493_v16 }
 0x28f   : > { %3909 = vmatprep.subr.bf16.mxu0 %v8498_v18  ;;  %3991 = vmatprep.subr.bf16.mxu1 %v8501_v20 }
 0x292   : > { %3910 = vmatpush1.bf16.msra.mxu0 %v8496_v17  ;;  %3992 = vmatpush1.bf16.msra.mxu1 %v8499_v19 }
 0x293   : > { %3911 = vmatprep.subr.bf16.mxu0 %v8504_v22  ;;  %3993 = vmatprep.subr.bf16.mxu1 %v8507_v23 }
 0x296   : > { %3912 = vmatpush1.bf16.msra.mxu0 %v8502_v24  ;;  %3994 = vmatpush1.bf16.msra.mxu1 %v8505_v26 }
 0x297   : > { %3922 = vmatprep.subr.bf16.mxu0 %v8510_v6  ;;  %4004 = vmatprep.subr.bf16.mxu1 %v8513_v27 }
 0x32c   : > { %v9828_v28 = vpop.f32.mrb[8].mxu0  ;;  %v9830_v0 = vpop.f32.mrb[8].mxu1 }
 0x32d   : > { %v2863_v29 = vsel %vm1678_vm0, %v9828_v28, 0.0  ;;  %v2895_v30 = vsel %vm1678_vm0, 0.0, %v9828_v28  ;;  %v2865_v31 = vsel %vm1678_vm0, %v9830_v0, 0.0  ;;  %v2897_v54 = vsel %vm1678_vm0, 0.0, %v9830_v0  ;;  %v9844_v32 = vpop.f32.mrb[9].mxu0  ;;  %v9846_v43 = vpop.f32.mrb[9].mxu1 }
 0x32e   : > { %v2867_v33 = vrot.slane %v2863_v29, 4  ;;  %v2899_v34 = vrot.slane %v2895_v30, 4  ;;  %v2879_v35 = vrot.slane %v2865_v31, 4  ;;  %v2911_v38 = vrot.slane %v2897_v54, 4  ;;  %v2778_v39 = vpop.f32.mrb[10].mxu0  ;;  %v2860_v40 = vpop.f32.mrb[10].mxu1 }
 0x32f   : > { %v2864_v41 = vsel %vm1678_vm0, %v9844_v32, 0.0  ;;  %v2896_v42 = vsel %vm1678_vm0, 0.0, %v9844_v32  ;;  %v2866_v44 = vsel %vm1678_vm0, %v9846_v43, 0.0  ;;  %v2898_v45 = vsel %vm1678_vm0, 0.0, %v9846_v43  ;;  %v2779_v46 = vpop.f32.mrb[11].mxu0  ;;  %v2861_v47 = vpop.f32.mrb[11].mxu1 }
 0x330   : > { %v2868_v48 = vadd.f32 %v2867_v33, %v2863_v29  ;;  %v2900_v49 = vadd.f32 %v2899_v34, %v2895_v30  ;;  %v2880_v50 = vadd.f32 %v2879_v35, %v2865_v31  ;;  %v2912_v51 = vadd.f32 %v2911_v38, %v2897_v54 }
 0x331   : > { %v2873_v14 = vrot.slane %v2864_v41, 4  ;;  %v2905_v52 = vrot.slane %v2896_v42, 4  ;;  %v2885_v53 = vrot.slane %v2866_v44, 4  ;;  %v2917_v36 = vrot.slane %v2898_v45, 4 }
 0x332   : > { %v2869_v55 = vrot.slane %v2868_v48, 2  ;;  %v2901_v56 = vrot.slane %v2900_v49, 2  ;;  %v2881_v37 = vrot.slane %v2880_v50, 2  ;;  %v2913_v59 = vrot.slane %v2912_v51, 2 }
 0x333   : > { %v2874_v60 = vadd.f32 %v2873_v14, %v2864_v41  ;;  %v2906_v62 = vadd.f32 %v2905_v52, %v2896_v42  ;;  %v2886_v63 = vadd.f32 %v2885_v53, %v2866_v44  ;;  %v2918_v1 = vadd.f32 %v2917_v36, %v2898_v45 }
 0x334   : > { %v2870_v2 = vadd.f32 %v2869_v55, %v2868_v48  ;;  %v2902_v61 = vadd.f32 %v2901_v56, %v2900_v49  ;;  %v2882_v4 = vadd.f32 %v2881_v37, %v2880_v50  ;;  %v2914_v5 = vadd.f32 %v2913_v59, %v2912_v51 }
 0x335   : > { %v2875_v21 = vrot.slane %v2874_v60, 2  ;;  %v2907_v8 = vrot.slane %v2906_v62, 2  ;;  %v2887_v9 = vrot.slane %v2886_v63, 2  ;;  %v2919_v25 = vrot.slane %v2918_v1, 2 }
 0x336   : > { %v2871_v11 = vrot.slane %v2870_v2, 1  ;;  %v2903_v12 = vrot.slane %v2902_v61, 1  ;;  %v2883_v13 = vrot.slane %v2882_v4, 1  ;;  %v2915_v15 = vrot.slane %v2914_v5, 1 }
 0x337   : > { %v2876_v16 = vadd.f32 %v2875_v21, %v2874_v60  ;;  %v2908_v17 = vadd.f32 %v2907_v8, %v2906_v62  ;;  %v2888_v18 = vadd.f32 %v2887_v9, %v2886_v63  ;;  %v2920_v19 = vadd.f32 %v2919_v25, %v2918_v1 }
 0x338   : > { %v2872_v20 = vadd.f32 %v2871_v11, %v2870_v2  ;;  %v2904_v22 = vadd.f32 %v2903_v12, %v2902_v61  ;;  %v2884_v23 = vadd.f32 %v2883_v13, %v2882_v4  ;;  %v2916_v24 = vadd.f32 %v2915_v15, %v2914_v5 }
 0x339   : > { %v2877_v26 = vrot.slane %v2876_v16, 1  ;;  %v2909_v6 = vrot.slane %v2908_v17, 1  ;;  %v2889_v27 = vrot.slane %v2888_v18, 1  ;;  %v2921_v29 = vrot.slane %v2920_v19, 1 }
 0x33a   : > { %v2891_v30 = vmul.f32 0.25, %v2872_v20  ;;  %v2923_v31 = vmul.f32 0.25, %v2904_v22  ;;  %v2893_v54 = vmul.f32 0.25, %v2884_v23  ;;  %v2925_v33 = vmul.f32 0.25, %v2916_v24 }
 0x33b   : > { %v2878_v34 = vadd.f32 %v2877_v26, %v2876_v16  ;;  %v2910_v35 = vadd.f32 %v2909_v6, %v2908_v17  ;;  %v2890_v38 = vadd.f32 %v2889_v27, %v2888_v18  ;;  %v2922_v39 = vadd.f32 %v2921_v29, %v2920_v19 }
 0x33c   : > { %v2927_v40 = vsel %vm1678_vm0, %v2891_v30, %v2923_v31  ;;  %v2929_v41 = vsel %vm1678_vm0, %v2893_v54, %v2925_v33 }
 0x33d   : > { %v9865_v42 = vsub.f32 %v9828_v28, %v2927_v40  ;;  %v9868_v44 = vsub.f32 %v9830_v0, %v2929_v41  ;;  %v2892_v45 = vmul.f32 0.25, %v2878_v34  ;;  %v2924_v46 = vmul.f32 0.25, %v2910_v35 }
 0x33e   : > { %v2894_v47 = vmul.f32 0.25, %v2890_v38  ;;  %v2926_v48 = vmul.f32 0.25, %v2922_v39 }
 0x33f   : > { %v2935_v49 = vmul.f32 %v9865_v42, %v9865_v42  ;;  %v2937_v50 = vmul.f32 %v9868_v44, %v9868_v44  ;;  %v2928_v51 = vsel %vm1678_vm0, %v2892_v45, %v2924_v46 }
 0x340   : > { %v9877_v14 = vsub.f32 %v9844_v32, %v2928_v51  ;;  %v2930_v28 = vsel %vm1678_vm0, %v2894_v47, %v2926_v48 }
 0x341   : > { %v2939_v0 = vsel %vm1678_vm0, %v2935_v49, 0.0  ;;  %v2971_v52 = vsel %vm1678_vm0, 0.0, %v2935_v49  ;;  %v2941_v53 = vsel %vm1678_vm0, %v2937_v50, 0.0  ;;  %v2973_v36 = vsel %vm1678_vm0, 0.0, %v2937_v50 }
 0x342   : > { %v2943_v55 = vrot.slane %v2939_v0, 4  ;;  %v2975_v56 = vrot.slane %v2971_v52, 4  ;;  %v2955_v37 = vrot.slane %v2941_v53, 4  ;;  %v2987_v32 = vrot.slane %v2973_v36, 4 }
 0x343   : > { %v2936_v59 = vmul.f32 %v9877_v14, %v9877_v14  ;;  %v9892_v60 = vsub.f32 %v9846_v43, %v2930_v28 }
 0x344   : > { %v2944_v62 = vadd.f32 %v2943_v55, %v2939_v0  ;;  %v2976_v63 = vadd.f32 %v2975_v56, %v2971_v52  ;;  %v2956_v1 = vadd.f32 %v2955_v37, %v2941_v53  ;;  %v2988_v2 = vadd.f32 %v2987_v32, %v2973_v36 }
 0x345   : > { %v2940_v61 = vsel %vm1678_vm0, %v2936_v59, 0.0  ;;  %v2972_v4 = vsel %vm1678_vm0, 0.0, %v2936_v59  ;;  %v2938_v5 = vmul.f32 %v9892_v60, %v9892_v60 }
 0x346   : > { %v2945_v21 = vrot.slane %v2944_v62, 2  ;;  %v2977_v8 = vrot.slane %v2976_v63, 2  ;;  %v2957_v9 = vrot.slane %v2956_v1, 2  ;;  %v2989_v25 = vrot.slane %v2988_v2, 2 }
 0x347   : > { %v2949_v11 = vrot.slane %v2940_v61, 4  ;;  %v2981_v43 = vrot.slane %v2972_v4, 4  ;;  %v2942_v12 = vsel %vm1678_vm0, %v2938_v5, 0.0  ;;  %v2974_v13 = vsel %vm1678_vm0, 0.0, %v2938_v5  ;;  %v6932_v5 = vld [vmem:[%s9643_s28 + $0x18] sm:$0x77] }
 0x348   : > { %v2946_v15 = vadd.f32 %v2945_v21, %v2944_v62  ;;  %v2978_v16 = vadd.f32 %v2977_v8, %v2976_v63  ;;  %v2958_v17 = vadd.f32 %v2957_v9, %v2956_v1  ;;  %v2990_v18 = vadd.f32 %v2989_v25, %v2988_v2 }
 0x349   : > { %v2950_v19 = vadd.f32 %v2949_v11, %v2940_v61  ;;  %v2982_v20 = vadd.f32 %v2981_v43, %v2972_v4  ;;  %v2961_v22 = vrot.slane %v2942_v12, 4  ;;  %v2993_v23 = vrot.slane %v2974_v13, 4  ;;  %v6931_v61 = vld [vmem:[%s9643_s28 + $0x10] sm:$0x77] }
 0x34a   : > { %v2947_v24 = vrot.slane %v2946_v15, 1  ;;  %v2979_v26 = vrot.slane %v2978_v16, 1  ;;  %v2959_v6 = vrot.slane %v2958_v17, 1  ;;  %v2991_v27 = vrot.slane %v2990_v18, 1 }
 0x34b   : > { %v2951_v29 = vrot.slane %v2950_v19, 2  ;;  %v2983_v30 = vrot.slane %v2982_v20, 2  ;;  %v2962_v31 = vadd.f32 %v2961_v22, %v2942_v12  ;;  %v2994_v54 = vadd.f32 %v2993_v23, %v2974_v13 }
 0x34c   : > { %v2948_v33 = vadd.f32 %v2947_v24, %v2946_v15  ;;  %v2980_v34 = vadd.f32 %v2979_v26, %v2978_v16  ;;  %v2960_v35 = vadd.f32 %v2959_v6, %v2958_v17  ;;  %v2992_v38 = vadd.f32 %v2991_v27, %v2990_v18 }
 0x34d   : > { %v2952_v39 = vadd.f32 %v2951_v29, %v2950_v19  ;;  %v2984_v40 = vadd.f32 %v2983_v30, %v2982_v20  ;;  %v2963_v41 = vrot.slane %v2962_v31, 2  ;;  %v2995_v45 = vrot.slane %v2994_v54, 2 }
 0x34e   : > { %v2967_v46 = vmul.f32 0.25, %v2948_v33  ;;  %v2999_v47 = vmul.f32 0.25, %v2980_v34  ;;  %v2969_v48 = vmul.f32 0.25, %v2960_v35  ;;  %v3001_v49 = vmul.f32 0.25, %v2992_v38 }
 0x34f   : > { %v2953_v50 = vrot.slane %v2952_v39, 1  ;;  %v2985_v51 = vrot.slane %v2984_v40, 1  ;;  %v2964_v28 = vadd.f32 %v2963_v41, %v2962_v31  ;;  %v2996_v0 = vadd.f32 %v2995_v45, %v2994_v54 }
 0x350   : > { %v3003_v52 = vsel %vm1678_vm0, %v2967_v46, %v2999_v47  ;;  %v3005_v53 = vsel %vm1678_vm0, %v2969_v48, %v3001_v49  ;;  %v3024_v25 = vrot.slane %v6931_v61, %v9646_v58  ;;  %v3032_v43 = vrot.slane %v6932_v5, %v9646_v58 }
 0x351   : > { %v3007_v36 = vadd.f32 1e-05, %v3003_v52  ;;  %v3009_v55 = vadd.f32 1e-05, %v3005_v53  ;;  %v2954_v56 = vadd.f32 %v2953_v50, %v2952_v39  ;;  %v2986_v37 = vadd.f32 %v2985_v51, %v2984_v40  ;;  %v8508_v51 = vld [vmem:[%s9343_s20 + $0xa00] ss:$16 sps:$4 sm:$0xff]  }
 0x352   : > { %v2965_v32 = vrot.slane %v2964_v28, 1  ;;  %v2997_v59 = vrot.slane %v2996_v0, 1  ;;  %v3072_v13 = vrot.slane %v6932_v5, %v9653_v7  ;;  %v3044_v15 = vrot.slane %v3024_v25, %v9646_v58  ;;  %v8516_v53 = vld [vmem:[%s9343_s20 + $0xa24] ss:$16 sps:$4 sm:$0xff]   ;;  %v8543_v25 = vld [vmem:[%s9343_s20 + $0xaac] ss:$16 sps:$4 sm:$0xff]  }
 0x353   : > { %8996 = vrsqrt.f32 %v3007_v36  ;;  %v2968_v62 = vmul.f32 0.25, %v2954_v56  ;;  %v3000_v63 = vmul.f32 0.25, %v2986_v37  ;;  %v3064_v16 = vrot.slane %v6931_v61, %v9653_v7  ;;  %v8517_v56 = vld [vmem:[%s9343_s20 + $0xa28] ss:$16 sps:$4 sm:$0xff]   ;;  %v8522_v37 = vld [vmem:[%s9343_s20 + $0xa44] ss:$16 sps:$4 sm:$0xff]  }
 0x354   : > { %8998 = vrsqrt.f32 %v3009_v55  ;;  %v2966_v1 = vadd.f32 %v2965_v32, %v2964_v28  ;;  %v2998_v2 = vadd.f32 %v2997_v59, %v2996_v0  ;;  %v3052_v18 = vrot.slane %v3032_v43, %v9646_v58  ;;  %v8511_v28 = vld [vmem:[%s9343_s20 + $0xa08] ss:$16 sps:$4 sm:$0xff]   ;;  %v8514_v55 = vld [vmem:[%s9343_s20 + $0xa20] ss:$16 sps:$4 sm:$0xff]   ;;  %v8525_v32 = vld [vmem:[%s9343_s20 + $0xa4c] ss:$16 sps:$4 sm:$0xff]  }
 0x355   : > { %v3004_v4 = vsel %vm1678_vm0, %v2968_v62, %v3000_v63  ;;  %v3028_v19 = vrot.slane %v6931_v61, %v9650_v3  ;;  %v3068_v24 = vrot.slane %v6931_v61, %v9656_v10  ;;  %v3092_v26 = vrot.slane %v3072_v13, %v9653_v7  ;;  %v8520_v59 = vld [vmem:[%s9343_s20 + $0xa40] ss:$16 sps:$4 sm:$0xff]   ;;  %v8523_v62 = vld [vmem:[%s9343_s20 + $0xa48] ss:$16 sps:$4 sm:$0xff]   ;;  %v8528_v63 = vld [vmem:[%s9343_s20 + $0xa64] ss:$16 sps:$4 sm:$0xff]  }
 0x356   : > { %v3008_v21 = vadd.f32 1e-05, %v3004_v4  ;;  %v2970_v8 = vmul.f32 0.25, %v2966_v1  ;;  %v3002_v9 = vmul.f32 0.25, %v2998_v2  ;;  %v3084_v27 = vrot.slane %v3064_v16, %v9653_v7  ;;  %v8531_v1 = vld [vmem:[%s9343_s20 + $0xa6c] ss:$16 sps:$4 sm:$0xff]  }
 0x357   : > { %v3036_v29 = vrot.slane %v6932_v5, %v9650_v3  ;;  %v3048_v31 = vrot.slane %v3028_v19, %v9646_v58  ;;  %v3076_v33 = vrot.slane %v6932_v5, %v9656_v10  ;;  %v8526_v2 = vld [vmem:[%s9343_s20 + $0xa60] ss:$16 sps:$4 sm:$0xff]   ;;  %v8529_v61 = vld [vmem:[%s9343_s20 + $0xa68] ss:$16 sps:$4 sm:$0xff]   ;;  %v8534_v4 = vld [vmem:[%s9343_s20 + $0xa84] ss:$16 sps:$4 sm:$0xff]  }
 0x358   : > { %9000 = vrsqrt.f32 %v3008_v21  ;;  %v3006_v11 = vsel %vm1678_vm0, %v2970_v8, %v3002_v9  ;;  %v8537_v5 = vld [vmem:[%s9343_s20 + $0xa8c] ss:$16 sps:$4 sm:$0xff]   ;;  %v8532_v21 = vld [vmem:[%s9343_s20 + $0xa80] ss:$16 sps:$4 sm:$0xff]   ;;  %v8535_v8 = vld [vmem:[%s9343_s20 + $0xa88] ss:$16 sps:$4 sm:$0xff]  }
 0x359   : > { %v3010_v12 = vadd.f32 1e-05, %v3006_v11  ;;  %v3056_v38 = vrot.slane %v3036_v29, %v9646_v58  ;;  %v3096_v45 = vrot.slane %v3076_v33, %v9653_v7  ;;  %v8540_v9 = vld [vmem:[%s9343_s20 + $0xaa4] ss:$16 sps:$4 sm:$0xff]   ;;  %v8538_v11 = vld [vmem:[%s9343_s20 + $0xaa0] ss:$16 sps:$4 sm:$0xff]  }
 0x35a   : > { %v8541_v43 = vld [vmem:[%s9343_s20 + $0xaa8] ss:$16 sps:$4 sm:$0xff]   ;;  %v8549_v13 = vld [vmem:[%s9343_s20 + $0xacc] ss:$16 sps:$4 sm:$0xff]   ;;  %v8550_v19 = vld [vmem:[%s9343_s20 + $0xae0] ss:$16 sps:$4 sm:$0xff]  }
 0x35b   : > { %9002 = vrsqrt.f32 %v3010_v12  ;;  %v8546_v12 = vld [vmem:[%s9343_s20 + $0xac4] ss:$16 sps:$4 sm:$0xff]   ;;  %v8547_v16 = vld [vmem:[%s9343_s20 + $0xac8] ss:$16 sps:$4 sm:$0xff]   ;;  %v8562_v29 = vld [vmem:[%s9343_s20 + $0xb20] ss:$16 sps:$4 sm:$0xff]  }
 0x35c   : > { %v8568_v33 = vld [vmem:[%s9343_s20 + $0xb40] ss:$16 sps:$4 sm:$0xff]  }
 0x35d   : > { %v8997_v17 = vpop.eup %8996 }
 0x35e   : > { %v8999_v20 = vpop.eup %8998  ;;  %v3015_v22 = vmul.f32 %v8997_v17, %v9865_v42  ;;  %v8552_v17 = vld [vmem:[%s9343_s20 + $0xae4] ss:$16 sps:$4 sm:$0xff]  }
 0x35f   : > { %v3017_v23 = vmul.f32 %v8999_v20, %v9868_v44  ;;  %v3088_v44 = vrot.slane %v3068_v24, %v9653_v7  ;;  %v8553_v20 = vld [vmem:[%s9343_s20 + $0xae8] ss:$16 sps:$4 sm:$0xff]   ;;  %v8556_v24 = vld [vmem:[%s9343_s20 + $0xb00] ss:$16 sps:$4 sm:$0xff]  }
 0x360   : > { %v3057_v6 = vmul.f32 %v3044_v15, %v3015_v22  ;;  %v8544_v15 = vld [vmem:[%s9343_s20 + $0xac0] ss:$16 sps:$4 sm:$0xff]   ;;  %v8558_v22 = vld [vmem:[%s9343_s20 + $0xb04] ss:$16 sps:$4 sm:$0xff]  }
 0x361   : > { %v3059_v30 = vmul.f32 %v3052_v18, %v3017_v23  ;;  %v8555_v18 = vld [vmem:[%s9343_s20 + $0xaec] ss:$16 sps:$4 sm:$0xff]  }
 0x362   : > { %v9001_v54 = vpop.eup %9000  ;;  %v3097_v35 = vadd.f32 %v3084_v27, %v3057_v6  ;;  %v8561_v23 = vld [vmem:[%s9343_s20 + $0xb0c] ss:$16 sps:$4 sm:$0xff]   ;;  %v8564_v6 = vld [vmem:[%s9343_s20 + $0xb24] ss:$16 sps:$4 sm:$0xff]  }
 0x363   : > { %v3016_v42 = vmul.f32 %v9001_v54, %v9877_v14  ;;  %v9931_v34 = vadd.f32 %v3092_v26, %v3059_v30  ;;  %v8559_v26 = vld [vmem:[%s9343_s20 + $0xb08] ss:$16 sps:$4 sm:$0xff]   ;;  %v8567_v27 = vld [vmem:[%s9343_s20 + $0xb2c] ss:$16 sps:$4 sm:$0xff]  }
 0x364   : > { %v3101_v47 = vmax.f32 %v3097_v35, 0.0  ;;  %v8565_v30 = vld [vmem:[%s9343_s20 + $0xb28] ss:$16 sps:$4 sm:$0xff]   ;;  %v8573_v54 = vld [vmem:[%s9343_s20 + $0xb4c] ss:$16 sps:$4 sm:$0xff]  }
 0x365   : > { %v9003_v39 = vpop.eup %9002  ;;  %v3058_v40 = vmul.f32 %v3048_v31, %v3016_v42  ;;  %v8570_v31 = vld [vmem:[%s9343_s20 + $0xb44] ss:$16 sps:$4 sm:$0xff]   ;;  %v8571_v42 = vld [vmem:[%s9343_s20 + $0xb48] ss:$16 sps:$4 sm:$0xff]   ;;  %v8579_v35 = vld [vmem:[%s9343_s20 + $0xb6c] ss:$16 sps:$4 sm:$0xff]  }
 0x366   : > { %v3018_v41 = vmul.f32 %v9003_v39, %v9892_v60  ;;  %v3237_v0 = vpack.c.bf16 %v3101_v47, %v3101_v47  ;;  %v8519_v60 = vld [vmem:[%s9343_s20 + $0xa2c] ss:$16 sps:$4 sm:$0xff]   ;;  %v8577_v39 = vld [vmem:[%s9343_s20 + $0xb68] ss:$16 sps:$4 sm:$0xff]   ;;  %v8588_v47 = vld [vmem:[%s9343_s20 + $0xba4] ss:$16 sps:$4 sm:$0xff]  }
 0x367   : > { %v3098_v46 = vadd.f32 %v3088_v44, %v3058_v40  ;;  %v8576_v44 = vld [vmem:[%s9343_s20 + $0xb64] ss:$16 sps:$4 sm:$0xff]  }
 0x368   : > { %v3060_v48 = vmul.f32 %v3056_v38, %v3018_v41  ;;  %v8574_v38 = vld [vmem:[%s9343_s20 + $0xb60] ss:$16 sps:$4 sm:$0xff]   ;;  %v8582_v40 = vld [vmem:[%s9343_s20 + $0xb84] ss:$16 sps:$4 sm:$0xff]   ;;  %v8585_v41 = vld [vmem:[%s9343_s20 + $0xb8c] ss:$16 sps:$4 sm:$0xff]  }
 0x369   : > { %v3102_v14 = vmax.f32 %v3098_v46, 0.0  ;;  %v8583_v46 = vld [vmem:[%s9343_s20 + $0xb88] ss:$16 sps:$4 sm:$0xff]  }
 0x36a   : > { %v3100_v49 = vadd.f32 %v3096_v45, %v3060_v48  ;;  %v8580_v45 = vld [vmem:[%s9343_s20 + $0xb80] ss:$16 sps:$4 sm:$0xff]   ;;  %v8591_v48 = vld [vmem:[%s9343_s20 + $0xbac] ss:$16 sps:$4 sm:$0xff]  }
 0x36b   : > { %v3238_v50 = vpack.c.bf16 %v3102_v14, %v3102_v14  ;;  %v8586_v14 = vld [vmem:[%s9343_s20 + $0xba0] ss:$16 sps:$4 sm:$0xff]  }
 0x36c   : > { %v3104_v52 = vmax.f32 %v3100_v49, 0.0  ;;  %v8589_v49 = vld [vmem:[%s9343_s20 + $0xba8] ss:$16 sps:$4 sm:$0xff]  }
 0x36d   : > { %3913 = vmatprep.mubr.bf16.mxu0 %v3238_v50  ;;  %3995 = vmatprep.mubr.bf16.mxu1 %v3238_v50  ;;  %v8594_v50 = vld [vmem:[%s9343_s20 + $0xbc4] ss:$16 sps:$4 sm:$0xff]  }
 0x36e   : > { %3914 = vmatmul.mubr.bf16.vlgmr.msra.gmra.mrb[12].mxu0 %v3237_v0  ;;  %3996 = vmatmul.mubr.bf16.vlgmr.msra.gmra.mrb[12].mxu1 %v3237_v0  ;;  %v3240_v36 = vpack.c.bf16 %v3104_v52, %v3104_v52  ;;  %v8595_v0 = vld [vmem:[%s9343_s20 + $0xbc8] ss:$16 sps:$4 sm:$0xff]   ;;  %v8600_v52 = vld [vmem:[%s9343_s20 + $0xbe4] ss:$16 sps:$4 sm:$0xff]  }
 0x36f   : > { %3923 = vmatpush1.bf16.msra.mxu0 %v8508_v51  ;;  %4005 = vmatpush1.bf16.msra.mxu1 %v8511_v28  ;;  %v8597_v51 = vld [vmem:[%s9343_s20 + $0xbcc] ss:$16 sps:$4 sm:$0xff]   ;;  %v8592_v28 = vld [vmem:[%s9343_s20 + $0xbc0] ss:$16 sps:$4 sm:$0xff]  }
 0x370   : > { %3954 = vmatprep.mubr.bf16.mxu0 %v3240_v36  ;;  %4036 = vmatprep.mubr.bf16.mxu1 %v3240_v36  ;;  %v8601_v36 = vld [vmem:[%s9343_s20 + $0xbe8] ss:$16 sps:$4 sm:$0xff]  }
 0x371   : > { %3924 = vmatprep.subr.bf16.mxu0 %v8516_v53  ;;  %4006 = vmatprep.subr.bf16.mxu1 %v8519_v60  ;;  %v8603_v53 = vld [vmem:[%s9343_s20 + $0xbec] ss:$16 sps:$4 sm:$0xff]   ;;  %v8598_v60 = vld [vmem:[%s9343_s20 + $0xbe0] ss:$16 sps:$4 sm:$0xff]  }
 0x373   : > { %3925 = vmatpush1.bf16.msra.mxu0 %v8514_v55  ;;  %4007 = vmatpush1.bf16.msra.mxu1 %v8517_v56  ;;  %v3103_v55 = vmax.f32 %v9931_v34, 0.0  ;;  %v8606_v56 = vld [vmem:[%s9343_s20 + $0xc04] ss:$16 sps:$4 sm:$0xff]   ;;  %v8610_v34 = vld [vmem:[%s9343_s20 + $0xc20] ss:$16 sps:$4 sm:$0xff]  }
 0x374   : > { %3926 = vmatprep.subr.bf16.mxu0 %v8522_v37  ;;  %4008 = vmatprep.subr.bf16.mxu1 %v8525_v32  ;;  %v8609_v37 = vld [vmem:[%s9343_s20 + $0xc0c] ss:$16 sps:$4 sm:$0xff]   ;;  %v8604_v32 = vld [vmem:[%s9343_s20 + $0xc00] ss:$16 sps:$4 sm:$0xff]  }
 0x377   : > { %3927 = vmatpush1.bf16.msra.mxu0 %v8520_v59  ;;  %4009 = vmatpush1.bf16.msra.mxu1 %v8523_v62  ;;  %v8607_v59 = vld [vmem:[%s9343_s20 + $0xc08] ss:$16 sps:$4 sm:$0xff]   ;;  %v3239_v62 = vpack.c.bf16 %v3103_v55, %v3103_v55  ;;  %v8693_v55 = vld [vmem:[%s9343_s20 + $0xdcc] ss:$16 sps:$4 sm:$0xff]  }
 0x378   : > { %3928 = vmatprep.subr.bf16.mxu0 %v8528_v63  ;;  %4010 = vmatprep.subr.bf16.mxu1 %v8531_v1  ;;  %v8612_v63 = vld [vmem:[%s9343_s20 + $0xc24] ss:$16 sps:$4 sm:$0xff]   ;;  %v8615_v1 = vld [vmem:[%s9343_s20 + $0xc2c] ss:$16 sps:$4 sm:$0xff]  }
 0x37b   : > { %3929 = vmatpush1.bf16.msra.mxu0 %v8526_v2  ;;  %4011 = vmatpush1.bf16.msra.mxu1 %v8529_v61  ;;  %v8613_v2 = vld [vmem:[%s9343_s20 + $0xc28] ss:$16 sps:$4 sm:$0xff]   ;;  %v8618_v61 = vld [vmem:[%s9343_s20 + $0xc44] ss:$16 sps:$4 sm:$0xff]  }
 0x37c   : > { %3930 = vmatprep.subr.bf16.mxu0 %v8534_v4  ;;  %4012 = vmatprep.subr.bf16.mxu1 %v8537_v5  ;;  %v8621_v4 = vld [vmem:[%s9343_s20 + $0xc4c] ss:$16 sps:$4 sm:$0xff]   ;;  %v8616_v5 = vld [vmem:[%s9343_s20 + $0xc40] ss:$16 sps:$4 sm:$0xff]  }
 0x37f   : > { %3931 = vmatpush1.bf16.msra.mxu0 %v8532_v21  ;;  %4013 = vmatpush1.bf16.msra.mxu1 %v8535_v8  ;;  %v8619_v21 = vld [vmem:[%s9343_s20 + $0xc48] ss:$16 sps:$4 sm:$0xff]   ;;  %v8624_v8 = vld [vmem:[%s9343_s20 + $0xc64] ss:$16 sps:$4 sm:$0xff]  }
 0x380   : > { %3932 = vmatprep.subr.bf16.mxu0 %v8540_v9  ;;  %4014 = vmatprep.subr.bf16.mxu1 %v8543_v25  ;;  %v8627_v9 = vld [vmem:[%s9343_s20 + $0xc6c] ss:$16 sps:$4 sm:$0xff]   ;;  %v8622_v25 = vld [vmem:[%s9343_s20 + $0xc60] ss:$16 sps:$4 sm:$0xff]  }
 0x383   : > { %3933 = vmatpush1.bf16.msra.mxu0 %v8538_v11  ;;  %4015 = vmatpush1.bf16.msra.mxu1 %v8541_v43  ;;  %v8625_v11 = vld [vmem:[%s9343_s20 + $0xc68] ss:$16 sps:$4 sm:$0xff]   ;;  %v8630_v43 = vld [vmem:[%s9343_s20 + $0xc84] ss:$16 sps:$4 sm:$0xff]  }
 0x384   : > { %3934 = vmatprep.subr.bf16.mxu0 %v8546_v12  ;;  %4016 = vmatprep.subr.bf16.mxu1 %v8549_v13  ;;  %v8633_v12 = vld [vmem:[%s9343_s20 + $0xc8c] ss:$16 sps:$4 sm:$0xff]   ;;  %v8628_v13 = vld [vmem:[%s9343_s20 + $0xc80] ss:$16 sps:$4 sm:$0xff]  }
 0x387   : > { %3935 = vmatpush1.bf16.msra.mxu0 %v8544_v15  ;;  %4017 = vmatpush1.bf16.msra.mxu1 %v8547_v16  ;;  %v8631_v15 = vld [vmem:[%s9343_s20 + $0xc88] ss:$16 sps:$4 sm:$0xff]   ;;  %v8636_v16 = vld [vmem:[%s9343_s20 + $0xca4] ss:$16 sps:$4 sm:$0xff]  }
 0x388   : > { %3936 = vmatprep.subr.bf16.mxu0 %v8552_v17  ;;  %4018 = vmatprep.subr.bf16.mxu1 %v8555_v18  ;;  %v8639_v17 = vld [vmem:[%s9343_s20 + $0xcac] ss:$16 sps:$4 sm:$0xff]   ;;  %v8634_v18 = vld [vmem:[%s9343_s20 + $0xca0] ss:$16 sps:$4 sm:$0xff]  }
 0x38b   : > { %3937 = vmatpush1.bf16.msra.mxu0 %v8550_v19  ;;  %4019 = vmatpush1.bf16.msra.mxu1 %v8553_v20  ;;  %v8637_v19 = vld [vmem:[%s9343_s20 + $0xca8] ss:$16 sps:$4 sm:$0xff]   ;;  %v8642_v20 = vld [vmem:[%s9343_s20 + $0xcc4] ss:$16 sps:$4 sm:$0xff]  }
 0x38c   : > { %3938 = vmatprep.subr.bf16.mxu0 %v8558_v22  ;;  %4020 = vmatprep.subr.bf16.mxu1 %v8561_v23  ;;  %v8645_v22 = vld [vmem:[%s9343_s20 + $0xccc] ss:$16 sps:$4 sm:$0xff]   ;;  %v8640_v23 = vld [vmem:[%s9343_s20 + $0xcc0] ss:$16 sps:$4 sm:$0xff]  }
 0x38f   : > { %3939 = vmatpush1.bf16.msra.mxu0 %v8556_v24  ;;  %4021 = vmatpush1.bf16.msra.mxu1 %v8559_v26  ;;  %v8643_v24 = vld [vmem:[%s9343_s20 + $0xcc8] ss:$16 sps:$4 sm:$0xff]   ;;  %v8648_v26 = vld [vmem:[%s9343_s20 + $0xce4] ss:$16 sps:$4 sm:$0xff]  }
 0x390   : > { %3940 = vmatprep.subr.bf16.mxu0 %v8564_v6  ;;  %4022 = vmatprep.subr.bf16.mxu1 %v8567_v27  ;;  %v8651_v6 = vld [vmem:[%s9343_s20 + $0xcec] ss:$16 sps:$4 sm:$0xff]   ;;  %v8646_v27 = vld [vmem:[%s9343_s20 + $0xce0] ss:$16 sps:$4 sm:$0xff]  }
 0x393   : > { %3941 = vmatpush1.bf16.msra.mxu0 %v8562_v29  ;;  %4023 = vmatpush1.bf16.msra.mxu1 %v8565_v30  ;;  %v8649_v29 = vld [vmem:[%s9343_s20 + $0xce8] ss:$16 sps:$4 sm:$0xff]   ;;  %v8654_v30 = vld [vmem:[%s9343_s20 + $0xd04] ss:$16 sps:$4 sm:$0xff]  }
 0x394   : > { %3942 = vmatprep.subr.bf16.mxu0 %v8570_v31  ;;  %4024 = vmatprep.subr.bf16.mxu1 %v8573_v54  ;;  %v8657_v31 = vld [vmem:[%s9343_s20 + $0xd0c] ss:$16 sps:$4 sm:$0xff]   ;;  %v8652_v54 = vld [vmem:[%s9343_s20 + $0xd00] ss:$16 sps:$4 sm:$0xff]  }
 0x397   : > { %3943 = vmatpush1.bf16.msra.mxu0 %v8568_v33  ;;  %4025 = vmatpush1.bf16.msra.mxu1 %v8571_v42  ;;  %v8655_v33 = vld [vmem:[%s9343_s20 + $0xd08] ss:$16 sps:$4 sm:$0xff]   ;;  %v8660_v42 = vld [vmem:[%s9343_s20 + $0xd24] ss:$16 sps:$4 sm:$0xff]  }
 0x398   : > { %3944 = vmatprep.subr.bf16.mxu0 %v8576_v44  ;;  %4026 = vmatprep.subr.bf16.mxu1 %v8579_v35  ;;  %v8663_v44 = vld [vmem:[%s9343_s20 + $0xd2c] ss:$16 sps:$4 sm:$0xff]   ;;  %v8658_v35 = vld [vmem:[%s9343_s20 + $0xd20] ss:$16 sps:$4 sm:$0xff]  }
 0x39b   : > { %3945 = vmatpush1.bf16.msra.mxu0 %v8574_v38  ;;  %4027 = vmatpush1.bf16.msra.mxu1 %v8577_v39  ;;  %v8661_v38 = vld [vmem:[%s9343_s20 + $0xd28] ss:$16 sps:$4 sm:$0xff]   ;;  %v8666_v39 = vld [vmem:[%s9343_s20 + $0xd44] ss:$16 sps:$4 sm:$0xff]  }
 0x39c   : > { %3946 = vmatprep.subr.bf16.mxu0 %v8582_v40  ;;  %4028 = vmatprep.subr.bf16.mxu1 %v8585_v41  ;;  %v8669_v40 = vld [vmem:[%s9343_s20 + $0xd4c] ss:$16 sps:$4 sm:$0xff]   ;;  %v8664_v41 = vld [vmem:[%s9343_s20 + $0xd40] ss:$16 sps:$4 sm:$0xff]  }
 0x39f   : > { %3947 = vmatpush1.bf16.msra.mxu0 %v8580_v45  ;;  %4029 = vmatpush1.bf16.msra.mxu1 %v8583_v46  ;;  %v8667_v45 = vld [vmem:[%s9343_s20 + $0xd48] ss:$16 sps:$4 sm:$0xff]   ;;  %v8672_v46 = vld [vmem:[%s9343_s20 + $0xd64] ss:$16 sps:$4 sm:$0xff]  }
 0x3a0   : > { %3948 = vmatprep.subr.bf16.mxu0 %v8588_v47  ;;  %4030 = vmatprep.subr.bf16.mxu1 %v8591_v48  ;;  %v8675_v47 = vld [vmem:[%s9343_s20 + $0xd6c] ss:$16 sps:$4 sm:$0xff]   ;;  %v8670_v48 = vld [vmem:[%s9343_s20 + $0xd60] ss:$16 sps:$4 sm:$0xff]  }
 0x3a3   : > { %3949 = vmatpush1.bf16.msra.mxu0 %v8586_v14  ;;  %4031 = vmatpush1.bf16.msra.mxu1 %v8589_v49  ;;  %v8673_v14 = vld [vmem:[%s9343_s20 + $0xd68] ss:$16 sps:$4 sm:$0xff]   ;;  %v8678_v49 = vld [vmem:[%s9343_s20 + $0xd84] ss:$16 sps:$4 sm:$0xff]  }
 0x3a4   : > { %3950 = vmatprep.subr.bf16.mxu0 %v8594_v50  ;;  %4032 = vmatprep.subr.bf16.mxu1 %v8597_v51  ;;  %v8681_v50 = vld [vmem:[%s9343_s20 + $0xd8c] ss:$16 sps:$4 sm:$0xff]   ;;  %v8676_v51 = vld [vmem:[%s9343_s20 + $0xd80] ss:$16 sps:$4 sm:$0xff]  }
 0x3a7   : > { %3951 = vmatpush1.bf16.msra.mxu0 %v8592_v28  ;;  %4033 = vmatpush1.bf16.msra.mxu1 %v8595_v0  ;;  %v8679_v28 = vld [vmem:[%s9343_s20 + $0xd88] ss:$16 sps:$4 sm:$0xff]   ;;  %v8684_v0 = vld [vmem:[%s9343_s20 + $0xda4] ss:$16 sps:$4 sm:$0xff]  }
 0x3a8   : > { %3952 = vmatprep.subr.bf16.mxu0 %v8600_v52  ;;  %4034 = vmatprep.subr.bf16.mxu1 %v8603_v53  ;;  %v8687_v52 = vld [vmem:[%s9343_s20 + $0xdac] ss:$16 sps:$4 sm:$0xff]   ;;  %v8682_v53 = vld [vmem:[%s9343_s20 + $0xda0] ss:$16 sps:$4 sm:$0xff]  }
 0x3ab   : > { %3953 = vmatpush1.bf16.msra.mxu0 %v8598_v60  ;;  %4035 = vmatpush1.bf16.msra.mxu1 %v8601_v36  ;;  %v8685_v60 = vld [vmem:[%s9343_s20 + $0xda8] ss:$16 sps:$4 sm:$0xff]   ;;  %v8690_v36 = vld [vmem:[%s9343_s20 + $0xdc4] ss:$16 sps:$4 sm:$0xff]  }
 0x3ac   : > { %5059 = vmatprep.subr.bf16.mxu0 %v8606_v56  ;;  %5141 = vmatprep.subr.bf16.mxu1 %v8609_v37  ;;  %v8688_v56 = vld [vmem:[%s9343_s20 + $0xdc0] ss:$16 sps:$4 sm:$0xff]   ;;  %v8691_v37 = vld [vmem:[%s9343_s20 + $0xdc8] ss:$16 sps:$4 sm:$0xff]  }
 0x3ae   : > { %3955 = vmatmul.mubr.bf16.vlgmr.msra.gmra.mrb[12].mxu0 %v3239_v62  ;;  %4037 = vmatmul.mubr.bf16.vlgmr.msra.gmra.mrb[12].mxu1 %v3239_v62  ;;  %v8697_v62 = vld [vmem:[%s9343_s20 + $0xde8] ss:$16 sps:$4 sm:$0xff]  }
 0x3af   : > { %5060 = vmatpush1.bf16.msra.mxu0 %v8604_v32  ;;  %5142 = vmatpush1.bf16.msra.mxu1 %v8607_v59  ;;  %v8694_v32 = vld [vmem:[%s9343_s20 + $0xde0] ss:$16 sps:$4 sm:$0xff]   ;;  %v8696_v59 = vld [vmem:[%s9343_s20 + $0xde4] ss:$16 sps:$4 sm:$0xff]  }
 0x3b0   : > { %5061 = vmatprep.subr.bf16.mxu0 %v8612_v63  ;;  %5143 = vmatprep.subr.bf16.mxu1 %v8615_v1  ;;  %v8699_v63 = vld [vmem:[%s9343_s20 + $0xdec] ss:$16 sps:$4 sm:$0xff]   ;;  %v8702_v1 = vld [vmem:[%s9343_s20 + $0xe04] ss:$16 sps:$4 sm:$0xff]  }
 0x3b3   : > { %5062 = vmatpush1.bf16.msra.mxu0 %v8610_v34  ;;  %5144 = vmatpush1.bf16.msra.mxu1 %v8613_v2  ;;  %v8705_v34 = vld [vmem:[%s9343_s20 + $0xe0c] ss:$16 sps:$4 sm:$0xff]  }
 0x3b4   : > { %5063 = vmatprep.subr.bf16.mxu0 %v8618_v61  ;;  %5145 = vmatprep.subr.bf16.mxu1 %v8621_v4 }
 0x3b7   : > { %5064 = vmatpush1.bf16.msra.mxu0 %v8616_v5  ;;  %5146 = vmatpush1.bf16.msra.mxu1 %v8619_v21 }
 0x3b8   : > { %5065 = vmatprep.subr.bf16.mxu0 %v8624_v8  ;;  %5147 = vmatprep.subr.bf16.mxu1 %v8627_v9 }
 0x3bb   : > { %5066 = vmatpush1.bf16.msra.mxu0 %v8622_v25  ;;  %5148 = vmatpush1.bf16.msra.mxu1 %v8625_v11 }
 0x3bc   : > { %5067 = vmatprep.subr.bf16.mxu0 %v8630_v43  ;;  %5149 = vmatprep.subr.bf16.mxu1 %v8633_v12 }
 0x3bf   : > { %5068 = vmatpush1.bf16.msra.mxu0 %v8628_v13  ;;  %5150 = vmatpush1.bf16.msra.mxu1 %v8631_v15 }
 0x3c0   : > { %5069 = vmatprep.subr.bf16.mxu0 %v8636_v16  ;;  %5151 = vmatprep.subr.bf16.mxu1 %v8639_v17 }
 0x3c3   : > { %5070 = vmatpush1.bf16.msra.mxu0 %v8634_v18  ;;  %5152 = vmatpush1.bf16.msra.mxu1 %v8637_v19 }
 0x3c4   : > { %5071 = vmatprep.subr.bf16.mxu0 %v8642_v20  ;;  %5153 = vmatprep.subr.bf16.mxu1 %v8645_v22 }
 0x3c7   : > { %5072 = vmatpush1.bf16.msra.mxu0 %v8640_v23  ;;  %5154 = vmatpush1.bf16.msra.mxu1 %v8643_v24 }
 0x3c8   : > { %5073 = vmatprep.subr.bf16.mxu0 %v8648_v26  ;;  %5155 = vmatprep.subr.bf16.mxu1 %v8651_v6 }
 0x3cb   : > { %5074 = vmatpush1.bf16.msra.mxu0 %v8646_v27  ;;  %5156 = vmatpush1.bf16.msra.mxu1 %v8649_v29 }
 0x3cc   : > { %5075 = vmatprep.subr.bf16.mxu0 %v8654_v30  ;;  %5157 = vmatprep.subr.bf16.mxu1 %v8657_v31 }
 0x3cf   : > { %5076 = vmatpush1.bf16.msra.mxu0 %v8652_v54  ;;  %5158 = vmatpush1.bf16.msra.mxu1 %v8655_v33 }
 0x3d0   : > { %5077 = vmatprep.subr.bf16.mxu0 %v8660_v42  ;;  %5159 = vmatprep.subr.bf16.mxu1 %v8663_v44 }
 0x3d3   : > { %5078 = vmatpush1.bf16.msra.mxu0 %v8658_v35  ;;  %5160 = vmatpush1.bf16.msra.mxu1 %v8661_v38 }
 0x3d4   : > { %5079 = vmatprep.subr.bf16.mxu0 %v8666_v39  ;;  %5161 = vmatprep.subr.bf16.mxu1 %v8669_v40 }
 0x3d7   : > { %5080 = vmatpush1.bf16.msra.mxu0 %v8664_v41  ;;  %5162 = vmatpush1.bf16.msra.mxu1 %v8667_v45 }
 0x3d8   : > { %5081 = vmatprep.subr.bf16.mxu0 %v8672_v46  ;;  %5163 = vmatprep.subr.bf16.mxu1 %v8675_v47 }
 0x3db   : > { %5082 = vmatpush1.bf16.msra.mxu0 %v8670_v48  ;;  %5164 = vmatpush1.bf16.msra.mxu1 %v8673_v14 }
 0x3dc   : > { %5083 = vmatprep.subr.bf16.mxu0 %v8678_v49  ;;  %5165 = vmatprep.subr.bf16.mxu1 %v8681_v50 }
 0x3df   : > { %5084 = vmatpush1.bf16.msra.mxu0 %v8676_v51  ;;  %5166 = vmatpush1.bf16.msra.mxu1 %v8679_v28 }
 0x3e0   : > { %5085 = vmatprep.subr.bf16.mxu0 %v8684_v0  ;;  %5167 = vmatprep.subr.bf16.mxu1 %v8687_v52 }
 0x3e3   : > { %5086 = vmatpush1.bf16.msra.mxu0 %v8682_v53  ;;  %5168 = vmatpush1.bf16.msra.mxu1 %v8685_v60 }
 0x3e4   : > { %5087 = vmatprep.subr.bf16.mxu0 %v8690_v36  ;;  %5169 = vmatprep.subr.bf16.mxu1 %v8693_v55 }
 0x3e7   : > { %5088 = vmatpush1.bf16.msra.mxu0 %v8688_v56  ;;  %5170 = vmatpush1.bf16.msra.mxu1 %v8691_v37 }
 0x3e8   : > { %5089 = vmatprep.subr.bf16.mxu0 %v8696_v59  ;;  %5171 = vmatprep.subr.bf16.mxu1 %v8699_v63 }
 0x3eb   : > { %5090 = vmatpush1.bf16.msra.mxu0 %v8694_v32  ;;  %5172 = vmatpush1.bf16.msra.mxu1 %v8697_v62 }
 0x3ec   : > { %5100 = vmatprep.subr.bf16.mxu0 %v8702_v1  ;;  %5182 = vmatprep.subr.bf16.mxu1 %v8705_v34 }
 0x481   : > { %v10065_v2 = vpop.f32.mrb[12].mxu0  ;;  %v10067_v61 = vpop.f32.mrb[12].mxu1 }
 0x482   : > { %v4045_v4 = vsel %vm1678_vm0, %v10065_v2, 0.0  ;;  %v4077_v5 = vsel %vm1678_vm0, 0.0, %v10065_v2  ;;  %v4047_v21 = vsel %vm1678_vm0, %v10067_v61, 0.0  ;;  %v4079_v8 = vsel %vm1678_vm0, 0.0, %v10067_v61  ;;  %v10081_v9 = vpop.f32.mrb[13].mxu0  ;;  %v10083_v25 = vpop.f32.mrb[13].mxu1 }
 0x483   : > { %v4049_v11 = vrot.slane %v4045_v4, 4  ;;  %v4081_v43 = vrot.slane %v4077_v5, 4  ;;  %v4061_v12 = vrot.slane %v4047_v21, 4  ;;  %v4093_v13 = vrot.slane %v4079_v8, 4  ;;  %v3960_v15 = vpop.f32.mrb[14].mxu0  ;;  %v4042_v16 = vpop.f32.mrb[14].mxu1 }
 0x484   : > { %v4046_v17 = vsel %vm1678_vm0, %v10081_v9, 0.0  ;;  %v4078_v18 = vsel %vm1678_vm0, 0.0, %v10081_v9  ;;  %v4048_v19 = vsel %vm1678_vm0, %v10083_v25, 0.0  ;;  %v4080_v20 = vsel %vm1678_vm0, 0.0, %v10083_v25  ;;  %v3961_v22 = vpop.f32.mrb[15].mxu0  ;;  %v4043_v23 = vpop.f32.mrb[15].mxu1 }
 0x485   : > { %v4050_v24 = vadd.f32 %v4049_v11, %v4045_v4  ;;  %v4082_v26 = vadd.f32 %v4081_v43, %v4077_v5  ;;  %v4062_v6 = vadd.f32 %v4061_v12, %v4047_v21  ;;  %v4094_v27 = vadd.f32 %v4093_v13, %v4079_v8 }
 0x486   : > { %v4055_v29 = vrot.slane %v4046_v17, 4  ;;  %v4087_v30 = vrot.slane %v4078_v18, 4  ;;  %v4067_v31 = vrot.slane %v4048_v19, 4  ;;  %v4099_v54 = vrot.slane %v4080_v20, 4 }
 0x487   : > { %v4051_v33 = vrot.slane %v4050_v24, 2  ;;  %v4083_v42 = vrot.slane %v4082_v26, 2  ;;  %v4063_v44 = vrot.slane %v4062_v6, 2  ;;  %v4095_v35 = vrot.slane %v4094_v27, 2 }
 0x488   : > { %v4056_v38 = vadd.f32 %v4055_v29, %v4046_v17  ;;  %v4088_v39 = vadd.f32 %v4087_v30, %v4078_v18  ;;  %v4068_v40 = vadd.f32 %v4067_v31, %v4048_v19  ;;  %v4100_v41 = vadd.f32 %v4099_v54, %v4080_v20 }
 0x489   : > { %v4052_v45 = vadd.f32 %v4051_v33, %v4050_v24  ;;  %v4084_v46 = vadd.f32 %v4083_v42, %v4082_v26  ;;  %v4064_v47 = vadd.f32 %v4063_v44, %v4062_v6  ;;  %v4096_v48 = vadd.f32 %v4095_v35, %v4094_v27 }
 0x48a   : > { %v4057_v14 = vrot.slane %v4056_v38, 2  ;;  %v4089_v49 = vrot.slane %v4088_v39, 2  ;;  %v4069_v50 = vrot.slane %v4068_v40, 2  ;;  %v4101_v51 = vrot.slane %v4100_v41, 2 }
 0x48b   : > { %v4053_v28 = vrot.slane %v4052_v45, 1  ;;  %v4085_v0 = vrot.slane %v4084_v46, 1  ;;  %v4065_v52 = vrot.slane %v4064_v47, 1  ;;  %v4097_v53 = vrot.slane %v4096_v48, 1 }
 0x48c   : > { %v4058_v60 = vadd.f32 %v4057_v14, %v4056_v38  ;;  %v4090_v36 = vadd.f32 %v4089_v49, %v4088_v39  ;;  %v4070_v55 = vadd.f32 %v4069_v50, %v4068_v40  ;;  %v4102_v56 = vadd.f32 %v4101_v51, %v4100_v41 }
 0x48d   : > { %v4054_v37 = vadd.f32 %v4053_v28, %v4052_v45  ;;  %v4086_v32 = vadd.f32 %v4085_v0, %v4084_v46  ;;  %v4066_v59 = vadd.f32 %v4065_v52, %v4064_v47  ;;  %v4098_v62 = vadd.f32 %v4097_v53, %v4096_v48 }
 0x48e   : > { %v4059_v63 = vrot.slane %v4058_v60, 1  ;;  %v4091_v1 = vrot.slane %v4090_v36, 1  ;;  %v4071_v34 = vrot.slane %v4070_v55, 1  ;;  %v4103_v4 = vrot.slane %v4102_v56, 1 }
 0x48f   : > { %v4073_v5 = vmul.f32 0.25, %v4054_v37  ;;  %v4105_v21 = vmul.f32 0.25, %v4086_v32  ;;  %v4075_v8 = vmul.f32 0.25, %v4066_v59  ;;  %v4107_v11 = vmul.f32 0.25, %v4098_v62 }
 0x490   : > { %v4060_v43 = vadd.f32 %v4059_v63, %v4058_v60  ;;  %v4092_v12 = vadd.f32 %v4091_v1, %v4090_v36  ;;  %v4072_v13 = vadd.f32 %v4071_v34, %v4070_v55  ;;  %v4104_v15 = vadd.f32 %v4103_v4, %v4102_v56 }
 0x491   : > { %v4109_v16 = vsel %vm1678_vm0, %v4073_v5, %v4105_v21  ;;  %v4111_v17 = vsel %vm1678_vm0, %v4075_v8, %v4107_v11 }
 0x492   : > { %v10102_v18 = vsub.f32 %v10065_v2, %v4109_v16  ;;  %v10105_v19 = vsub.f32 %v10067_v61, %v4111_v17  ;;  %v4074_v20 = vmul.f32 0.25, %v4060_v43  ;;  %v4106_v22 = vmul.f32 0.25, %v4092_v12 }
 0x493   : > { %v4076_v23 = vmul.f32 0.25, %v4072_v13  ;;  %v4108_v24 = vmul.f32 0.25, %v4104_v15 }
 0x494   : > { %v4117_v26 = vmul.f32 %v10102_v18, %v10102_v18  ;;  %v4119_v6 = vmul.f32 %v10105_v19, %v10105_v19  ;;  %v4110_v27 = vsel %vm1678_vm0, %v4074_v20, %v4106_v22 }
 0x495   : > { %v10114_v29 = vsub.f32 %v10081_v9, %v4110_v27  ;;  %v4112_v2 = vsel %vm1678_vm0, %v4076_v23, %v4108_v24 }
 0x496   : > { %v4121_v61 = vsel %vm1678_vm0, %v4117_v26, 0.0  ;;  %v4153_v30 = vsel %vm1678_vm0, 0.0, %v4117_v26  ;;  %v4123_v31 = vsel %vm1678_vm0, %v4119_v6, 0.0  ;;  %v4155_v54 = vsel %vm1678_vm0, 0.0, %v4119_v6 }
 0x497   : > { %v4125_v33 = vrot.slane %v4121_v61, 4  ;;  %v4157_v42 = vrot.slane %v4153_v30, 4  ;;  %v4137_v44 = vrot.slane %v4123_v31, 4  ;;  %v4169_v9 = vrot.slane %v4155_v54, 4 }
 0x498   : > { %v4118_v35 = vmul.f32 %v10114_v29, %v10114_v29  ;;  %v10129_v38 = vsub.f32 %v10083_v25, %v4112_v2 }
 0x499   : > { %v4126_v39 = vadd.f32 %v4125_v33, %v4121_v61  ;;  %v4158_v40 = vadd.f32 %v4157_v42, %v4153_v30  ;;  %v4138_v41 = vadd.f32 %v4137_v44, %v4123_v31  ;;  %v4170_v45 = vadd.f32 %v4169_v9, %v4155_v54 }
 0x49a   : > { %v4122_v46 = vsel %vm1678_vm0, %v4118_v35, 0.0  ;;  %v4154_v47 = vsel %vm1678_vm0, 0.0, %v4118_v35  ;;  %v4120_v48 = vmul.f32 %v10129_v38, %v10129_v38 }
 0x49b   : > { %v4127_v14 = vrot.slane %v4126_v39, 2  ;;  %v4159_v49 = vrot.slane %v4158_v40, 2  ;;  %v4139_v50 = vrot.slane %v4138_v41, 2  ;;  %v4171_v51 = vrot.slane %v4170_v45, 2 }
 0x49c   : > { %v4131_v28 = vrot.slane %v4122_v46, 4  ;;  %v4163_v25 = vrot.slane %v4154_v47, 4  ;;  %v4124_v0 = vsel %vm1678_vm0, %v4120_v48, 0.0  ;;  %v4156_v52 = vsel %vm1678_vm0, 0.0, %v4120_v48  ;;  %v7190_v48 = vld [vmem:[%s9643_s28 + $0x28] sm:$0x77] }
 0x49d   : > { %v4128_v53 = vadd.f32 %v4127_v14, %v4126_v39  ;;  %v4160_v60 = vadd.f32 %v4159_v49, %v4158_v40  ;;  %v4140_v36 = vadd.f32 %v4139_v50, %v4138_v41  ;;  %v4172_v55 = vadd.f32 %v4171_v51, %v4170_v45 }
 0x49e   : > { %v4132_v56 = vadd.f32 %v4131_v28, %v4122_v46  ;;  %v4164_v37 = vadd.f32 %v4163_v25, %v4154_v47  ;;  %v4143_v32 = vrot.slane %v4124_v0, 4  ;;  %v4175_v59 = vrot.slane %v4156_v52, 4  ;;  %v7189_v46 = vld [vmem:[%s9643_s28 + $0x20] sm:$0x77] }
 0x49f   : > { %v4129_v62 = vrot.slane %v4128_v53, 1  ;;  %v4161_v63 = vrot.slane %v4160_v60, 1  ;;  %v4141_v1 = vrot.slane %v4140_v36, 1  ;;  %v4173_v34 = vrot.slane %v4172_v55, 1 }
 0x4a0   : > { %v4133_v4 = vrot.slane %v4132_v56, 2  ;;  %v4165_v5 = vrot.slane %v4164_v37, 2  ;;  %v4144_v21 = vadd.f32 %v4143_v32, %v4124_v0  ;;  %v4176_v8 = vadd.f32 %v4175_v59, %v4156_v52 }
 0x4a1   : > { %v4130_v11 = vadd.f32 %v4129_v62, %v4128_v53  ;;  %v4162_v43 = vadd.f32 %v4161_v63, %v4160_v60  ;;  %v4142_v12 = vadd.f32 %v4141_v1, %v4140_v36  ;;  %v4174_v13 = vadd.f32 %v4173_v34, %v4172_v55 }
 0x4a2   : > { %v4134_v15 = vadd.f32 %v4133_v4, %v4132_v56  ;;  %v4166_v16 = vadd.f32 %v4165_v5, %v4164_v37  ;;  %v4145_v17 = vrot.slane %v4144_v21, 2  ;;  %v4177_v20 = vrot.slane %v4176_v8, 2 }
 0x4a3   : > { %v4149_v22 = vmul.f32 0.25, %v4130_v11  ;;  %v4181_v23 = vmul.f32 0.25, %v4162_v43  ;;  %v4151_v24 = vmul.f32 0.25, %v4142_v12  ;;  %v4183_v26 = vmul.f32 0.25, %v4174_v13 }
 0x4a4   : > { %v4135_v6 = vrot.slane %v4134_v15, 1  ;;  %v4167_v27 = vrot.slane %v4166_v16, 1  ;;  %v4146_v2 = vadd.f32 %v4145_v17, %v4144_v21  ;;  %v4178_v61 = vadd.f32 %v4177_v20, %v4176_v8 }
 0x4a5   : > { %v4185_v30 = vsel %vm1678_vm0, %v4149_v22, %v4181_v23  ;;  %v4187_v31 = vsel %vm1678_vm0, %v4151_v24, %v4183_v26  ;;  %v4206_v51 = vrot.slane %v7189_v46, %v9646_v58  ;;  %v4214_v25 = vrot.slane %v7190_v48, %v9646_v58  ;;  %v8700_v24 = vld [vmem:[%s9343_s20 + $0xe00] ss:$16 sps:$4 sm:$0xff]   ;;  %v8703_v26 = vld [vmem:[%s9343_s20 + $0xe08] ss:$16 sps:$4 sm:$0xff]  }
 0x4a6   : > { %v4189_v54 = vadd.f32 1e-05, %v4185_v30  ;;  %v4191_v33 = vadd.f32 1e-05, %v4187_v31  ;;  %v4136_v42 = vadd.f32 %v4135_v6, %v4134_v15  ;;  %v4168_v44 = vadd.f32 %v4167_v27, %v4166_v16  ;;  %v8706_v30 = vld [vmem:[%s9343_s20 + $0xe20] ss:$16 sps:$4 sm:$0xff]  }
 0x4a7   : > { %v4147_v9 = vrot.slane %v4146_v2, 1  ;;  %v4179_v35 = vrot.slane %v4178_v61, 1  ;;  %v4246_v52 = vrot.slane %v7189_v46, %v9653_v7  ;;  %v4254_v53 = vrot.slane %v7190_v48, %v9653_v7  ;;  %v8709_v31 = vld [vmem:[%s9343_s20 + $0xe28] ss:$16 sps:$4 sm:$0xff]  }
 0x4a8   : > { %9004 = vrsqrt.f32 %v4189_v54  ;;  %v4150_v39 = vmul.f32 0.25, %v4136_v42  ;;  %v4182_v40 = vmul.f32 0.25, %v4168_v44  ;;  %v4226_v60 = vrot.slane %v4206_v51, %v9646_v58  ;;  %v8714_v54 = vld [vmem:[%s9343_s20 + $0xe44] ss:$16 sps:$4 sm:$0xff]   ;;  %v8712_v42 = vld [vmem:[%s9343_s20 + $0xe40] ss:$16 sps:$4 sm:$0xff]  }
 0x4a9   : > { %9006 = vrsqrt.f32 %v4191_v33  ;;  %v4148_v41 = vadd.f32 %v4147_v9, %v4146_v2  ;;  %v4180_v45 = vadd.f32 %v4179_v35, %v4178_v61  ;;  %v4234_v55 = vrot.slane %v4214_v25, %v9646_v58  ;;  %v8708_v2 = vld [vmem:[%s9343_s20 + $0xe24] ss:$16 sps:$4 sm:$0xff]   ;;  %v8711_v61 = vld [vmem:[%s9343_s20 + $0xe2c] ss:$16 sps:$4 sm:$0xff]   ;;  %v8715_v44 = vld [vmem:[%s9343_s20 + $0xe48] ss:$16 sps:$4 sm:$0xff]  }
 0x4aa   : > { %v4186_v47 = vsel %vm1678_vm0, %v4150_v39, %v4182_v40  ;;  %v4210_v56 = vrot.slane %v7189_v46, %v9650_v3  ;;  %v4266_v59 = vrot.slane %v4246_v52, %v9653_v7  ;;  %v4250_v63 = vrot.slane %v7189_v46, %v9656_v10  ;;  %v8717_v33 = vld [vmem:[%s9343_s20 + $0xe4c] ss:$16 sps:$4 sm:$0xff]   ;;  %v8720_v9 = vld [vmem:[%s9343_s20 + $0xe64] ss:$16 sps:$4 sm:$0xff]   ;;  %v8718_v39 = vld [vmem:[%s9343_s20 + $0xe60] ss:$16 sps:$4 sm:$0xff]  }
 0x4ab   : > { %v4190_v14 = vadd.f32 1e-05, %v4186_v47  ;;  %v4152_v49 = vmul.f32 0.25, %v4148_v41  ;;  %v4184_v50 = vmul.f32 0.25, %v4180_v45  ;;  %v4274_v1 = vrot.slane %v4254_v53, %v9653_v7  ;;  %v8723_v35 = vld [vmem:[%s9343_s20 + $0xe6c] ss:$16 sps:$4 sm:$0xff]  }
 0x4ac   : > { %v4218_v4 = vrot.slane %v7190_v48, %v9650_v3  ;;  %v4258_v8 = vrot.slane %v7190_v48, %v9656_v10  ;;  %v4270_v43 = vrot.slane %v4250_v63, %v9653_v7  ;;  %v8721_v40 = vld [vmem:[%s9343_s20 + $0xe68] ss:$16 sps:$4 sm:$0xff]   ;;  %v8726_v41 = vld [vmem:[%s9343_s20 + $0xe84] ss:$16 sps:$4 sm:$0xff]   ;;  %v8729_v45 = vld [vmem:[%s9343_s20 + $0xe8c] ss:$16 sps:$4 sm:$0xff]  }
 0x4ad   : > { %9008 = vrsqrt.f32 %v4190_v14  ;;  %v4188_v28 = vsel %vm1678_vm0, %v4152_v49, %v4184_v50  ;;  %v8724_v46 = vld [vmem:[%s9343_s20 + $0xe80] ss:$16 sps:$4 sm:$0xff]   ;;  %v8727_v47 = vld [vmem:[%s9343_s20 + $0xe88] ss:$16 sps:$4 sm:$0xff]   ;;  %v8732_v48 = vld [vmem:[%s9343_s20 + $0xea4] ss:$16 sps:$4 sm:$0xff]  }
 0x4ae   : > { %v4192_v0 = vadd.f32 1e-05, %v4188_v28  ;;  %v4238_v13 = vrot.slane %v4218_v4, %v9646_v58  ;;  %v4278_v20 = vrot.slane %v4258_v8, %v9653_v7  ;;  %v8735_v14 = vld [vmem:[%s9343_s20 + $0xeac] ss:$16 sps:$4 sm:$0xff]   ;;  %v8730_v49 = vld [vmem:[%s9343_s20 + $0xea0] ss:$16 sps:$4 sm:$0xff]  }
 0x4af   : > { %v8733_v50 = vld [vmem:[%s9343_s20 + $0xea8] ss:$16 sps:$4 sm:$0xff]   ;;  %v8738_v51 = vld [vmem:[%s9343_s20 + $0xec4] ss:$16 sps:$4 sm:$0xff]   ;;  %v8741_v28 = vld [vmem:[%s9343_s20 + $0xecc] ss:$16 sps:$4 sm:$0xff]  }
 0x4b0   : > { %9010 = vrsqrt.f32 %v4192_v0  ;;  %v8736_v25 = vld [vmem:[%s9343_s20 + $0xec0] ss:$16 sps:$4 sm:$0xff]   ;;  %v8739_v0 = vld [vmem:[%s9343_s20 + $0xec8] ss:$16 sps:$4 sm:$0xff]   ;;  %v8744_v52 = vld [vmem:[%s9343_s20 + $0xee4] ss:$16 sps:$4 sm:$0xff]  }
 0x4b1   : > { %v8747_v53 = vld [vmem:[%s9343_s20 + $0xeec] ss:$16 sps:$4 sm:$0xff]   ;;  %v8754_v63 = vld [vmem:[%s9343_s20 + $0xf20] ss:$16 sps:$4 sm:$0xff]  }
 0x4b2   : > { %v9005_v36 = vpop.eup %9004  ;;  %v8765_v4 = vld [vmem:[%s9343_s20 + $0xf4c] ss:$16 sps:$4 sm:$0xff]   ;;  %v8766_v8 = vld [vmem:[%s9343_s20 + $0xf60] ss:$16 sps:$4 sm:$0xff]  }
 0x4b3   : > { %v9007_v37 = vpop.eup %9006  ;;  %v4197_v32 = vmul.f32 %v9005_v36, %v10102_v18  ;;  %v4230_v18 = vrot.slane %v4210_v56, %v9646_v58  ;;  %v8745_v36 = vld [vmem:[%s9343_s20 + $0xee8] ss:$16 sps:$4 sm:$0xff]   ;;  %v8753_v56 = vld [vmem:[%s9343_s20 + $0xf0c] ss:$16 sps:$4 sm:$0xff]  }
 0x4b4   : > { %v4199_v62 = vmul.f32 %v9007_v37, %v10105_v19  ;;  %v8748_v37 = vld [vmem:[%s9343_s20 + $0xf00] ss:$16 sps:$4 sm:$0xff]  }
 0x4b5   : > { %v4239_v34 = vmul.f32 %v4226_v60, %v4197_v32  ;;  %v8742_v60 = vld [vmem:[%s9343_s20 + $0xee0] ss:$16 sps:$4 sm:$0xff]   ;;  %v8751_v32 = vld [vmem:[%s9343_s20 + $0xf08] ss:$16 sps:$4 sm:$0xff]  }
 0x4b6   : > { %v4241_v5 = vmul.f32 %v4234_v55, %v4199_v62  ;;  %v8750_v55 = vld [vmem:[%s9343_s20 + $0xf04] ss:$16 sps:$4 sm:$0xff]   ;;  %v8759_v62 = vld [vmem:[%s9343_s20 + $0xf2c] ss:$16 sps:$4 sm:$0xff]  }
 0x4b7   : > { %v9009_v21 = vpop.eup %9008  ;;  %v4279_v19 = vadd.f32 %v4266_v59, %v4239_v34  ;;  %v8756_v59 = vld [vmem:[%s9343_s20 + $0xf24] ss:$16 sps:$4 sm:$0xff]  }
 0x4b8   : > { %v4198_v11 = vmul.f32 %v9009_v21, %v10114_v29  ;;  %v10174_v12 = vadd.f32 %v4274_v1, %v4241_v5  ;;  %v8757_v1 = vld [vmem:[%s9343_s20 + $0xf28] ss:$16 sps:$4 sm:$0xff]   ;;  %v8762_v34 = vld [vmem:[%s9343_s20 + $0xf44] ss:$16 sps:$4 sm:$0xff]   ;;  %v8760_v5 = vld [vmem:[%s9343_s20 + $0xf40] ss:$16 sps:$4 sm:$0xff]  }
 0x4b9   : > { %6443 = vst [vmem:[%s10168_s16] sm:$0xff] %v4279_v19  ;;  %v4415_v6 = vpack.c.bf16 %v4279_v19, %v4279_v19  ;;  %v8768_v21 = vld [vmem:[%s9343_s20 + $0xf64] ss:$16 sps:$4 sm:$0xff]   ;;  %v8771_v19 = vld [vmem:[%s9343_s20 + $0xf6c] ss:$16 sps:$4 sm:$0xff]  }
 0x4ba   : > { %v9011_v15 = vpop.eup %9010  ;;  %v4240_v16 = vmul.f32 %v4230_v18, %v4198_v11  ;;  %6445 = vst [vmem:[%s10168_s16 + $0x10] sm:$0xff] %v10174_v12  ;;  %v8763_v18 = vld [vmem:[%s9343_s20 + $0xf48] ss:$16 sps:$4 sm:$0xff]  }
 0x4bb   : > { %v4200_v17 = vmul.f32 %v9011_v15, %v10129_v38  ;;  %v8769_v11 = vld [vmem:[%s9343_s20 + $0xf68] ss:$16 sps:$4 sm:$0xff]   ;;  %v8772_v15 = vld [vmem:[%s9343_s20 + $0xf80] ss:$16 sps:$4 sm:$0xff]  }
 0x4bc   : > { %v4280_v22 = vadd.f32 %v4270_v43, %v4240_v16  ;;  %v8774_v43 = vld [vmem:[%s9343_s20 + $0xf84] ss:$16 sps:$4 sm:$0xff]   ;;  %v8775_v16 = vld [vmem:[%s9343_s20 + $0xf88] ss:$16 sps:$4 sm:$0xff]  }
 0x4bd   : > { %v4242_v29 = vmul.f32 %v4238_v13, %v4200_v17  ;;  %v8777_v13 = vld [vmem:[%s9343_s20 + $0xf8c] ss:$16 sps:$4 sm:$0xff]   ;;  %v8780_v17 = vld [vmem:[%s9343_s20 + $0xfa4] ss:$16 sps:$4 sm:$0xff]  }
 0x4be   : > { %v4416_v23 = vpack.c.bf16 %v4280_v22, %v4280_v22  ;;  %6444 = vst [vmem:[%s10168_s16 + $0x8] sm:$0xff] %v4280_v22  ;;  %v8778_v22 = vld [vmem:[%s9343_s20 + $0xfa0] ss:$16 sps:$4 sm:$0xff]  }
 0x4bf   : > { %v4282_v27 = vadd.f32 %v4278_v20, %v4242_v29  ;;  %v8783_v20 = vld [vmem:[%s9343_s20 + $0xfac] ss:$16 sps:$4 sm:$0xff]   ;;  %v8781_v29 = vld [vmem:[%s9343_s20 + $0xfa8] ss:$16 sps:$4 sm:$0xff]  }
 0x4c0   : > { %5091 = vmatprep.mubr.bf16.mxu0 %v4416_v23  ;;  %5173 = vmatprep.mubr.bf16.mxu1 %v4416_v23  ;;  %v8786_v23 = vld [vmem:[%s9343_s20 + $0xfc4] ss:$16 sps:$4 sm:$0xff]  }
 0x4c1   : > { %5092 = vmatmul.mubr.bf16.vlgmr.msra.gmra.mrb[16].mxu0 %v4415_v6  ;;  %5174 = vmatmul.mubr.bf16.vlgmr.msra.gmra.mrb[16].mxu1 %v4415_v6  ;;  %v4418_v38 = vpack.c.bf16 %v4282_v27, %v4282_v27  ;;  %6446 = vst [vmem:[%s10168_s16 + $0x18] sm:$0xff] %v4282_v27  ;;  %v8787_v6 = vld [vmem:[%s9343_s20 + $0xfc8] ss:$16 sps:$4 sm:$0xff]   ;;  %v8792_v27 = vld [vmem:[%s9343_s20 + $0xfe4] ss:$16 sps:$4 sm:$0xff]  }
 0x4c2   : > { %5101 = vmatpush1.bf16.msra.mxu0 %v8700_v24  ;;  %5183 = vmatpush1.bf16.msra.mxu1 %v8703_v26  ;;  %v8789_v24 = vld [vmem:[%s9343_s20 + $0xfcc] ss:$16 sps:$4 sm:$0xff]   ;;  %v8784_v26 = vld [vmem:[%s9343_s20 + $0xfc0] ss:$16 sps:$4 sm:$0xff]  }
 0x4c3   : > { %5132 = vmatprep.mubr.bf16.mxu0 %v4418_v38  ;;  %5214 = vmatprep.mubr.bf16.mxu1 %v4418_v38  ;;  %v8793_v38 = vld [vmem:[%s9343_s20 + $0xfe8] ss:$16 sps:$4 sm:$0xff]  }
 0x4c4   : > { %5102 = vmatprep.subr.bf16.mxu0 %v8708_v2  ;;  %5184 = vmatprep.subr.bf16.mxu1 %v8711_v61  ;;  %v8795_v2 = vld [vmem:[%s9343_s20 + $0xfec] ss:$16 sps:$4 sm:$0xff]   ;;  %v8790_v61 = vld [vmem:[%s9343_s20 + $0xfe0] ss:$16 sps:$4 sm:$0xff]  }
 0x4c6   : > { %5103 = vmatpush1.bf16.msra.mxu0 %v8706_v30  ;;  %5185 = vmatpush1.bf16.msra.mxu1 %v8709_v31  ;;  %v8798_v30 = vld [vmem:[%s9343_s20 + $0x1004] ss:$16 sps:$4 sm:$0xff]   ;;  %v8801_v31 = vld [vmem:[%s9343_s20 + $0x100c] ss:$16 sps:$4 sm:$0xff]  }
 0x4c7   : > { %5104 = vmatprep.subr.bf16.mxu0 %v8714_v54  ;;  %5186 = vmatprep.subr.bf16.mxu1 %v8717_v33  ;;  %v8796_v54 = vld [vmem:[%s9343_s20 + $0x1000] ss:$16 sps:$4 sm:$0xff]   ;;  %v8799_v33 = vld [vmem:[%s9343_s20 + $0x1008] ss:$16 sps:$4 sm:$0xff]  }
 0x4ca   : > { %5105 = vmatpush1.bf16.msra.mxu0 %v8712_v42  ;;  %5187 = vmatpush1.bf16.msra.mxu1 %v8715_v44  ;;  %v4417_v42 = vpack.c.bf16 %v10174_v12, %v10174_v12  ;;  %v8804_v44 = vld [vmem:[%s9343_s20 + $0x1024] ss:$16 sps:$4 sm:$0xff]  }
 0x4cb   : > { %5106 = vmatprep.subr.bf16.mxu0 %v8720_v9  ;;  %5188 = vmatprep.subr.bf16.mxu1 %v8723_v35  ;;  %v8807_v9 = vld [vmem:[%s9343_s20 + $0x102c] ss:$16 sps:$4 sm:$0xff]   ;;  %v8802_v35 = vld [vmem:[%s9343_s20 + $0x1020] ss:$16 sps:$4 sm:$0xff]   ;;  %v8810_v12 = vld [vmem:[%s9343_s20 + $0x1044] ss:$16 sps:$4 sm:$0xff]  }
 0x4ce   : > { %5107 = vmatpush1.bf16.msra.mxu0 %v8718_v39  ;;  %5189 = vmatpush1.bf16.msra.mxu1 %v8721_v40  ;;  %v8805_v39 = vld [vmem:[%s9343_s20 + $0x1028] ss:$16 sps:$4 sm:$0xff]   ;;  %v8813_v40 = vld [vmem:[%s9343_s20 + $0x104c] ss:$16 sps:$4 sm:$0xff]  }
 0x4cf   : > { %5108 = vmatprep.subr.bf16.mxu0 %v8726_v41  ;;  %5190 = vmatprep.subr.bf16.mxu1 %v8729_v45  ;;  %v8808_v41 = vld [vmem:[%s9343_s20 + $0x1040] ss:$16 sps:$4 sm:$0xff]   ;;  %v8811_v45 = vld [vmem:[%s9343_s20 + $0x1048] ss:$16 sps:$4 sm:$0xff]  }
 0x4d2   : > { %5109 = vmatpush1.bf16.msra.mxu0 %v8724_v46  ;;  %5191 = vmatpush1.bf16.msra.mxu1 %v8727_v47  ;;  %v8816_v46 = vld [vmem:[%s9343_s20 + $0x1064] ss:$16 sps:$4 sm:$0xff]   ;;  %v8819_v47 = vld [vmem:[%s9343_s20 + $0x106c] ss:$16 sps:$4 sm:$0xff]  }
 0x4d3   : > { %5110 = vmatprep.subr.bf16.mxu0 %v8732_v48  ;;  %5192 = vmatprep.subr.bf16.mxu1 %v8735_v14  ;;  %v8814_v48 = vld [vmem:[%s9343_s20 + $0x1060] ss:$16 sps:$4 sm:$0xff]   ;;  %v8817_v14 = vld [vmem:[%s9343_s20 + $0x1068] ss:$16 sps:$4 sm:$0xff]  }
 0x4d6   : > { %5111 = vmatpush1.bf16.msra.mxu0 %v8730_v49  ;;  %5193 = vmatpush1.bf16.msra.mxu1 %v8733_v50  ;;  %v8822_v49 = vld [vmem:[%s9343_s20 + $0x1084] ss:$16 sps:$4 sm:$0xff]   ;;  %v8825_v50 = vld [vmem:[%s9343_s20 + $0x108c] ss:$16 sps:$4 sm:$0xff]  }
 0x4d7   : > { %5112 = vmatprep.subr.bf16.mxu0 %v8738_v51  ;;  %5194 = vmatprep.subr.bf16.mxu1 %v8741_v28  ;;  %v8820_v51 = vld [vmem:[%s9343_s20 + $0x1080] ss:$16 sps:$4 sm:$0xff]   ;;  %v8823_v28 = vld [vmem:[%s9343_s20 + $0x1088] ss:$16 sps:$4 sm:$0xff]  }
 0x4da   : > { %5113 = vmatpush1.bf16.msra.mxu0 %v8736_v25  ;;  %5195 = vmatpush1.bf16.msra.mxu1 %v8739_v0  ;;  %v8828_v25 = vld [vmem:[%s9343_s20 + $0x10a4] ss:$16 sps:$4 sm:$0xff]   ;;  %v8831_v0 = vld [vmem:[%s9343_s20 + $0x10ac] ss:$16 sps:$4 sm:$0xff]  }
 0x4db   : > { %5114 = vmatprep.subr.bf16.mxu0 %v8744_v52  ;;  %5196 = vmatprep.subr.bf16.mxu1 %v8747_v53  ;;  %v8826_v52 = vld [vmem:[%s9343_s20 + $0x10a0] ss:$16 sps:$4 sm:$0xff]   ;;  %v8829_v53 = vld [vmem:[%s9343_s20 + $0x10a8] ss:$16 sps:$4 sm:$0xff]  }
 0x4de   : > { %5115 = vmatpush1.bf16.msra.mxu0 %v8742_v60  ;;  %5197 = vmatpush1.bf16.msra.mxu1 %v8745_v36  ;;  %v8834_v60 = vld [vmem:[%s9343_s20 + $0x10c4] ss:$16 sps:$4 sm:$0xff]   ;;  %v8837_v36 = vld [vmem:[%s9343_s20 + $0x10cc] ss:$16 sps:$4 sm:$0xff]  }
 0x4df   : > { %5116 = vmatprep.subr.bf16.mxu0 %v8750_v55  ;;  %5198 = vmatprep.subr.bf16.mxu1 %v8753_v56  ;;  %v8832_v55 = vld [vmem:[%s9343_s20 + $0x10c0] ss:$16 sps:$4 sm:$0xff]   ;;  %v8835_v56 = vld [vmem:[%s9343_s20 + $0x10c8] ss:$16 sps:$4 sm:$0xff]  }
 0x4e2   : > { %5117 = vmatpush1.bf16.msra.mxu0 %v8748_v37  ;;  %5199 = vmatpush1.bf16.msra.mxu1 %v8751_v32  ;;  %v8840_v37 = vld [vmem:[%s9343_s20 + $0x10e4] ss:$16 sps:$4 sm:$0xff]   ;;  %v8843_v32 = vld [vmem:[%s9343_s20 + $0x10ec] ss:$16 sps:$4 sm:$0xff]  }
 0x4e3   : > { %5118 = vmatprep.subr.bf16.mxu0 %v8756_v59  ;;  %5200 = vmatprep.subr.bf16.mxu1 %v8759_v62  ;;  %v8838_v59 = vld [vmem:[%s9343_s20 + $0x10e0] ss:$16 sps:$4 sm:$0xff]   ;;  %v8841_v62 = vld [vmem:[%s9343_s20 + $0x10e8] ss:$16 sps:$4 sm:$0xff]  }
 0x4e6   : > { %5119 = vmatpush1.bf16.msra.mxu0 %v8754_v63  ;;  %5201 = vmatpush1.bf16.msra.mxu1 %v8757_v1  ;;  %v8846_v63 = vld [vmem:[%s9343_s20 + $0x1104] ss:$16 sps:$4 sm:$0xff]   ;;  %v8849_v1 = vld [vmem:[%s9343_s20 + $0x110c] ss:$16 sps:$4 sm:$0xff]  }
 0x4e7   : > { %5120 = vmatprep.subr.bf16.mxu0 %v8762_v34  ;;  %5202 = vmatprep.subr.bf16.mxu1 %v8765_v4  ;;  %v8844_v34 = vld [vmem:[%s9343_s20 + $0x1100] ss:$16 sps:$4 sm:$0xff]   ;;  %v8847_v4 = vld [vmem:[%s9343_s20 + $0x1108] ss:$16 sps:$4 sm:$0xff]  }
 0x4ea   : > { %5121 = vmatpush1.bf16.msra.mxu0 %v8760_v5  ;;  %5203 = vmatpush1.bf16.msra.mxu1 %v8763_v18  ;;  %v8852_v5 = vld [vmem:[%s9343_s20 + $0x1124] ss:$16 sps:$4 sm:$0xff]   ;;  %v8855_v18 = vld [vmem:[%s9343_s20 + $0x112c] ss:$16 sps:$4 sm:$0xff]  }
 0x4eb   : > { %5122 = vmatprep.subr.bf16.mxu0 %v8768_v21  ;;  %5204 = vmatprep.subr.bf16.mxu1 %v8771_v19  ;;  %v8850_v21 = vld [vmem:[%s9343_s20 + $0x1120] ss:$16 sps:$4 sm:$0xff]   ;;  %v8853_v19 = vld [vmem:[%s9343_s20 + $0x1128] ss:$16 sps:$4 sm:$0xff]  }
 0x4ee   : > { %5123 = vmatpush1.bf16.msra.mxu0 %v8766_v8  ;;  %5205 = vmatpush1.bf16.msra.mxu1 %v8769_v11  ;;  %v8858_v8 = vld [vmem:[%s9343_s20 + $0x1144] ss:$16 sps:$4 sm:$0xff]   ;;  %v8861_v11 = vld [vmem:[%s9343_s20 + $0x114c] ss:$16 sps:$4 sm:$0xff]  }
 0x4ef   : > { %5124 = vmatprep.subr.bf16.mxu0 %v8774_v43  ;;  %5206 = vmatprep.subr.bf16.mxu1 %v8777_v13  ;;  %v8856_v43 = vld [vmem:[%s9343_s20 + $0x1140] ss:$16 sps:$4 sm:$0xff]   ;;  %v8859_v13 = vld [vmem:[%s9343_s20 + $0x1148] ss:$16 sps:$4 sm:$0xff]  }
 0x4f2   : > { %5125 = vmatpush1.bf16.msra.mxu0 %v8772_v15  ;;  %5207 = vmatpush1.bf16.msra.mxu1 %v8775_v16  ;;  %v8864_v15 = vld [vmem:[%s9343_s20 + $0x1164] ss:$16 sps:$4 sm:$0xff]   ;;  %v8867_v16 = vld [vmem:[%s9343_s20 + $0x116c] ss:$16 sps:$4 sm:$0xff]  }
 0x4f3   : > { %5126 = vmatprep.subr.bf16.mxu0 %v8780_v17  ;;  %5208 = vmatprep.subr.bf16.mxu1 %v8783_v20  ;;  %v8862_v17 = vld [vmem:[%s9343_s20 + $0x1160] ss:$16 sps:$4 sm:$0xff]   ;;  %v8865_v20 = vld [vmem:[%s9343_s20 + $0x1168] ss:$16 sps:$4 sm:$0xff]  }
 0x4f6   : > { %5127 = vmatpush1.bf16.msra.mxu0 %v8778_v22  ;;  %5209 = vmatpush1.bf16.msra.mxu1 %v8781_v29  ;;  %v8870_v22 = vld [vmem:[%s9343_s20 + $0x1184] ss:$16 sps:$4 sm:$0xff]   ;;  %v8873_v29 = vld [vmem:[%s9343_s20 + $0x118c] ss:$16 sps:$4 sm:$0xff]  }
 0x4f7   : > { %5128 = vmatprep.subr.bf16.mxu0 %v8786_v23  ;;  %5210 = vmatprep.subr.bf16.mxu1 %v8789_v24  ;;  %v8868_v23 = vld [vmem:[%s9343_s20 + $0x1180] ss:$16 sps:$4 sm:$0xff]   ;;  %v8871_v24 = vld [vmem:[%s9343_s20 + $0x1188] ss:$16 sps:$4 sm:$0xff]  }
 0x4fa   : > { %5129 = vmatpush1.bf16.msra.mxu0 %v8784_v26  ;;  %5211 = vmatpush1.bf16.msra.mxu1 %v8787_v6  ;;  %v8876_v26 = vld [vmem:[%s9343_s20 + $0x11a4] ss:$16 sps:$4 sm:$0xff]   ;;  %v8879_v6 = vld [vmem:[%s9343_s20 + $0x11ac] ss:$16 sps:$4 sm:$0xff]  }
 0x4fb   : > { %5130 = vmatprep.subr.bf16.mxu0 %v8792_v27  ;;  %5212 = vmatprep.subr.bf16.mxu1 %v8795_v2  ;;  %v8874_v27 = vld [vmem:[%s9343_s20 + $0x11a0] ss:$16 sps:$4 sm:$0xff]   ;;  %v8877_v2 = vld [vmem:[%s9343_s20 + $0x11a8] ss:$16 sps:$4 sm:$0xff]  }
 0x4fe   : > { %5131 = vmatpush1.bf16.msra.mxu0 %v8790_v61  ;;  %5213 = vmatpush1.bf16.msra.mxu1 %v8793_v38  ;;  %v8880_v61 = vld [vmem:[%s9343_s20 + $0x11c0] ss:$16 sps:$4 sm:$0xff]   ;;  %v8882_v38 = vld [vmem:[%s9343_s20 + $0x11c4] ss:$16 sps:$4 sm:$0xff]  }
 0x4ff   : > { %6279 = vmatprep.subr.bf16.mxu0 %v8798_v30  ;;  %6361 = vmatprep.subr.bf16.mxu1 %v8801_v31  ;;  %v8883_v30 = vld [vmem:[%s9343_s20 + $0x11c8] ss:$16 sps:$4 sm:$0xff]   ;;  %v8885_v31 = vld [vmem:[%s9343_s20 + $0x11cc] ss:$16 sps:$4 sm:$0xff]  }
 0x501   : > { %5133 = vmatmul.mubr.bf16.vlgmr.msra.gmra.mrb[16].mxu0 %v4417_v42  ;;  %5215 = vmatmul.mubr.bf16.vlgmr.msra.gmra.mrb[16].mxu1 %v4417_v42  ;;  %v8886_v42 = vld [vmem:[%s9343_s20 + $0x11e0] ss:$16 sps:$4 sm:$0xff]  }
 0x502   : > { %6280 = vmatpush1.bf16.msra.mxu0 %v8796_v54  ;;  %6362 = vmatpush1.bf16.msra.mxu1 %v8799_v33  ;;  %v8888_v54 = vld [vmem:[%s9343_s20 + $0x11e4] ss:$16 sps:$4 sm:$0xff]   ;;  %v8891_v33 = vld [vmem:[%s9343_s20 + $0x11ec] ss:$16 sps:$4 sm:$0xff]  }
 0x503   : > { %6281 = vmatprep.subr.bf16.mxu0 %v8804_v44  ;;  %6363 = vmatprep.subr.bf16.mxu1 %v8807_v9  ;;  %v8889_v44 = vld [vmem:[%s9343_s20 + $0x11e8] ss:$16 sps:$4 sm:$0xff]   ;;  %v8894_v9 = vld [vmem:[%s9343_s20 + $0x1204] ss:$16 sps:$4 sm:$0xff]  }
 0x506   : > { %6282 = vmatpush1.bf16.msra.mxu0 %v8802_v35  ;;  %6364 = vmatpush1.bf16.msra.mxu1 %v8805_v39  ;;  %v8897_v35 = vld [vmem:[%s9343_s20 + $0x120c] ss:$16 sps:$4 sm:$0xff]  }
 0x507   : > { %6283 = vmatprep.subr.bf16.mxu0 %v8810_v12  ;;  %6365 = vmatprep.subr.bf16.mxu1 %v8813_v40 }
 0x50a   : > { %6284 = vmatpush1.bf16.msra.mxu0 %v8808_v41  ;;  %6366 = vmatpush1.bf16.msra.mxu1 %v8811_v45 }
 0x50b   : > { %6285 = vmatprep.subr.bf16.mxu0 %v8816_v46  ;;  %6367 = vmatprep.subr.bf16.mxu1 %v8819_v47 }
 0x50e   : > { %6286 = vmatpush1.bf16.msra.mxu0 %v8814_v48  ;;  %6368 = vmatpush1.bf16.msra.mxu1 %v8817_v14 }
 0x50f   : > { %6287 = vmatprep.subr.bf16.mxu0 %v8822_v49  ;;  %6369 = vmatprep.subr.bf16.mxu1 %v8825_v50 }
 0x512   : > { %6288 = vmatpush1.bf16.msra.mxu0 %v8820_v51  ;;  %6370 = vmatpush1.bf16.msra.mxu1 %v8823_v28 }
 0x513   : > { %6289 = vmatprep.subr.bf16.mxu0 %v8828_v25  ;;  %6371 = vmatprep.subr.bf16.mxu1 %v8831_v0 }
 0x516   : > { %6290 = vmatpush1.bf16.msra.mxu0 %v8826_v52  ;;  %6372 = vmatpush1.bf16.msra.mxu1 %v8829_v53 }
 0x517   : > { %6291 = vmatprep.subr.bf16.mxu0 %v8834_v60  ;;  %6373 = vmatprep.subr.bf16.mxu1 %v8837_v36 }
 0x51a   : > { %6292 = vmatpush1.bf16.msra.mxu0 %v8832_v55  ;;  %6374 = vmatpush1.bf16.msra.mxu1 %v8835_v56 }
 0x51b   : > { %6293 = vmatprep.subr.bf16.mxu0 %v8840_v37  ;;  %6375 = vmatprep.subr.bf16.mxu1 %v8843_v32 }
 0x51e   : > { %6294 = vmatpush1.bf16.msra.mxu0 %v8838_v59  ;;  %6376 = vmatpush1.bf16.msra.mxu1 %v8841_v62 }
 0x51f   : > { %6295 = vmatprep.subr.bf16.mxu0 %v8846_v63  ;;  %6377 = vmatprep.subr.bf16.mxu1 %v8849_v1 }
 0x522   : > { %6296 = vmatpush1.bf16.msra.mxu0 %v8844_v34  ;;  %6378 = vmatpush1.bf16.msra.mxu1 %v8847_v4 }
 0x523   : > { %6297 = vmatprep.subr.bf16.mxu0 %v8852_v5  ;;  %6379 = vmatprep.subr.bf16.mxu1 %v8855_v18 }
 0x526   : > { %6298 = vmatpush1.bf16.msra.mxu0 %v8850_v21  ;;  %6380 = vmatpush1.bf16.msra.mxu1 %v8853_v19 }
 0x527   : > { %6299 = vmatprep.subr.bf16.mxu0 %v8858_v8  ;;  %6381 = vmatprep.subr.bf16.mxu1 %v8861_v11 }
 0x52a   : > { %6300 = vmatpush1.bf16.msra.mxu0 %v8856_v43  ;;  %6382 = vmatpush1.bf16.msra.mxu1 %v8859_v13 }
 0x52b   : > { %6301 = vmatprep.subr.bf16.mxu0 %v8864_v15  ;;  %6383 = vmatprep.subr.bf16.mxu1 %v8867_v16 }
 0x52e   : > { %6302 = vmatpush1.bf16.msra.mxu0 %v8862_v17  ;;  %6384 = vmatpush1.bf16.msra.mxu1 %v8865_v20 }
 0x52f   : > { %6303 = vmatprep.subr.bf16.mxu0 %v8870_v22  ;;  %6385 = vmatprep.subr.bf16.mxu1 %v8873_v29 }
 0x532   : > { %6304 = vmatpush1.bf16.msra.mxu0 %v8868_v23  ;;  %6386 = vmatpush1.bf16.msra.mxu1 %v8871_v24 }
 0x533   : > { %6305 = vmatprep.subr.bf16.mxu0 %v8876_v26  ;;  %6387 = vmatprep.subr.bf16.mxu1 %v8879_v6 }
 0x536   : > { %6306 = vmatpush1.bf16.msra.mxu0 %v8874_v27  ;;  %6388 = vmatpush1.bf16.msra.mxu1 %v8877_v2 }
 0x537   : > { %6307 = vmatprep.subr.bf16.mxu0 %v8882_v38  ;;  %6389 = vmatprep.subr.bf16.mxu1 %v8885_v31 }
 0x53a   : > { %6308 = vmatpush1.bf16.msra.mxu0 %v8880_v61  ;;  %6390 = vmatpush1.bf16.msra.mxu1 %v8883_v30 }
 0x53b   : > { %6309 = vmatprep.subr.bf16.mxu0 %v8888_v54  ;;  %6391 = vmatprep.subr.bf16.mxu1 %v8891_v33 }
 0x53e   : > { %6310 = vmatpush1.bf16.msra.mxu0 %v8886_v42  ;;  %6392 = vmatpush1.bf16.msra.mxu1 %v8889_v44 }
 0x53f   : > { %6320 = vmatprep.subr.bf16.mxu0 %v8894_v9  ;;  %6402 = vmatprep.subr.bf16.mxu1 %v8897_v35 }
 0x5d4   : > { %v10314_v39 = vpop.f32.mrb[16].mxu0  ;;  %v10316_v12 = vpop.f32.mrb[16].mxu1 }
 0x5d5   : > { %v5223_v40 = vsel %vm1678_vm0, %v10314_v39, 0.0  ;;  %v5255_v41 = vsel %vm1678_vm0, 0.0, %v10314_v39  ;;  %v5225_v45 = vsel %vm1678_vm0, %v10316_v12, 0.0  ;;  %v5257_v46 = vsel %vm1678_vm0, 0.0, %v10316_v12  ;;  %v10330_v47 = vpop.f32.mrb[17].mxu0  ;;  %v10332_v48 = vpop.f32.mrb[17].mxu1 }
 0x5d6   : > { %v5227_v14 = vrot.slane %v5223_v40, 4  ;;  %v5259_v49 = vrot.slane %v5255_v41, 4  ;;  %v5239_v50 = vrot.slane %v5225_v45, 4  ;;  %v5271_v51 = vrot.slane %v5257_v46, 4  ;;  %v5138_v28 = vpop.f32.mrb[18].mxu0  ;;  %v5220_v25 = vpop.f32.mrb[18].mxu1 }
 0x5d7   : > { %v5224_v0 = vsel %vm1678_vm0, %v10330_v47, 0.0  ;;  %v5256_v52 = vsel %vm1678_vm0, 0.0, %v10330_v47  ;;  %v5226_v53 = vsel %vm1678_vm0, %v10332_v48, 0.0  ;;  %v5258_v60 = vsel %vm1678_vm0, 0.0, %v10332_v48  ;;  %v5139_v36 = vpop.f32.mrb[19].mxu0  ;;  %v5221_v55 = vpop.f32.mrb[19].mxu1 }
 0x5d8   : > { %v5228_v56 = vadd.f32 %v5227_v14, %v5223_v40  ;;  %v5260_v37 = vadd.f32 %v5259_v49, %v5255_v41  ;;  %v5240_v32 = vadd.f32 %v5239_v50, %v5225_v45  ;;  %v5272_v59 = vadd.f32 %v5271_v51, %v5257_v46 }
 0x5d9   : > { %v5233_v62 = vrot.slane %v5224_v0, 4  ;;  %v5265_v63 = vrot.slane %v5256_v52, 4  ;;  %v5245_v1 = vrot.slane %v5226_v53, 4  ;;  %v5277_v34 = vrot.slane %v5258_v60, 4 }
 0x5da   : > { %v5229_v4 = vrot.slane %v5228_v56, 2  ;;  %v5261_v5 = vrot.slane %v5260_v37, 2  ;;  %v5241_v18 = vrot.slane %v5240_v32, 2  ;;  %v5273_v21 = vrot.slane %v5272_v59, 2 }
 0x5db   : > { %v5234_v19 = vadd.f32 %v5233_v62, %v5224_v0  ;;  %v5266_v8 = vadd.f32 %v5265_v63, %v5256_v52  ;;  %v5246_v11 = vadd.f32 %v5245_v1, %v5226_v53  ;;  %v5278_v43 = vadd.f32 %v5277_v34, %v5258_v60 }
 0x5dc   : > { %v5230_v13 = vadd.f32 %v5229_v4, %v5228_v56  ;;  %v5262_v15 = vadd.f32 %v5261_v5, %v5260_v37  ;;  %v5242_v16 = vadd.f32 %v5241_v18, %v5240_v32  ;;  %v5274_v17 = vadd.f32 %v5273_v21, %v5272_v59 }
 0x5dd   : > { %v5235_v20 = vrot.slane %v5234_v19, 2  ;;  %v5267_v22 = vrot.slane %v5266_v8, 2  ;;  %v5247_v29 = vrot.slane %v5246_v11, 2  ;;  %v5279_v23 = vrot.slane %v5278_v43, 2 }
 0x5de   : > { %v5231_v24 = vrot.slane %v5230_v13, 1  ;;  %v5263_v26 = vrot.slane %v5262_v15, 1  ;;  %v5243_v6 = vrot.slane %v5242_v16, 1  ;;  %v5275_v27 = vrot.slane %v5274_v17, 1 }
 0x5df   : > { %v5236_v2 = vadd.f32 %v5235_v20, %v5234_v19  ;;  %v5268_v61 = vadd.f32 %v5267_v22, %v5266_v8  ;;  %v5248_v38 = vadd.f32 %v5247_v29, %v5246_v11  ;;  %v5280_v30 = vadd.f32 %v5279_v23, %v5278_v43 }
 0x5e0   : > { %v5232_v31 = vadd.f32 %v5231_v24, %v5230_v13  ;;  %v5264_v54 = vadd.f32 %v5263_v26, %v5262_v15  ;;  %v5244_v33 = vadd.f32 %v5243_v6, %v5242_v16  ;;  %v5276_v42 = vadd.f32 %v5275_v27, %v5274_v17 }
 0x5e1   : > { %v5237_v44 = vrot.slane %v5236_v2, 1  ;;  %v5269_v9 = vrot.slane %v5268_v61, 1  ;;  %v5249_v35 = vrot.slane %v5248_v38, 1  ;;  %v5281_v40 = vrot.slane %v5280_v30, 1 }
 0x5e2   : > { %v5251_v41 = vmul.f32 0.25, %v5232_v31  ;;  %v5283_v45 = vmul.f32 0.25, %v5264_v54  ;;  %v5253_v46 = vmul.f32 0.25, %v5244_v33  ;;  %v5285_v14 = vmul.f32 0.25, %v5276_v42 }
 0x5e3   : > { %v5238_v49 = vadd.f32 %v5237_v44, %v5236_v2  ;;  %v5270_v50 = vadd.f32 %v5269_v9, %v5268_v61  ;;  %v5250_v51 = vadd.f32 %v5249_v35, %v5248_v38  ;;  %v5282_v28 = vadd.f32 %v5281_v40, %v5280_v30 }
 0x5e4   : > { %v5287_v25 = vsel %vm1678_vm0, %v5251_v41, %v5283_v45  ;;  %v5289_v0 = vsel %vm1678_vm0, %v5253_v46, %v5285_v14 }
 0x5e5   : > { %v10351_v52 = vsub.f32 %v10314_v39, %v5287_v25  ;;  %v10354_v53 = vsub.f32 %v10316_v12, %v5289_v0  ;;  %v5252_v60 = vmul.f32 0.25, %v5238_v49  ;;  %v5284_v36 = vmul.f32 0.25, %v5270_v50 }
 0x5e6   : > { %v5254_v55 = vmul.f32 0.25, %v5250_v51  ;;  %v5286_v56 = vmul.f32 0.25, %v5282_v28 }
 0x5e7   : > { %v5295_v37 = vmul.f32 %v10351_v52, %v10351_v52  ;;  %v5297_v32 = vmul.f32 %v10354_v53, %v10354_v53  ;;  %v5288_v59 = vsel %vm1678_vm0, %v5252_v60, %v5284_v36 }
 0x5e8   : > { %v10363_v62 = vsub.f32 %v10330_v47, %v5288_v59  ;;  %v5290_v39 = vsel %vm1678_vm0, %v5254_v55, %v5286_v56 }
 0x5e9   : > { %v5299_v12 = vsel %vm1678_vm0, %v5295_v37, 0.0  ;;  %v5331_v63 = vsel %vm1678_vm0, 0.0, %v5295_v37  ;;  %v5301_v1 = vsel %vm1678_vm0, %v5297_v32, 0.0  ;;  %v5333_v34 = vsel %vm1678_vm0, 0.0, %v5297_v32 }
 0x5ea   : > { %v5303_v4 = vrot.slane %v5299_v12, 4  ;;  %v5335_v5 = vrot.slane %v5331_v63, 4  ;;  %v5315_v18 = vrot.slane %v5301_v1, 4  ;;  %v5347_v47 = vrot.slane %v5333_v34, 4 }
 0x5eb   : > { %v5296_v21 = vmul.f32 %v10363_v62, %v10363_v62  ;;  %v10378_v19 = vsub.f32 %v10332_v48, %v5290_v39 }
 0x5ec   : > { %v5304_v8 = vadd.f32 %v5303_v4, %v5299_v12  ;;  %v5336_v11 = vadd.f32 %v5335_v5, %v5331_v63  ;;  %v5316_v43 = vadd.f32 %v5315_v18, %v5301_v1  ;;  %v5348_v13 = vadd.f32 %v5347_v47, %v5333_v34 }
 0x5ed   : > { %v5300_v15 = vsel %vm1678_vm0, %v5296_v21, 0.0  ;;  %v5332_v16 = vsel %vm1678_vm0, 0.0, %v5296_v21  ;;  %v5298_v17 = vmul.f32 %v10378_v19, %v10378_v19 }
 0x5ee   : > { %v5305_v20 = vrot.slane %v5304_v8, 2  ;;  %v5337_v22 = vrot.slane %v5336_v11, 2  ;;  %v5317_v29 = vrot.slane %v5316_v43, 2  ;;  %v5349_v23 = vrot.slane %v5348_v13, 2 }
 0x5ef   : > { %v5309_v24 = vrot.slane %v5300_v15, 4  ;;  %v5341_v48 = vrot.slane %v5332_v16, 4  ;;  %v5302_v26 = vsel %vm1678_vm0, %v5298_v17, 0.0  ;;  %v5334_v6 = vsel %vm1678_vm0, 0.0, %v5298_v17  ;;  %v7448_v17 = vld [vmem:[%s9643_s28 + $0x38] sm:$0x77] }
 0x5f0   : > { %v5306_v27 = vadd.f32 %v5305_v20, %v5304_v8  ;;  %v5338_v2 = vadd.f32 %v5337_v22, %v5336_v11  ;;  %v5318_v61 = vadd.f32 %v5317_v29, %v5316_v43  ;;  %v5350_v38 = vadd.f32 %v5349_v23, %v5348_v13 }
 0x5f1   : > { %v5310_v30 = vadd.f32 %v5309_v24, %v5300_v15  ;;  %v5342_v31 = vadd.f32 %v5341_v48, %v5332_v16  ;;  %v5321_v54 = vrot.slane %v5302_v26, 4  ;;  %v5353_v33 = vrot.slane %v5334_v6, 4  ;;  %v7447_v15 = vld [vmem:[%s9643_s28 + $0x30] sm:$0x77] }
 0x5f2   : > { %v5307_v42 = vrot.slane %v5306_v27, 1  ;;  %v5339_v44 = vrot.slane %v5338_v2, 1  ;;  %v5319_v9 = vrot.slane %v5318_v61, 1  ;;  %v5351_v35 = vrot.slane %v5350_v38, 1 }
 0x5f3   : > { %v5311_v40 = vrot.slane %v5310_v30, 2  ;;  %v5343_v41 = vrot.slane %v5342_v31, 2  ;;  %v5322_v45 = vadd.f32 %v5321_v54, %v5302_v26  ;;  %v5354_v46 = vadd.f32 %v5353_v33, %v5334_v6 }
 0x5f4   : > { %v5308_v14 = vadd.f32 %v5307_v42, %v5306_v27  ;;  %v5340_v49 = vadd.f32 %v5339_v44, %v5338_v2  ;;  %v5320_v50 = vadd.f32 %v5319_v9, %v5318_v61  ;;  %v5352_v51 = vadd.f32 %v5351_v35, %v5350_v38 }
 0x5f5   : > { %v5312_v28 = vadd.f32 %v5311_v40, %v5310_v30  ;;  %v5344_v25 = vadd.f32 %v5343_v41, %v5342_v31  ;;  %v5323_v0 = vrot.slane %v5322_v45, 2  ;;  %v5355_v60 = vrot.slane %v5354_v46, 2 }
 0x5f6   : > { %v5327_v36 = vmul.f32 0.25, %v5308_v14  ;;  %v5359_v55 = vmul.f32 0.25, %v5340_v49  ;;  %v5329_v56 = vmul.f32 0.25, %v5320_v50  ;;  %v5361_v37 = vmul.f32 0.25, %v5352_v51 }
 0x5f7   : > { %v5313_v32 = vrot.slane %v5312_v28, 1  ;;  %v5345_v59 = vrot.slane %v5344_v25, 1  ;;  %v5324_v39 = vadd.f32 %v5323_v0, %v5322_v45  ;;  %v5356_v12 = vadd.f32 %v5355_v60, %v5354_v46 }
 0x5f8   : > { %v5363_v63 = vsel %vm1678_vm0, %v5327_v36, %v5359_v55  ;;  %v5365_v1 = vsel %vm1678_vm0, %v5329_v56, %v5361_v37  ;;  %v5384_v23 = vrot.slane %v7447_v15, %v9646_v58  ;;  %v5392_v48 = vrot.slane %v7448_v17, %v9646_v58  ;;  %v8892_v37 = vld [vmem:[%s9343_s20 + $0x1200] ss:$16 sps:$4 sm:$0xff]  }
 0x5f9   : > { %v5367_v34 = vadd.f32 1e-05, %v5363_v63  ;;  %v5369_v4 = vadd.f32 1e-05, %v5365_v1  ;;  %v5314_v5 = vadd.f32 %v5313_v32, %v5312_v28  ;;  %v5346_v18 = vadd.f32 %v5345_v59, %v5344_v25  ;;  %v8895_v32 = vld [vmem:[%s9343_s20 + $0x1208] ss:$16 sps:$4 sm:$0xff]  }
 0x5fa   : > { %v5325_v47 = vrot.slane %v5324_v39, 1  ;;  %v5357_v21 = vrot.slane %v5356_v12, 1  ;;  %v5432_v6 = vrot.slane %v7448_v17, %v9653_v7  ;;  %v5404_v27 = vrot.slane %v5384_v23, %v9646_v58  ;;  %v8901_v63 = vld [vmem:[%s9343_s20 + $0x1228] ss:$16 sps:$4 sm:$0xff]   ;;  %v8906_v1 = vld [vmem:[%s9343_s20 + $0x1244] ss:$16 sps:$4 sm:$0xff]  }
 0x5fb   : > { %9012 = vrsqrt.f32 %v5367_v34  ;;  %v5328_v8 = vmul.f32 0.25, %v5314_v5  ;;  %v5360_v11 = vmul.f32 0.25, %v5346_v18  ;;  %v5424_v2 = vrot.slane %v7447_v15, %v9653_v7  ;;  %v8909_v34 = vld [vmem:[%s9343_s20 + $0x124c] ss:$16 sps:$4 sm:$0xff]   ;;  %v8907_v5 = vld [vmem:[%s9343_s20 + $0x1248] ss:$16 sps:$4 sm:$0xff]  }
 0x5fc   : > { %9014 = vrsqrt.f32 %v5369_v4  ;;  %v5326_v43 = vadd.f32 %v5325_v47, %v5324_v39  ;;  %v5358_v13 = vadd.f32 %v5357_v21, %v5356_v12  ;;  %v5412_v38 = vrot.slane %v5392_v48, %v9646_v58  ;;  %v8900_v39 = vld [vmem:[%s9343_s20 + $0x1224] ss:$16 sps:$4 sm:$0xff]   ;;  %v8898_v12 = vld [vmem:[%s9343_s20 + $0x1220] ss:$16 sps:$4 sm:$0xff]   ;;  %v8915_v47 = vld [vmem:[%s9343_s20 + $0x126c] ss:$16 sps:$4 sm:$0xff]  }
 0x5fd   : > { %v5364_v16 = vsel %vm1678_vm0, %v5328_v8, %v5360_v11  ;;  %v5388_v30 = vrot.slane %v7447_v15, %v9650_v3  ;;  %v5428_v42 = vrot.slane %v7447_v15, %v9656_v10  ;;  %v5452_v44 = vrot.slane %v5432_v6, %v9653_v7  ;;  %v8904_v4 = vld [vmem:[%s9343_s20 + $0x1240] ss:$16 sps:$4 sm:$0xff]   ;;  %v8912_v18 = vld [vmem:[%s9343_s20 + $0x1264] ss:$16 sps:$4 sm:$0xff]   ;;  %v8913_v8 = vld [vmem:[%s9343_s20 + $0x1268] ss:$16 sps:$4 sm:$0xff]  }
 0x5fe   : > { %v5368_v20 = vadd.f32 1e-05, %v5364_v16  ;;  %v5330_v22 = vmul.f32 0.25, %v5326_v43  ;;  %v5362_v29 = vmul.f32 0.25, %v5358_v13  ;;  %v5444_v35 = vrot.slane %v5424_v2, %v9653_v7  ;;  %v8910_v21 = vld [vmem:[%s9343_s20 + $0x1260] ss:$16 sps:$4 sm:$0xff]  }
 0x5ff   : > { %v5396_v40 = vrot.slane %v7448_v17, %v9650_v3  ;;  %v5408_v45 = vrot.slane %v5388_v30, %v9646_v58  ;;  %v5436_v14 = vrot.slane %v7448_v17, %v9656_v10  ;;  %v8918_v11 = vld [vmem:[%s9343_s20 + $0x1284] ss:$16 sps:$4 sm:$0xff]   ;;  %v8921_v43 = vld [vmem:[%s9343_s20 + $0x128c] ss:$16 sps:$4 sm:$0xff]   ;;  %v8916_v13 = vld [vmem:[%s9343_s20 + $0x1280] ss:$16 sps:$4 sm:$0xff]  }
 0x600   : > { %9016 = vrsqrt.f32 %v5368_v20  ;;  %v5366_v24 = vsel %vm1678_vm0, %v5330_v22, %v5362_v29  ;;  %v8919_v15 = vld [vmem:[%s9343_s20 + $0x1288] ss:$16 sps:$4 sm:$0xff]   ;;  %v8924_v16 = vld [vmem:[%s9343_s20 + $0x12a4] ss:$16 sps:$4 sm:$0xff]   ;;  %v8927_v17 = vld [vmem:[%s9343_s20 + $0x12ac] ss:$16 sps:$4 sm:$0xff]  }
 0x601   : > { %v5370_v26 = vadd.f32 1e-05, %v5366_v24  ;;  %v5416_v51 = vrot.slane %v5396_v40, %v9646_v58  ;;  %v5456_v0 = vrot.slane %v5436_v14, %v9653_v7  ;;  %v8922_v20 = vld [vmem:[%s9343_s20 + $0x12a0] ss:$16 sps:$4 sm:$0xff]   ;;  %v8925_v22 = vld [vmem:[%s9343_s20 + $0x12a8] ss:$16 sps:$4 sm:$0xff]  }
 0x602   : > { %v8930_v29 = vld [vmem:[%s9343_s20 + $0x12c4] ss:$16 sps:$4 sm:$0xff]   ;;  %v8933_v23 = vld [vmem:[%s9343_s20 + $0x12cc] ss:$16 sps:$4 sm:$0xff]   ;;  %v8928_v24 = vld [vmem:[%s9343_s20 + $0x12c0] ss:$16 sps:$4 sm:$0xff]  }
 0x603   : > { %9018 = vrsqrt.f32 %v5370_v26  ;;  %v8931_v48 = vld [vmem:[%s9343_s20 + $0x12c8] ss:$16 sps:$4 sm:$0xff]   ;;  %v8936_v26 = vld [vmem:[%s9343_s20 + $0x12e4] ss:$16 sps:$4 sm:$0xff]   ;;  %v8939_v6 = vld [vmem:[%s9343_s20 + $0x12ec] ss:$16 sps:$4 sm:$0xff]  }
 0x604   : > { %v8937_v2 = vld [vmem:[%s9343_s20 + $0x12e8] ss:$16 sps:$4 sm:$0xff]   ;;  %v8940_v30 = vld [vmem:[%s9343_s20 + $0x1300] ss:$16 sps:$4 sm:$0xff]  }
 0x605   : > { %v9013_v61 = vpop.eup %9012  ;;  %v8952_v40 = vld [vmem:[%s9343_s20 + $0x1340] ss:$16 sps:$4 sm:$0xff]  }
 0x606   : > { %v9015_v31 = vpop.eup %9014  ;;  %v5375_v54 = vmul.f32 %v9013_v61, %v10351_v52  ;;  %v8942_v61 = vld [vmem:[%s9343_s20 + $0x1304] ss:$16 sps:$4 sm:$0xff]   ;;  %v8958_v14 = vld [vmem:[%s9343_s20 + $0x1360] ss:$16 sps:$4 sm:$0xff]  }
 0x607   : > { %v5377_v33 = vmul.f32 %v9015_v31, %v10354_v53  ;;  %v5448_v53 = vrot.slane %v5428_v42, %v9653_v7  ;;  %v8943_v31 = vld [vmem:[%s9343_s20 + $0x1308] ss:$16 sps:$4 sm:$0xff]   ;;  %v8946_v42 = vld [vmem:[%s9343_s20 + $0x1320] ss:$16 sps:$4 sm:$0xff]  }
 0x608   : > { %v5417_v9 = vmul.f32 %v5404_v27, %v5375_v54  ;;  %v8934_v27 = vld [vmem:[%s9343_s20 + $0x12e0] ss:$16 sps:$4 sm:$0xff]   ;;  %v8948_v54 = vld [vmem:[%s9343_s20 + $0x1324] ss:$16 sps:$4 sm:$0xff]  }
 0x609   : > { %v5419_v41 = vmul.f32 %v5412_v38, %v5377_v33  ;;  %v8945_v38 = vld [vmem:[%s9343_s20 + $0x130c] ss:$16 sps:$4 sm:$0xff]  }
 0x60a   : > { %v9017_v46 = vpop.eup %9016  ;;  %v5457_v50 = vadd.f32 %v5444_v35, %v5417_v9  ;;  %v8951_v33 = vld [vmem:[%s9343_s20 + $0x132c] ss:$16 sps:$4 sm:$0xff]   ;;  %v8954_v9 = vld [vmem:[%s9343_s20 + $0x1344] ss:$16 sps:$4 sm:$0xff]  }
 0x60b   : > { %v5376_v52 = vmul.f32 %v9017_v46, %v10363_v62  ;;  %v10417_v49 = vadd.f32 %v5452_v44, %v5419_v41  ;;  %v8949_v44 = vld [vmem:[%s9343_s20 + $0x1328] ss:$16 sps:$4 sm:$0xff]   ;;  %v8957_v35 = vld [vmem:[%s9343_s20 + $0x134c] ss:$16 sps:$4 sm:$0xff]  }
 0x60c   : > { %v5461_v60 = vmax.f32 %v5457_v50, 0.0  ;;  %v8955_v41 = vld [vmem:[%s9343_s20 + $0x1348] ss:$16 sps:$4 sm:$0xff]   ;;  %v8963_v46 = vld [vmem:[%s9343_s20 + $0x136c] ss:$16 sps:$4 sm:$0xff]  }
 0x60d   : > { %v9019_v28 = vpop.eup %9018  ;;  %v5418_v3 = vmul.f32 %v5408_v45, %v5376_v52  ;;  %v8960_v45 = vld [vmem:[%s9343_s20 + $0x1364] ss:$16 sps:$4 sm:$0xff]   ;;  %v8961_v52 = vld [vmem:[%s9343_s20 + $0x1368] ss:$16 sps:$4 sm:$0xff]   ;;  %v8969_v50 = vld [vmem:[%s9343_s20 + $0x138c] ss:$16 sps:$4 sm:$0xff]  }
 0x60e   : > { %v5378_v25 = vmul.f32 %v9019_v28, %v10378_v19  ;;  %v5597_v58 = vpack.c.bf16 %v5461_v60, %v5461_v60  ;;  %v8903_v19 = vld [vmem:[%s9343_s20 + $0x122c] ss:$16 sps:$4 sm:$0xff]   ;;  %v8967_v28 = vld [vmem:[%s9343_s20 + $0x1388] ss:$16 sps:$4 sm:$0xff]   ;;  %v8978_v60 = vld [vmem:[%s9343_s20 + $0x13c4] ss:$16 sps:$4 sm:$0xff]  }
 0x60f   : > { %v5458_v10 = vadd.f32 %v5448_v53, %v5418_v3  ;;  %v8966_v53 = vld [vmem:[%s9343_s20 + $0x1384] ss:$16 sps:$4 sm:$0xff]  }
 0x610   : > { %v5420_v36 = vmul.f32 %v5416_v51, %v5378_v25  ;;  %v8964_v51 = vld [vmem:[%s9343_s20 + $0x1380] ss:$16 sps:$4 sm:$0xff]   ;;  %v8972_v3 = vld [vmem:[%s9343_s20 + $0x13a4] ss:$16 sps:$4 sm:$0xff]   ;;  %v8975_v25 = vld [vmem:[%s9343_s20 + $0x13ac] ss:$16 sps:$4 sm:$0xff]  }
 0x611   : > { %v5462_v62 = vmax.f32 %v5458_v10, 0.0  ;;  %v8973_v10 = vld [vmem:[%s9343_s20 + $0x13a8] ss:$16 sps:$4 sm:$0xff]  }
 0x612   : > { %v5460_v55 = vadd.f32 %v5456_v0, %v5420_v36  ;;  %v8970_v0 = vld [vmem:[%s9343_s20 + $0x13a0] ss:$16 sps:$4 sm:$0xff]   ;;  %v8981_v36 = vld [vmem:[%s9343_s20 + $0x13cc] ss:$16 sps:$4 sm:$0xff]  }
 0x613   : > { %v5598_v56 = vpack.c.bf16 %v5462_v62, %v5462_v62  ;;  %v8976_v62 = vld [vmem:[%s9343_s20 + $0x13c0] ss:$16 sps:$4 sm:$0xff]  }
 0x614   : > { %v5464_v59 = vmax.f32 %v5460_v55, 0.0  ;;  %v8979_v55 = vld [vmem:[%s9343_s20 + $0x13c8] ss:$16 sps:$4 sm:$0xff]  }
 0x615   : > { %6311 = vmatprep.mubr.bf16.mxu0 %v5598_v56  ;;  %6393 = vmatprep.mubr.bf16.mxu1 %v5598_v56  ;;  %v8984_v56 = vld [vmem:[%s9343_s20 + $0x13e4] ss:$16 sps:$4 sm:$0xff]  }
 0x616   : > { %6312 = vmatmul.mubr.bf16.vlgmr.msra.gmra.mrb[20].mxu0 %v5597_v58  ;;  %6394 = vmatmul.mubr.bf16.vlgmr.msra.gmra.mrb[20].mxu1 %v5597_v58  ;;  %v5600_v7 = vpack.c.bf16 %v5464_v59, %v5464_v59  ;;  %v8985_v58 = vld [vmem:[%s9343_s20 + $0x13e8] ss:$16 sps:$4 sm:$0xff]   ;;  %v5463_v59 = vmax.f32 %v10417_v49, 0.0 }
 0x617   : > { %6321 = vmatpush1.bf16.msra.mxu0 %v8892_v37  ;;  %6403 = vmatpush1.bf16.msra.mxu1 %v8895_v32  ;;  %v8987_v37 = vld [vmem:[%s9343_s20 + $0x13ec] ss:$16 sps:$4 sm:$0xff]   ;;  %v8982_v32 = vld [vmem:[%s9343_s20 + $0x13e0] ss:$16 sps:$4 sm:$0xff]  }
 0x618   : > { %6352 = vmatprep.mubr.bf16.mxu0 %v5600_v7  ;;  %6434 = vmatprep.mubr.bf16.mxu1 %v5600_v7  ;;  %v7705_v7 = vld [vmem:[%s9643_s28 + $0x40] sm:$0x77] }
 0x619   : > { %6322 = vmatprep.subr.bf16.mxu0 %v8900_v39  ;;  %6404 = vmatprep.subr.bf16.mxu1 %v8903_v19  ;;  %v5599_v39 = vpack.c.bf16 %v5463_v59, %v5463_v59  ;;  %v5605_v19 = vsub.s32 0, %v9577_v57 }
 0x61b   : > { %6323 = vmatpush1.bf16.msra.mxu0 %v8898_v12  ;;  %6405 = vmatpush1.bf16.msra.mxu1 %v8901_v63  ;;  %v7706_v12 = vld [vmem:[%s9643_s28 + $0x48] sm:$0x77]  ;;  %v5609_v63 = vsub.s32 4, %v9577_v57 }
 0x61c   : > { %6324 = vmatprep.subr.bf16.mxu0 %v8906_v1  ;;  %6406 = vmatprep.subr.bf16.mxu1 %v8909_v34  ;;  %v5606_v1 = vrot.slane %v7705_v7, %v5605_v19  ;;  %v5614_v34 = vrot.slane %v7706_v12, %v5605_v19 }
 0x61f   : > { %6325 = vmatpush1.bf16.msra.mxu0 %v8904_v4  ;;  %6407 = vmatpush1.bf16.msra.mxu1 %v8907_v5  ;;  %v5610_v4 = vrot.slane %v7705_v7, %v5609_v63  ;;  %v5618_v5 = vrot.slane %v7706_v12, %v5609_v63 }
 0x620   : > { %6326 = vmatprep.subr.bf16.mxu0 %v8912_v18  ;;  %6408 = vmatprep.subr.bf16.mxu1 %v8915_v47  ;;  %v5626_v18 = vrot.slane %v5606_v1, %v5605_v19  ;;  %v5634_v47 = vrot.slane %v5614_v34, %v5605_v19 }
 0x621   : > { %v5638_v49 = vrot.slane %v5618_v5, %v5605_v19 }
 0x623   : > { %6327 = vmatpush1.bf16.msra.mxu0 %v8910_v21  ;;  %6409 = vmatpush1.bf16.msra.mxu1 %v8913_v8  ;;  %v5630_v21 = vrot.slane %v5610_v4, %v5605_v19 }
 0x624   : > { %6328 = vmatprep.subr.bf16.mxu0 %v8918_v11  ;;  %6410 = vmatprep.subr.bf16.mxu1 %v8921_v43 }
 0x627   : > { %6329 = vmatpush1.bf16.msra.mxu0 %v8916_v13  ;;  %6411 = vmatpush1.bf16.msra.mxu1 %v8919_v15 }
 0x628   : > { %6330 = vmatprep.subr.bf16.mxu0 %v8924_v16  ;;  %6412 = vmatprep.subr.bf16.mxu1 %v8927_v17 }
 0x62b   : > { %6331 = vmatpush1.bf16.msra.mxu0 %v8922_v20  ;;  %6413 = vmatpush1.bf16.msra.mxu1 %v8925_v22 }
 0x62c   : > { %6332 = vmatprep.subr.bf16.mxu0 %v8930_v29  ;;  %6414 = vmatprep.subr.bf16.mxu1 %v8933_v23 }
 0x62f   : > { %6333 = vmatpush1.bf16.msra.mxu0 %v8928_v24  ;;  %6415 = vmatpush1.bf16.msra.mxu1 %v8931_v48 }
 0x630   : > { %6334 = vmatprep.subr.bf16.mxu0 %v8936_v26  ;;  %6416 = vmatprep.subr.bf16.mxu1 %v8939_v6 }
 0x633   : > { %6335 = vmatpush1.bf16.msra.mxu0 %v8934_v27  ;;  %6417 = vmatpush1.bf16.msra.mxu1 %v8937_v2 }
 0x634   : > { %6336 = vmatprep.subr.bf16.mxu0 %v8942_v61  ;;  %6418 = vmatprep.subr.bf16.mxu1 %v8945_v38 }
 0x637   : > { %6337 = vmatpush1.bf16.msra.mxu0 %v8940_v30  ;;  %6419 = vmatpush1.bf16.msra.mxu1 %v8943_v31 }
 0x638   : > { %6338 = vmatprep.subr.bf16.mxu0 %v8948_v54  ;;  %6420 = vmatprep.subr.bf16.mxu1 %v8951_v33 }
 0x63b   : > { %6339 = vmatpush1.bf16.msra.mxu0 %v8946_v42  ;;  %6421 = vmatpush1.bf16.msra.mxu1 %v8949_v44 }
 0x63c   : > { %6340 = vmatprep.subr.bf16.mxu0 %v8954_v9  ;;  %6422 = vmatprep.subr.bf16.mxu1 %v8957_v35 }
 0x63f   : > { %6341 = vmatpush1.bf16.msra.mxu0 %v8952_v40  ;;  %6423 = vmatpush1.bf16.msra.mxu1 %v8955_v41 }
 0x640   : > { %6342 = vmatprep.subr.bf16.mxu0 %v8960_v45  ;;  %6424 = vmatprep.subr.bf16.mxu1 %v8963_v46 }
 0x643   : > { %6343 = vmatpush1.bf16.msra.mxu0 %v8958_v14  ;;  %6425 = vmatpush1.bf16.msra.mxu1 %v8961_v52 }
 0x644   : > { %6344 = vmatprep.subr.bf16.mxu0 %v8966_v53  ;;  %6426 = vmatprep.subr.bf16.mxu1 %v8969_v50 }
 0x647   : > { %6345 = vmatpush1.bf16.msra.mxu0 %v8964_v51  ;;  %6427 = vmatpush1.bf16.msra.mxu1 %v8967_v28 }
 0x648   : > { %6346 = vmatprep.subr.bf16.mxu0 %v8972_v3  ;;  %6428 = vmatprep.subr.bf16.mxu1 %v8975_v25 }
 0x64b   : > { %6347 = vmatpush1.bf16.msra.mxu0 %v8970_v0  ;;  %6429 = vmatpush1.bf16.msra.mxu1 %v8973_v10 }
 0x64c   : > { %6348 = vmatprep.subr.bf16.mxu0 %v8978_v60  ;;  %6430 = vmatprep.subr.bf16.mxu1 %v8981_v36 }
 0x64f   : > { %6349 = vmatpush1.bf16.msra.mxu0 %v8976_v62  ;;  %6431 = vmatpush1.bf16.msra.mxu1 %v8979_v55 }
 0x650   : > { %6350 = vmatprep.subr.bf16.mxu0 %v8984_v56  ;;  %6432 = vmatprep.subr.bf16.mxu1 %v8987_v37 }
 0x653   : > { %6351 = vmatpush1.bf16.msra.mxu0 %v8982_v32  ;;  %6433 = vmatpush1.bf16.msra.mxu1 %v8985_v58 }
 0x656   : > { %6353 = vmatmul.mubr.bf16.vlgmr.msra.gmra.mrb[20].mxu0 %v5599_v39  ;;  %6435 = vmatmul.mubr.bf16.vlgmr.msra.gmra.mrb[20].mxu1 %v5599_v39 }
 0x729   : > { %v6354_v8 = vpop.f32.mrb[20].mxu0  ;;  %v6436_v11 = vpop.f32.mrb[20].mxu1 }
 0x72a   : > { %v7884_v43 = vadd.f32 %v6354_v8, %v5626_v18  ;;  %v7886_v13 = vadd.f32 %v6436_v11, %v5634_v47  ;;  %v6356_v15 = vpop.f32.mrb[21].mxu0  ;;  %v6438_v16 = vpop.f32.mrb[21].mxu1 }
 0x72b   : > { %v7885_v17 = vadd.f32 %v6356_v15, %v5630_v21  ;;  %v7887_v57 = vadd.f32 %v6438_v16, %v5638_v49  ;;  %v6358_v20 = vpop.f32.mrb[22].mxu0  ;;  %v6440_v22 = vpop.f32.mrb[22].mxu1 }
 0x72c   : > { %6447 = vst [vmem:[%s384_s19] sm:$0xff] %v7884_v43  ;;  %6449 = vst [vmem:[%s384_s19 + $0x10] sm:$0xff] %v7886_v13  ;;  %v6359_v29 = vpop.f32.mrb[23].mxu0  ;;  %v6441_v23 = vpop.f32.mrb[23].mxu1 }
 0x72d   : > { %6448 = vst [vmem:[%s384_s19 + $0x8] sm:$0xff] %v7885_v17  ;;  %6450 = vst [vmem:[%s384_s19 + $0x18] sm:$0xff] %v7887_v57 }
 0x72e PF: > { %s10525_s20 = smov %s9298_s24  ;;  %p19_p9 = scmp.ge.s32.totalorder %s9287_s21, 4  }
 0x72f   : > { %s10526_s24 = smov %s9136_s25  ;;  %s10527_s25 = smov %s9140_s26 }
 0x730   : > { %s10528_s26 = smov %s10525_s20  ;;  %s10529_s27 = smov %s9287_s21 }
 0x731   :  { %21 = sbr.rel (!%p19_p9) target bundleno = 4 (0x4), region = 126 }
 0x738   :  { %6502 = vsyncpa [#allocation3], 1 }
 0x739   :  { %6504 = vsyncpa [#allocation3 + $0x1], 1 }
 0x73a   :  { %6505 = vsyncpa [#allocation5], 1 }

</bundles_post_ra>
